<compile_context>
chip_gen: v6e
topology: v6e:2x2x1
jax: 0.10.0
libtpu: 0.0.40
codegen_flags: <defaults>
</compile_context>

<pallas_src>
import functools

import jax
import jax.numpy as jnp
from jax.experimental import pallas as pl
from jax.experimental.pallas import tpu as pltpu

# Target M tile for the BN+ReLU+1x1 sweep (review: 512-1024 ~ HBM roofline).
_TM = 512
# Fits every generation's physical VMEM (v7x 64 MiB, v5e/v6e 128 MiB); blocks in
# this script are far smaller, the limit just avoids artificial pipelining caps.
_VMEM_LIMIT = 64 * 1024 * 1024


def _round_up(x, m):
    return (x + m - 1) // m * m


def _pick_m_tile(m, target=_TM):
    # Even number of tiles (>=2 when possible) keeps both v7x TensorCores busy.
    if m <= target:
        return _round_up(m, 8)
    nt = (m + target - 1) // target
    nt = nt + (nt % 2)
    return _round_up((m + nt - 1) // nt, 8)


def _pick_plane_block(nplanes, oh, ow, *, budget_bytes=2 << 20, max_planes=8):
    per_plane = oh * ow * 4
    return int(max(1, min(max_planes, budget_bytes // max(per_plane, 1), nplanes)))


def _bilinear_matrix(in_size, out_size):
    # PyTorch nn.Upsample(mode='bilinear', align_corners=False) interpolation matrix.
    scale = in_size / out_size
    dst = jnp.arange(out_size, dtype=jnp.float32)
    src = jnp.maximum((dst + 0.5) * scale - 0.5, 0.0)
    i0f = jnp.floor(src)
    frac = src - i0f
    i0 = i0f.astype(jnp.int32)
    i1 = jnp.minimum(i0 + 1, in_size - 1)
    return ((1.0 - frac)[:, None] * jax.nn.one_hot(i0, in_size, dtype=jnp.float32)
            + frac[:, None] * jax.nn.one_hot(i1, in_size, dtype=jnp.float32))


# ---------------------------------------------------------------------------
# K1: in-kernel 3x3 conv (9 shifted-slab matmuls) + packed BN partial stats.
# ---------------------------------------------------------------------------
def _conv3x3_stats_kernel(xflat_ref, w_ref, mask_ref, y_ref, st_ref, acc_ref, *, width):
    # xflat_ref: (1, Mp2, Cin)  bf16  flattened zero-padded image (+1 guard row each end)
    # w_ref:     (9, Cin, Cmid_p) bf16  resident across the grid
    # mask_ref:  (R, 1) f32  1.0 on valid (non-border) output columns
    # y_ref:     (1, R, Cmid_p) bf16  masked conv output
    # st_ref:    (1, 8, Cmid_p) f32  sublane 0 = per-channel sum, sublane 1 = sum of squares
    # acc_ref:   (R, Cmid_p) f32 VMEM scratch
    r = acc_ref.shape[0]
    acc_ref[...] = jnp.zeros_like(acc_ref)
    for dy in range(3):
        for dx in range(3):
            s = dy * (width + 2) + dx                 # constant row shift of this tap
            a = xflat_ref[0, s:s + r, :]              # (R, Cin) contiguous rows, bf16
            acc_ref[...] += jnp.dot(a, w_ref[dy * 3 + dx],
                                    preferred_element_type=jnp.float32)
    y = acc_ref[...] * mask_ref[...]                  # zero the cropped border columns
    y_ref[0] = y.astype(y_ref.dtype)
    # Packed BN partial statistics (single lane-dense tile, no replicated sublanes).
    s_sum = jnp.sum(y, axis=0, keepdims=True)
    s_sq = jnp.sum(y * y, axis=0, keepdims=True)
    row = jax.lax.broadcasted_iota(jnp.int32, st_ref.shape[1:], 0)
    packed = jnp.where(row == 0, jnp.broadcast_to(s_sum, st_ref.shape[1:]),
                       jnp.where(row == 1, jnp.broadcast_to(s_sq, st_ref.shape[1:]), 0.0))
    st_ref[0] = packed


def _conv3x3_stats(xflat, wmat, mask, *, width, r, cmid_p):
    n, mp2, cin = xflat.shape
    kernel = functools.partial(_conv3x3_stats_kernel, width=width)
    grid_spec = pltpu.PrefetchScalarGridSpec(
        num_scalar_prefetch=0,
        grid=(n,),
        in_specs=[
            pl.BlockSpec((1, mp2, cin), lambda i: (i, 0, 0)),     # one image's flat slab
            pl.BlockSpec((9, cin, cmid_p), lambda i: (0, 0, 0)),  # weights stay resident
            pl.BlockSpec((r, 1), lambda i: (0, 0)),               # valid-column mask
        ],
        out_specs=[
            pl.BlockSpec((1, r, cmid_p), lambda i: (i, 0, 0)),
            pl.BlockSpec((1, 8, cmid_p), lambda i: (i, 0, 0)),
        ],
        scratch_shapes=[pltpu.VMEM((r, cmid_p), jnp.float32)],
    )
    return pl.pallas_call(
        kernel,
        grid_spec=grid_spec,
        out_shape=(
            jax.ShapeDtypeStruct((n, r, cmid_p), jnp.bfloat16),
            jax.ShapeDtypeStruct((n, 8, cmid_p), jnp.float32),
        ),
        compiler_params=pltpu.CompilerParams(
            dimension_semantics=("parallel",),
            vmem_limit_bytes=_VMEM_LIMIT,
        ),
    )(xflat, wmat, mask)


# ---------------------------------------------------------------------------
# K2: BN apply (scale/shift) + ReLU + fused 1x1 conv_out (+bias).
# ---------------------------------------------------------------------------
def _bn_relu_conv1x1_kernel(y_ref, scale_ref, shift_ref, w_ref, b_ref, o_ref):
    h = y_ref[...].astype(jnp.float32) * scale_ref[...] + shift_ref[...]
    h = jnp.maximum(h, 0.0)                                      # ReLU, f32 epilogue
    o = jnp.dot(h.astype(jnp.bfloat16), w_ref[...],
                preferred_element_type=jnp.float32)              # fused 1x1 conv
    o_ref[...] = (o + b_ref[...]).astype(o_ref.dtype)


def _bn_relu_conv1x1(y, scale, shift, w1, b1, *, tm):
    mp, cmid_p = y.shape
    ncls_p = w1.shape[1]
    grid_spec = pltpu.PrefetchScalarGridSpec(
        num_scalar_prefetch=0,
        grid=(mp // tm,),
        in_specs=[
            pl.BlockSpec((tm, cmid_p), lambda i: (i, 0)),
            pl.BlockSpec((1, cmid_p), lambda i: (0, 0)),
            pl.BlockSpec((1, cmid_p), lambda i: (0, 0)),
            pl.BlockSpec((cmid_p, ncls_p), lambda i: (0, 0)),
            pl.BlockSpec((1, ncls_p), lambda i: (0, 0)),
        ],
        out_specs=pl.BlockSpec((tm, ncls_p), lambda i: (i, 0)),
    )
    return pl.pallas_call(
        _bn_relu_conv1x1_kernel,
        grid_spec=grid_spec,
        out_shape=jax.ShapeDtypeStruct((mp, ncls_p), jnp.float32),
        compiler_params=pltpu.CompilerParams(
            dimension_semantics=("parallel",),
            vmem_limit_bytes=_VMEM_LIMIT,
        ),
    )(y, scale, shift, w1, b1)


# ---------------------------------------------------------------------------
# K3: per-(image, class)-plane separable bilinear upsample, written in NCHW.
# ---------------------------------------------------------------------------
def _upsample_planes_kernel(x_ref, uh_ref, uwt_ref, o_ref):
    # x_ref: (P, H, W), uh_ref: (OH, H), uwt_ref: (W, OW), o_ref: (P, OH, OW)
    for p in range(x_ref.shape[0]):
        t = jnp.dot(uh_ref[...], x_ref[p], preferred_element_type=jnp.float32)   # (OH, W)
        o_ref[p] = jnp.dot(t, uwt_ref[...], preferred_element_type=jnp.float32)  # (OH, OW)


def _bilinear_upsample_planes(planes, up_factor, *, plane_block):
    npl, h, w = planes.shape
    oh, ow = h * up_factor, w * up_factor
    uh = _bilinear_matrix(h, oh)        # (OH, H)
    uwt = _bilinear_matrix(w, ow).T     # (W, OW)
    return pl.pallas_call(
        _upsample_planes_kernel,
        grid_spec=pltpu.PrefetchScalarGridSpec(
            num_scalar_prefetch=0,
            grid=(npl // plane_block,),
            in_specs=[
                pl.BlockSpec((plane_block, h, w), lambda i: (i, 0, 0)),
                pl.BlockSpec((oh, h), lambda i: (0, 0)),          # Uh resident
                pl.BlockSpec((w, ow), lambda i: (0, 0)),          # Uw^T resident
            ],
            out_specs=pl.BlockSpec((plane_block, oh, ow), lambda i: (i, 0, 0)),
        ),
        out_shape=jax.ShapeDtypeStruct((npl, oh, ow), jnp.float32),
        compiler_params=pltpu.CompilerParams(
            dimension_semantics=("parallel",),
            vmem_limit_bytes=_VMEM_LIMIT,
        ),
    )(planes, uh, uwt)


# ---------------------------------------------------------------------------
# Forward wrapper (NCHW in / NCHW out) + parameter init matching the module.
# ---------------------------------------------------------------------------
def bisenet_output_forward(x_nchw, params, *, eps=1e-5):
    n, cin, h, w = x_nchw.shape
    w3 = params["conv_w"]                                   # (3, 3, Cin, Cmid)
    cmid = w3.shape[3]
    ncls = params["out_w"].shape[1]
    up_factor = params["up_factor"]

    cmid_p = _round_up(cmid, 128)                           # lane-dense mid channels
    ncls_p = _round_up(ncls, 128)                           # lane-dense classes (pre-upsample only)
    r = h * (w + 2)                                         # per-image conv rows (incl. border cols)

    # ---- K1 inputs: single spatial zero-pad + flatten (no im2col copy) ----
    x = jnp.transpose(x_nchw, (0, 2, 3, 1))                 # NCHW -> NHWC (small tensor)
    xp = jnp.pad(x, ((0, 0), (1, 1), (1, 1), (0, 0)))       # (N, H+2, W+2, Cin)
    xflat = jnp.pad(xp.reshape(n, (h + 2) * (w + 2), cin),
                    ((0, 0), (1, 1), (0, 0))).astype(jnp.bfloat16)   # + guard rows
    wmat = jnp.pad(w3.reshape(9, cin, cmid).astype(jnp.bfloat16),
                   ((0, 0), (0, 0), (0, cmid_p - cmid)))
    col = jnp.arange(r, dtype=jnp.int32) % (w + 2)
    mask = ((col >= 1) & (col <= w)).astype(jnp.float32).reshape(r, 1)

    y_conv, st = _conv3x3_stats(xflat, wmat, mask, width=w, r=r, cmid_p=cmid_p)

    # ---- fold batch statistics (PyTorch BN training mode, biased var) ----
    m_valid = n * h * w
    sums = jnp.sum(st[:, 0, :], axis=0)
    sumsqs = jnp.sum(st[:, 1, :], axis=0)
    mean = sums / m_valid
    # TODO(synk): E[x^2]-E[x]^2 in f32 can lose precision for large-mean channels;
    # a shifted / Welford combine would track PyTorch BN even closer.
    var = jnp.maximum(sumsqs / m_valid - mean * mean, 0.0)
    gamma = jnp.pad(params["bn_gamma"], (0, cmid_p - cmid))
    beta = jnp.pad(params["bn_beta"], (0, cmid_p - cmid))
    scale = gamma * jax.lax.rsqrt(var + eps)
    shift = beta - mean * scale

    # ---- K2: BN + ReLU + fused 1x1 conv_out (+bias) over flat M ----
    w1 = jnp.pad(params["out_w"].astype(jnp.bfloat16),
                 ((0, cmid_p - cmid), (0, ncls_p - ncls)))
    b1 = jnp.pad(params["out_b"], (0, ncls_p - ncls)).reshape(1, ncls_p)
    m = n * r
    tm = _pick_m_tile(m)
    mp = _round_up(m, tm)
    y2d = jnp.pad(y_conv.reshape(m, cmid_p), ((0, mp - m), (0, 0)))
    out2 = _bn_relu_conv1x1(y2d, scale.reshape(1, cmid_p), shift.reshape(1, cmid_p),
                            w1, b1, tm=tm)

    # ---- crop border / padded rows and real classes; lay out per-class planes ----
    y_pre = out2[:m].reshape(n, h, w + 2, ncls_p)[:, :, 1:w + 1, :ncls]   # (N, H, W, ncls)
    planes = jnp.transpose(y_pre, (0, 3, 1, 2)).reshape(n * ncls, h, w)   # small pre-upsample tensor

    # ---- K3: bilinear upsample by up_factor (align_corners=False), NCHW out ----
    oh, ow = h * up_factor, w * up_factor
    npl = n * ncls
    pblk = _pick_plane_block(npl, oh, ow)
    npl_pad = _round_up(npl, pblk)
    planes = jnp.pad(planes, ((0, npl_pad - npl), (0, 0), (0, 0)))
    up = _bilinear_upsample_planes(planes, up_factor, plane_block=pblk)
    return up[:npl].reshape(n, ncls, oh, ow)                # already NCHW


def init_bisenet_output_params(key, in_chan, mid_chan, n_classes, up_factor):
    k3, k1 = jax.random.split(key)
    # kaiming_normal_(a=1): gain = sqrt(2/(1+1^2)) = 1  ->  std = 1/sqrt(fan_in)
    w3 = jax.random.normal(k3, (3, 3, in_chan, mid_chan), jnp.float32) / (9 * in_chan) ** 0.5
    w1 = jax.random.normal(k1, (mid_chan, n_classes), jnp.float32) / mid_chan ** 0.5
    return dict(
        conv_w=w3,
        bn_gamma=jnp.ones((mid_chan,), jnp.float32),        # BN weight
        bn_beta=jnp.zeros((mid_chan,), jnp.float32),        # BN bias
        out_w=w1,                                           # conv_out weight (Cmid, n_classes)
        out_b=jnp.zeros((n_classes,), jnp.float32),         # init_weight(): bias <- 0
        up_factor=up_factor,
    )


if __name__ == "__main__":
    key = jax.random.PRNGKey(0)
    kx, kparams = jax.random.split(key)

    N, IN_CHAN, H, W = 2, 32, 16, 16
    MID_CHAN, N_CLASSES, UP = 32, 8, 4

    x = jax.random.normal(kx, (N, IN_CHAN, H, W), jnp.float32)
    params = init_bisenet_output_params(kparams, IN_CHAN, MID_CHAN, N_CLASSES, UP)

    out = bisenet_output_forward(x, params)
    out = jax.block_until_ready(out)

    # 16x16 -> conv3x3(s1,p1) 16x16 -> conv1x1 16x16 -> upsample x4 -> 64x64
    assert out.shape == (N, N_CLASSES, H * UP, W * UP), out.shape
    assert out.dtype == jnp.float32
    assert bool(jnp.all(jnp.isfinite(out)))
    print("KERNEL_OK")
</pallas_src>

<mosaic_0001>
module attributes {stable_mosaic.version = 11 : i64} {
  func.func @_conv3x3_stats_kernel(%arg0: i32, %arg1: memref<1x326x32xbf16, #tpu.memory_space<vmem>>, %arg2: memref<9x32x128xbf16, #tpu.memory_space<vmem>>, %arg3: memref<288x1xf32, #tpu.memory_space<vmem>>, %arg4: memref<1x288x128xbf16, #tpu.memory_space<vmem>>, %arg5: memref<1x8x128xf32, #tpu.memory_space<vmem>>, %arg6: memref<288x128xf32, #tpu.memory_space<vmem>>) attributes {dimension_semantics = [#tpu.dimension_semantics<parallel>], iteration_bounds = array<i64: 2>, scalar_prefetch = 0 : i64, scratch_operands = 1 : i64, tpu.core_type = #tpu.core_type<tc>, window_params = [{transform_indices = @transform_0, window_bounds = array<i64: 1, 326, 32>}, {pipeline_mode = #tpu.pipeline_mode<synchronous>, transform_indices = @transform_1, window_bounds = array<i64: 9, 32, 128>}, {pipeline_mode = #tpu.pipeline_mode<synchronous>, transform_indices = @transform_2, window_bounds = array<i64: 288, 1>}, {transform_indices = @transform_3, window_bounds = array<i64: 1, 288, 128>}, {transform_indices = @transform_4, window_bounds = array<i64: 1, 8, 128>}]} {
    %cst = arith.constant 0.000000e+00 : f32
    %0 = vector.broadcast %cst : f32 to vector<288x128xf32>
    %c0 = arith.constant 0 : index
    %c0_0 = arith.constant 0 : index
    %1 = vector.load %arg6[%c0, %c0_0] : memref<288x128xf32, #tpu.memory_space<vmem>>, vector<288x128xf32>
    tpu.vector_store %arg6[%c0, %c0_0], %0 {strides = array<i32>} : memref<288x128xf32, #tpu.memory_space<vmem>>, vector<288x128xf32>,
    %c0_1 = arith.constant 0 : index
    %c0_2 = arith.constant 0 : index
    %c0_3 = arith.constant 0 : index
    %2 = vector.load %arg1[%c0_1, %c0_2, %c0_3] : memref<1x326x32xbf16, #tpu.memory_space<vmem>>, vector<1x288x32xbf16>
    %3 = vector.shape_cast %2 : vector<1x288x32xbf16> to vector<288x32xbf16>
    %c0_4 = arith.constant 0 : index
    %c0_5 = arith.constant 0 : index
    %4 = vector.load %arg6[%c0_4, %c0_5] : memref<288x128xf32, #tpu.memory_space<vmem>>, vector<288x128xf32>
    %c0_6 = arith.constant 0 : index
    %c0_7 = arith.constant 0 : index
    %c0_8 = arith.constant 0 : index
    %5 = vector.load %arg2[%c0_6, %c0_7, %c0_8] : memref<9x32x128xbf16, #tpu.memory_space<vmem>>, vector<1x32x128xbf16>
    %6 = vector.shape_cast %5 : vector<1x32x128xbf16> to vector<32x128xbf16>
    %cst_9 = arith.constant dense<0.000000e+00> : vector<288x128xf32>
    %7 = tpu.matmul %3, %6, %cst_9 {dimension_numbers = #tpu.dot_dimension_numbers<[1], [0], [0], [1], [0, 0, 1, 1], [], []>} : vector<288x32xbf16>, vector<32x128xbf16>, vector<288x128xf32> -> vector<288x128xf32>
    %8 = arith.addf %4, %7 : vector<288x128xf32>
    %c0_10 = arith.constant 0 : index
    %c0_11 = arith.constant 0 : index
    %9 = vector.load %arg6[%c0_10, %c0_11] : memref<288x128xf32, #tpu.memory_space<vmem>>, vector<288x128xf32>
    tpu.vector_store %arg6[%c0_10, %c0_11], %8 {strides = array<i32>} : memref<288x128xf32, #tpu.memory_space<vmem>>, vector<288x128xf32>,
    %c0_12 = arith.constant 0 : index
    %c1 = arith.constant 1 : index
    %c0_13 = arith.constant 0 : index
    %10 = vector.load %arg1[%c0_12, %c1, %c0_13] : memref<1x326x32xbf16, #tpu.memory_space<vmem>>, vector<1x288x32xbf16>
    %11 = vector.shape_cast %10 : vector<1x288x32xbf16> to vector<288x32xbf16>
    %c0_14 = arith.constant 0 : index
    %c0_15 = arith.constant 0 : index
    %12 = vector.load %arg6[%c0_14, %c0_15] : memref<288x128xf32, #tpu.memory_space<vmem>>, vector<288x128xf32>
    %c1_16 = arith.constant 1 : index
    %c0_17 = arith.constant 0 : index
    %c0_18 = arith.constant 0 : index
    %13 = vector.load %arg2[%c1_16, %c0_17, %c0_18] : memref<9x32x128xbf16, #tpu.memory_space<vmem>>, vector<1x32x128xbf16>
    %14 = vector.shape_cast %13 : vector<1x32x128xbf16> to vector<32x128xbf16>
    %cst_19 = arith.constant dense<0.000000e+00> : vector<288x128xf32>
    %15 = tpu.matmul %11, %14, %cst_19 {dimension_numbers = #tpu.dot_dimension_numbers<[1], [0], [0], [1], [0, 0, 1, 1], [], []>} : vector<288x32xbf16>, vector<32x128xbf16>, vector<288x128xf32> -> vector<288x128xf32>
    %16 = arith.addf %12, %15 : vector<288x128xf32>
    %c0_20 = arith.constant 0 : index
    %c0_21 = arith.constant 0 : index
    %17 = vector.load %arg6[%c0_20, %c0_21] : memref<288x128xf32, #tpu.memory_space<vmem>>, vector<288x128xf32>
    tpu.vector_store %arg6[%c0_20, %c0_21], %16 {strides = array<i32>} : memref<288x128xf32, #tpu.memory_space<vmem>>, vector<288x128xf32>,
    %c0_22 = arith.constant 0 : index
    %c2 = arith.constant 2 : index
    %c0_23 = arith.constant 0 : index
    %18 = vector.load %arg1[%c0_22, %c2, %c0_23] : memref<1x326x32xbf16, #tpu.memory_space<vmem>>, vector<1x288x32xbf16>
    %19 = vector.shape_cast %18 : vector<1x288x32xbf16> to vector<288x32xbf16>
    %c0_24 = arith.constant 0 : index
    %c0_25 = arith.constant 0 : index
    %20 = vector.load %arg6[%c0_24, %c0_25] : memref<288x128xf32, #tpu.memory_space<vmem>>, vector<288x128xf32>
    %c2_26 = arith.constant 2 : index
    %c0_27 = arith.constant 0 : index
    %c0_28 = arith.constant 0 : index
    %21 = vector.load %arg2[%c2_26, %c0_27, %c0_28] : memref<9x32x128xbf16, #tpu.memory_space<vmem>>, vector<1x32x128xbf16>
    %22 = vector.shape_cast %21 : vector<1x32x128xbf16> to vector<32x128xbf16>
    %cst_29 = arith.constant dense<0.000000e+00> : vector<288x128xf32>
    %23 = tpu.matmul %19, %22, %cst_29 {dimension_numbers = #tpu.dot_dimension_numbers<[1], [0], [0], [1], [0, 0, 1, 1], [], []>} : vector<288x32xbf16>, vector<32x128xbf16>, vector<288x128xf32> -> vector<288x128xf32>
    %24 = arith.addf %20, %23 : vector<288x128xf32>
    %c0_30 = arith.constant 0 : index
    %c0_31 = arith.constant 0 : index
    %25 = vector.load %arg6[%c0_30, %c0_31] : memref<288x128xf32, #tpu.memory_space<vmem>>, vector<288x128xf32>
    tpu.vector_store %arg6[%c0_30, %c0_31], %24 {strides = array<i32>} : memref<288x128xf32, #tpu.memory_space<vmem>>, vector<288x128xf32>,
    %c0_32 = arith.constant 0 : index
    %c18 = arith.constant 18 : index
    %c0_33 = arith.constant 0 : index
    %26 = vector.load %arg1[%c0_32, %c18, %c0_33] : memref<1x326x32xbf16, #tpu.memory_space<vmem>>, vector<1x288x32xbf16>
    %27 = vector.shape_cast %26 : vector<1x288x32xbf16> to vector<288x32xbf16>
    %c0_34 = arith.constant 0 : index
    %c0_35 = arith.constant 0 : index
    %28 = vector.load %arg6[%c0_34, %c0_35] : memref<288x128xf32, #tpu.memory_space<vmem>>, vector<288x128xf32>
    %c3 = arith.constant 3 : index
    %c0_36 = arith.constant 0 : index
    %c0_37 = arith.constant 0 : index
    %29 = vector.load %arg2[%c3, %c0_36, %c0_37] : memref<9x32x128xbf16, #tpu.memory_space<vmem>>, vector<1x32x128xbf16>
    %30 = vector.shape_cast %29 : vector<1x32x128xbf16> to vector<32x128xbf16>
    %cst_38 = arith.constant dense<0.000000e+00> : vector<288x128xf32>
    %31 = tpu.matmul %27, %30, %cst_38 {dimension_numbers = #tpu.dot_dimension_numbers<[1], [0], [0], [1], [0, 0, 1, 1], [], []>} : vector<288x32xbf16>, vector<32x128xbf16>, vector<288x128xf32> -> vector<288x128xf32>
    %32 = arith.addf %28, %31 : vector<288x128xf32>
    %c0_39 = arith.constant 0 : index
    %c0_40 = arith.constant 0 : index
    %33 = vector.load %arg6[%c0_39, %c0_40] : memref<288x128xf32, #tpu.memory_space<vmem>>, vector<288x128xf32>
    tpu.vector_store %arg6[%c0_39, %c0_40], %32 {strides = array<i32>} : memref<288x128xf32, #tpu.memory_space<vmem>>, vector<288x128xf32>,
    %c0_41 = arith.constant 0 : index
    %c19 = arith.constant 19 : index
    %c0_42 = arith.constant 0 : index
    %34 = vector.load %arg1[%c0_41, %c19, %c0_42] : memref<1x326x32xbf16, #tpu.memory_space<vmem>>, vector<1x288x32xbf16>
    %35 = vector.shape_cast %34 : vector<1x288x32xbf16> to vector<288x32xbf16>
    %c0_43 = arith.constant 0 : index
    %c0_44 = arith.constant 0 : index
    %36 = vector.load %arg6[%c0_43, %c0_44] : memref<288x128xf32, #tpu.memory_space<vmem>>, vector<288x128xf32>
    %c4 = arith.constant 4 : index
    %c0_45 = arith.constant 0 : index
    %c0_46 = arith.constant 0 : index
    %37 = vector.load %arg2[%c4, %c0_45, %c0_46] : memref<9x32x128xbf16, #tpu.memory_space<vmem>>, vector<1x32x128xbf16>
    %38 = vector.shape_cast %37 : vector<1x32x128xbf16> to vector<32x128xbf16>
    %cst_47 = arith.constant dense<0.000000e+00> : vector<288x128xf32>
    %39 = tpu.matmul %35, %38, %cst_47 {dimension_numbers = #tpu.dot_dimension_numbers<[1], [0], [0], [1], [0, 0, 1, 1], [], []>} : vector<288x32xbf16>, vector<32x128xbf16>, vector<288x128xf32> -> vector<288x128xf32>
    %40 = arith.addf %36, %39 : vector<288x128xf32>
    %c0_48 = arith.constant 0 : index
    %c0_49 = arith.constant 0 : index
    %41 = vector.load %arg6[%c0_48, %c0_49] : memref<288x128xf32, #tpu.memory_space<vmem>>, vector<288x128xf32>
    tpu.vector_store %arg6[%c0_48, %c0_49], %40 {strides = array<i32>} : memref<288x128xf32, #tpu.memory_space<vmem>>, vector<288x128xf32>,
    %c0_50 = arith.constant 0 : index
    %c20 = arith.constant 20 : index
    %c0_51 = arith.constant 0 : index
    %42 = vector.load %arg1[%c0_50, %c20, %c0_51] : memref<1x326x32xbf16, #tpu.memory_space<vmem>>, vector<1x288x32xbf16>
    %43 = vector.shape_cast %42 : vector<1x288x32xbf16> to vector<288x32xbf16>
    %c0_52 = arith.constant 0 : index
    %c0_53 = arith.constant 0 : index
    %44 = vector.load %arg6[%c0_52, %c0_53] : memref<288x128xf32, #tpu.memory_space<vmem>>, vector<288x128xf32>
    %c5 = arith.constant 5 : index
    %c0_54 = arith.constant 0 : index
    %c0_55 = arith.constant 0 : index
    %45 = vector.load %arg2[%c5, %c0_54, %c0_55] : memref<9x32x128xbf16, #tpu.memory_space<vmem>>, vector<1x32x128xbf16>
    %46 = vector.shape_cast %45 : vector<1x32x128xbf16> to vector<32x128xbf16>
    %cst_56 = arith.constant dense<0.000000e+00> : vector<288x128xf32>
    %47 = tpu.matmul %43, %46, %cst_56 {dimension_numbers = #tpu.dot_dimension_numbers<[1], [0], [0], [1], [0, 0, 1, 1], [], []>} : vector<288x32xbf16>, vector<32x128xbf16>, vector<288x128xf32> -> vector<288x128xf32>
    %48 = arith.addf %44, %47 : vector<288x128xf32>
    %c0_57 = arith.constant 0 : index
    %c0_58 = arith.constant 0 : index
    %49 = vector.load %arg6[%c0_57, %c0_58] : memref<288x128xf32, #tpu.memory_space<vmem>>, vector<288x128xf32>
    tpu.vector_store %arg6[%c0_57, %c0_58], %48 {strides = array<i32>} : memref<288x128xf32, #tpu.memory_space<vmem>>, vector<288x128xf32>,
    %c0_59 = arith.constant 0 : index
    %c36 = arith.constant 36 : index
    %c0_60 = arith.constant 0 : index
    %50 = vector.load %arg1[%c0_59, %c36, %c0_60] : memref<1x326x32xbf16, #tpu.memory_space<vmem>>, vector<1x288x32xbf16>
    %51 = vector.shape_cast %50 : vector<1x288x32xbf16> to vector<288x32xbf16>
    %c0_61 = arith.constant 0 : index
    %c0_62 = arith.constant 0 : index
    %52 = vector.load %arg6[%c0_61, %c0_62] : memref<288x128xf32, #tpu.memory_space<vmem>>, vector<288x128xf32>
    %c6 = arith.constant 6 : index
    %c0_63 = arith.constant 0 : index
    %c0_64 = arith.constant 0 : index
    %53 = vector.load %arg2[%c6, %c0_63, %c0_64] : memref<9x32x128xbf16, #tpu.memory_space<vmem>>, vector<1x32x128xbf16>
    %54 = vector.shape_cast %53 : vector<1x32x128xbf16> to vector<32x128xbf16>
    %cst_65 = arith.constant dense<0.000000e+00> : vector<288x128xf32>
    %55 = tpu.matmul %51, %54, %cst_65 {dimension_numbers = #tpu.dot_dimension_numbers<[1], [0], [0], [1], [0, 0, 1, 1], [], []>} : vector<288x32xbf16>, vector<32x128xbf16>, vector<288x128xf32> -> vector<288x128xf32>
    %56 = arith.addf %52, %55 : vector<288x128xf32>
    %c0_66 = arith.constant 0 : index
    %c0_67 = arith.constant 0 : index
    %57 = vector.load %arg6[%c0_66, %c0_67] : memref<288x128xf32, #tpu.memory_space<vmem>>, vector<288x128xf32>
    tpu.vector_store %arg6[%c0_66, %c0_67], %56 {strides = array<i32>} : memref<288x128xf32, #tpu.memory_space<vmem>>, vector<288x128xf32>,
    %c0_68 = arith.constant 0 : index
    %c37 = arith.constant 37 : index
    %c0_69 = arith.constant 0 : index
    %58 = vector.load %arg1[%c0_68, %c37, %c0_69] : memref<1x326x32xbf16, #tpu.memory_space<vmem>>, vector<1x288x32xbf16>
    %59 = vector.shape_cast %58 : vector<1x288x32xbf16> to vector<288x32xbf16>
    %c0_70 = arith.constant 0 : index
    %c0_71 = arith.constant 0 : index
    %60 = vector.load %arg6[%c0_70, %c0_71] : memref<288x128xf32, #tpu.memory_space<vmem>>, vector<288x128xf32>
    %c7 = arith.constant 7 : index
    %c0_72 = arith.constant 0 : index
    %c0_73 = arith.constant 0 : index
    %61 = vector.load %arg2[%c7, %c0_72, %c0_73] : memref<9x32x128xbf16, #tpu.memory_space<vmem>>, vector<1x32x128xbf16>
    %62 = vector.shape_cast %61 : vector<1x32x128xbf16> to vector<32x128xbf16>
    %cst_74 = arith.constant dense<0.000000e+00> : vector<288x128xf32>
    %63 = tpu.matmul %59, %62, %cst_74 {dimension_numbers = #tpu.dot_dimension_numbers<[1], [0], [0], [1], [0, 0, 1, 1], [], []>} : vector<288x32xbf16>, vector<32x128xbf16>, vector<288x128xf32> -> vector<288x128xf32>
    %64 = arith.addf %60, %63 : vector<288x128xf32>
    %c0_75 = arith.constant 0 : index
    %c0_76 = arith.constant 0 : index
    %65 = vector.load %arg6[%c0_75, %c0_76] : memref<288x128xf32, #tpu.memory_space<vmem>>, vector<288x128xf32>
    tpu.vector_store %arg6[%c0_75, %c0_76], %64 {strides = array<i32>} : memref<288x128xf32, #tpu.memory_space<vmem>>, vector<288x128xf32>,
    %c0_77 = arith.constant 0 : index
    %c38 = arith.constant 38 : index
    %c0_78 = arith.constant 0 : index
    %66 = vector.load %arg1[%c0_77, %c38, %c0_78] : memref<1x326x32xbf16, #tpu.memory_space<vmem>>, vector<1x288x32xbf16>
    %67 = vector.shape_cast %66 : vector<1x288x32xbf16> to vector<288x32xbf16>
    %c0_79 = arith.constant 0 : index
    %c0_80 = arith.constant 0 : index
    %68 = vector.load %arg6[%c0_79, %c0_80] : memref<288x128xf32, #tpu.memory_space<vmem>>, vector<288x128xf32>
    %c8 = arith.constant 8 : index
    %c0_81 = arith.constant 0 : index
    %c0_82 = arith.constant 0 : index
    %69 = vector.load %arg2[%c8, %c0_81, %c0_82] : memref<9x32x128xbf16, #tpu.memory_space<vmem>>, vector<1x32x128xbf16>
    %70 = vector.shape_cast %69 : vector<1x32x128xbf16> to vector<32x128xbf16>
    %cst_83 = arith.constant dense<0.000000e+00> : vector<288x128xf32>
    %71 = tpu.matmul %67, %70, %cst_83 {dimension_numbers = #tpu.dot_dimension_numbers<[1], [0], [0], [1], [0, 0, 1, 1], [], []>} : vector<288x32xbf16>, vector<32x128xbf16>, vector<288x128xf32> -> vector<288x128xf32>
    %72 = arith.addf %68, %71 : vector<288x128xf32>
    %c0_84 = arith.constant 0 : index
    %c0_85 = arith.constant 0 : index
    %73 = vector.load %arg6[%c0_84, %c0_85] : memref<288x128xf32, #tpu.memory_space<vmem>>, vector<288x128xf32>
    tpu.vector_store %arg6[%c0_84, %c0_85], %72 {strides = array<i32>} : memref<288x128xf32, #tpu.memory_space<vmem>>, vector<288x128xf32>,
    %c0_86 = arith.constant 0 : index
    %c0_87 = arith.constant 0 : index
    %74 = vector.load %arg6[%c0_86, %c0_87] : memref<288x128xf32, #tpu.memory_space<vmem>>, vector<288x128xf32>
    %c0_88 = arith.constant 0 : index
    %c0_89 = arith.constant 0 : index
    %75 = vector.load %arg3[%c0_88, %c0_89] : memref<288x1xf32, #tpu.memory_space<vmem>>, vector<288x1xf32>
    %76 = vector.broadcast %75 : vector<288x1xf32> to vector<288x128xf32>
    %77 = arith.mulf %74, %76 : vector<288x128xf32>
    %78 = arith.truncf %77 : vector<288x128xf32> to vector<288x128xbf16>
    %c0_90 = arith.constant 0 : index
    %c0_91 = arith.constant 0 : index
    %c0_92 = arith.constant 0 : index
    %79 = vector.load %arg4[%c0_90, %c0_91, %c0_92] : memref<1x288x128xbf16, #tpu.memory_space<vmem>>, vector<1x288x128xbf16>
    %80 = vector.shape_cast %79 : vector<1x288x128xbf16> to vector<288x128xbf16>
    %81 = vector.shape_cast %78 : vector<288x128xbf16> to vector<1x288x128xbf16>
    tpu.vector_store %arg4[%c0_90, %c0_91, %c0_92], %81 {strides = array<i32>} : memref<1x288x128xbf16, #tpu.memory_space<vmem>>, vector<1x288x128xbf16>,
    %cst_93 = arith.constant dense<0.000000e+00> : vector<128xf32>
    %82 = vector.multi_reduction <add>, %77, %cst_93 [0] : vector<288x128xf32> to vector<128xf32>
    %83 = vector.shape_cast %82 : vector<128xf32> to vector<1x128xf32>
    %84 = arith.mulf %77, %77 : vector<288x128xf32>
    %cst_94 = arith.constant dense<0.000000e+00> : vector<128xf32>
    %85 = vector.multi_reduction <add>, %84, %cst_94 [0] : vector<288x128xf32> to vector<128xf32>
    %86 = vector.shape_cast %85 : vector<128xf32> to vector<1x128xf32>
    %87 = tpu.iota {dimensions = array<i32: 0>} : vector<8x128xi32>
    %c0_i32 = arith.constant 0 : i32
    %88 = vector.broadcast %c0_i32 : i32 to vector<8x128xi32>
    %89 = arith.cmpi eq, %87, %88 : vector<8x128xi32>
    %90 = vector.shape_cast %83 : vector<1x128xf32> to vector<1x128xf32>
    %91 = vector.broadcast %90 : vector<1x128xf32> to vector<8x128xf32>
    %c1_i32 = arith.constant 1 : i32
    %92 = vector.broadcast %c1_i32 : i32 to vector<8x128xi32>
    %93 = arith.cmpi eq, %87, %92 : vector<8x128xi32>
    %94 = vector.shape_cast %86 : vector<1x128xf32> to vector<1x128xf32>
    %95 = vector.broadcast %94 : vector<1x128xf32> to vector<8x128xf32>
    %cst_95 = arith.constant 0.000000e+00 : f32
    %96 = vector.broadcast %cst_95 : f32 to vector<8x128xf32>
    %97 = arith.select %93, %95, %96 : vector<8x128xi1>, vector<8x128xf32>
    %98 = arith.select %89, %91, %97 : vector<8x128xi1>, vector<8x128xf32>
    %c0_96 = arith.constant 0 : index
    %c0_97 = arith.constant 0 : index
    %c0_98 = arith.constant 0 : index
    %99 = vector.load %arg5[%c0_96, %c0_97, %c0_98] : memref<1x8x128xf32, #tpu.memory_space<vmem>>, vector<1x8x128xf32>
    %100 = vector.shape_cast %99 : vector<1x8x128xf32> to vector<8x128xf32>
    %101 = vector.shape_cast %98 : vector<8x128xf32> to vector<1x8x128xf32>
    tpu.vector_store %arg5[%c0_96, %c0_97, %c0_98], %101 {strides = array<i32>} : memref<1x8x128xf32, #tpu.memory_space<vmem>>, vector<1x8x128xf32>,
    return
  }
  func.func @transform_0(%arg0: i32) -> (i32, i32, i32) {
    %c0_i32 = arith.constant 0 : i32
    %c0_i32_0 = arith.constant 0 : i32
    %c0_i32_1 = arith.constant 0 : i32
    return %arg0, %c0_i32, %c0_i32_0 : i32, i32, i32
  }
  func.func @transform_1(%arg0: i32) -> (i32, i32, i32) {
    %c0_i32 = arith.constant 0 : i32
    %c0_i32_0 = arith.constant 0 : i32
    %c0_i32_1 = arith.constant 0 : i32
    %c0_i32_2 = arith.constant 0 : i32
    return %c0_i32, %c0_i32_0, %c0_i32_1 : i32, i32, i32
  }
  func.func @transform_2(%arg0: i32) -> (i32, i32) {
    %c0_i32 = arith.constant 0 : i32
    %c0_i32_0 = arith.constant 0 : i32
    %c0_i32_1 = arith.constant 0 : i32
    return %c0_i32, %c0_i32_0 : i32, i32
  }
  func.func @transform_3(%arg0: i32) -> (i32, i32, i32) {
    %c0_i32 = arith.constant 0 : i32
    %c0_i32_0 = arith.constant 0 : i32
    %c0_i32_1 = arith.constant 0 : i32
    return %arg0, %c0_i32, %c0_i32_0 : i32, i32, i32
  }
  func.func @transform_4(%arg0: i32) -> (i32, i32, i32) {
    %c0_i32 = arith.constant 0 : i32
    %c0_i32_0 = arith.constant 0 : i32
    %c0_i32_1 = arith.constant 0 : i32
    return %arg0, %c0_i32, %c0_i32_0 : i32, i32, i32
  }
}

</mosaic_0001>

<bundles_post_ra>
// kernel: tpu_custom_call.1
= control target key start
LH: loop header
LB: loop body
LE: loop exit
PB: predicated region body
PF: predicated region fallthrough
CT: control target
= control target key end

     0   :  { %10 = vsyncpa [#allocation4], 0  ;;  %s8863_s0 = inlined_call_operand.vmem [shape: bf16[2,326,32], index: 0, kind: input, shape index: {}]   ;;  %s8864_s1 = inlined_call_operand.vmem [shape: bf16[9,32,128], index: 1, kind: input, shape index: {}]   ;;  %s8865_s2 = inlined_call_operand.vmem [shape: f32[288,1], index: 2, kind: input, shape index: {}]   ;;  %s8866_s3 = inlined_call_operand.hbm [shape: bf16[2,288,128], index: 3, kind: output, shape index: {0}]   ;;  %s8867_s4 = inlined_call_operand.hbm [shape: f32[2,8,128], index: 4, kind: output, shape index: {1}]  }
   0x1   :  { %12 = vsyncpa [#allocation4 + $0x1], 0 }
   0x2   :  { %13 = vsyncpa [#allocation6], 0 }
   0x3   :  { %15 = vsyncpa [#allocation6 + $0x1], 0  ;;  %s7490_s15 = smov 0   ;;  %s7492_s16 = smov 0  }
   0x4   :  { %s7494_s17 = smov 0   ;;  %s7496_s18 = smov 0  }
   0x5 LB: > { %s7511_s19 = sadd.s32 4294967295, %s7458_s18   ;;  %s6012_s20 = sadd.s32 4294967294, %s7458_s18   ;;  %s7458_s18 = sphi %s7496_s18, %s8887_s18   ;;  %s7454_s17 = sphi %s7494_s17, %s8886_s17   ;;  %s7450_s16 = sphi %s7492_s16, %s8885_s16   ;;  %s7446_s15 = sphi %s7490_s15, %s8884_s15  }
   0x6   : > { %s7515_s21 = sadd.s32 1, %s7458_s18   ;;  %s96_s22 = sadd.s32 1, %s7454_s17 }
   0x7   : > { %s93_s23 = ssub.s32 %s7458_s18, %s7515_s21  ;;  %p106_p0 = scmp.ne.s32.totalorder %s7454_s17, %s7450_s16 }
   0x8   : > { %p94_p1 = scmp.eq.s32.totalorder %s93_s23, 0  ;;  %p107_p2 = scmp.eq.s32.totalorder %s7511_s19, 1 }
   0x9   : > { %p112_p3 = scmp.ne.s32.totalorder %s7450_s16, %s7446_s15  ;;  %p113_p4 = scmp.eq.s32.totalorder %s6012_s20, 1 }
   0xa   : > { %s7526_s24 = scalar_select %p94_p1, %s7454_s17, %s96_s22  }
   0xb   : > { %p7528_p5 = por %p107_p2, %p106_p0  ;;  %p7532_p6 = por %p113_p4, %p112_p3 }
   0xc   : > { %p6015_p7 = scmp.ge.s32.totalorder %s7458_s18, 1  ;;  %p171_p8 = scmp.lt.s32.totalorder %s7458_s18, 3 }
   0xe   : > { %p172_p9 = pnand %p6015_p7, %p171_p8 }
  0x10   : > { %175 = sbr.rel (%p172_p9) target bundleno = 599 (0x257), region = 32 }
  0x15   : > { %v7180_v0 = vld [vmem:[%s8864_s1 + $0x8] sm:$0xff]   ;;  %p202_p10 = scmp.lt.s32.totalorder %s7511_s19, 1  ;;  %v7181_v1 = vld [vmem:[%s8864_s1] sm:$0xff]   ;;  %v7187_v3 = vld [vmem:[%s8864_s1 + $0x18] sm:$0xff]   ;;  %vm422_vm0 = vcmask 261120   ;;  %vm1532_vm2 = vcmask 1046528  }
  0x16   : > { %6764 = vmatprep.subr.bf16.mxu0 %v7180_v0  ;;  %7124 = vmatprep.subr.bf16.mxu1 %v7180_v0  ;;  %v7186_v2 = vld [vmem:[%s8864_s1 + $0x28] sm:$0xff]   ;;  %v7196_v6 = vld [vmem:[%s8864_s1 + $0x20] sm:$0xff]   ;;  %v7197_v8 = vld [vmem:[%s8864_s1 + $0x10] sm:$0xff]   ;;  %vm897_vm1 = vsmask.f32 7424  ;;  %vm3236_vm4 = vcmask 1045504  }
  0x17   : > { %s203_s5 = scalar_select %p202_p10, %s7511_s19, 1  ;;  %6765 = vmatpush3.bf16.msra.mxu0 %v7180_v0  ;;  %7126 = vmatpush3.bf16.msra.mxu1 %v7180_v0  ;;  %v7207_v26 = vld [vmem:[%s8864_s1 + $0x38] sm:$0xff]   ;;  %v7213_v43 = vld [vmem:[%s8864_s1 + $0x48] sm:$0xff]   ;;  %vm2579_vm3 = vsmask.f32 6400  ;;  %vm4940_vm6 = vcmask 1044480  }
  0x18   : > { %6766 = vmatprep.subr.bf16.mxu0 %v7181_v1  ;;  %7125 = vmatprep.subr.bf16.mxu1 %v7181_v1  ;;  %vm4283_vm5 = vsmask.f32 5376  ;;  %s7130_s29 = smul.u32 2304, %s7511_s19  ;;  %s7461_s10 = smov [#allocation3]  }
  0x19   : > { %s7129_s8 = smul.u32 164, %s203_s5  ;;  %s7372_s11 = sshll.u32 %s7461_s10, 4  ;;  %s7373_s11 = int_to_ptr.vmem [resolvable:$false] %s7372_s11 }
  0x1a   : > { %s8796_s7 = scalar_lea.hbm %s8866_s3, %s7130_s29  ;;  %s7374_s12 = scalar_lea.vmem %s7373_s11, 4608 }
  0x1b   : > { %s7555_s13 = scalar_lea.vmem %s8863_s0, %s7129_s8  ;;  %6767 = vmatpush3.bf16.msra.mxu0 %v7181_v1  ;;  %7127 = vmatpush3.bf16.msra.mxu1 %v7181_v1 }
  0x1c   : > { %v7182_v4 = vld [vmem:[%s7555_s13] sm:$0xff]   ;;  %v7183_v5 = vld [vmem:[%s7555_s13 + $0x50] sm:$0xff]   ;;  %6844 = vmatprep.subr.bf16.mxu0 %v7186_v2  ;;  %6804 = vmatprep.subr.bf16.mxu1 %v7187_v3  ;;  %v7184_v7 = vld [vmem:[%s7555_s13 + $0x8] sm:$0xff]  }
  0x1d   : > { %6768 = vmatprep.mubr.msk.bf16.mxu0 %vm422_vm0, %v7182_v4  ;;  %6788 = vmatprep.mubr.msk.bf16.mxu1 %vm422_vm0, %v7183_v5  ;;  %v7185_v9 = vld [vmem:[%s7555_s13 + $0x58] sm:$0xff]   ;;  %v7188_v10 = vld [vmem:[%s7555_s13 + $0x10] sm:$0xff]   ;;  %v7189_v11 = vld [vmem:[%s7555_s13 + $0x60] sm:$0xff]  }
  0x1e   : > { %6769 = vmatmul.mubr.msk.bf16.vlgmr.msra.gmra.mxu0 %vm422_vm0, %v7184_v7  ;;  %6789 = vmatmul.mubr.msk.bf16.vlgmr.msra.gmra.mxu1 %vm422_vm0, %v7185_v9  ;;  %v7190_v12 = vld [vmem:[%s7555_s13 + $0x18] sm:$0xff]   ;;  %v7191_v13 = vld [vmem:[%s7555_s13 + $0x68] sm:$0xff]   ;;  %v7192_v14 = vld [vmem:[%s7555_s13 + $0x20] sm:$0xff]  }
  0x1f   : > { %6845 = vmatpush3.bf16.msra.mxu0 %v7186_v2  ;;  %6772 = vmatprep.mubr.msk.bf16.mxu0 %vm422_vm0, %v7188_v10  ;;  %v7193_v15 = vld [vmem:[%s7555_s13 + $0x70] sm:$0xff]   ;;  %v7194_v16 = vld [vmem:[%s7555_s13 + $0x28] sm:$0xff]   ;;  %v7195_v17 = vld [vmem:[%s7555_s13 + $0x78] sm:$0xff]  }
  0x20   : > { %6805 = vmatpush3.bf16.msra.mxu1 %v7187_v3  ;;  %6792 = vmatprep.mubr.msk.bf16.mxu1 %vm422_vm0, %v7189_v11  ;;  %v7198_v18 = vld [vmem:[%s7555_s13 + $0x30] sm:$0xff]   ;;  %v7199_v19 = vld [vmem:[%s7555_s13 + $0x80] sm:$0xff]   ;;  %v7204_v21 = vld [vmem:[%s7555_s13 + $0x8] sm:$0xff]  }
  0x21   : > { %6846 = vmatprep.subr.bf16.mxu0 %v7196_v6  ;;  %6806 = vmatprep.subr.bf16.mxu1 %v7197_v8  ;;  %v7203_v20 = vld [vmem:[%s7555_s13] sm:$0xff]   ;;  %v906_v24 = vshll.u32 %v7204_v21, 16  ;;  %v7206_v25 = vld [vmem:[%s7555_s13 + $0x10] sm:$0xff]   ;;  %v7200_v28 = vld [vmem:[%s7555_s13 + $0x38] sm:$0xff]   ;;  %v910_v34 = vshrl.u32 %v7204_v21, 16 }
  0x22   : > { %v899_v22 = vshrl.u32 %v7203_v20, 16  ;;  %v901_v23 = vshll.u32 %v7203_v20, 16  ;;  %v7208_v30 = vld [vmem:[%s7555_s13 + $0x18] sm:$0xff]   ;;  %v7201_v32 = vld [vmem:[%s7555_s13 + $0x88] sm:$0xff]   ;;  %v7202_v33 = vld [vmem:[%s7555_s13 + $0x40] sm:$0xff]   ;;  %v914_v35 = vshll.u32 %v7206_v25, 16 }
  0x23   : > { %6847 = vmatpush3.bf16.msra.mxu0 %v7196_v6  ;;  %v908_v29 = vrot.slane %v906_v24, 1  ;;  %v7210_v36 = vld [vmem:[%s7555_s13 + $0x8] sm:$0xff]   ;;  %v7209_v37 = vld [vmem:[%s7555_s13] sm:$0xfe]   ;;  %v918_v39 = vshrl.u32 %v7206_v25, 16  ;;  %v922_v40 = vshll.u32 %v7208_v30, 16 }
  0x24   : > { %6807 = vmatpush3.bf16.msra.mxu1 %v7197_v8  ;;  %v903_v27 = vrot.slane %v901_v23, 1  ;;  %v7211_v41 = vld [vmem:[%s7555_s13 + $0x20] sm:$0xff]   ;;  %v916_v42 = vrot.slane %v914_v35, 1  ;;  %v1533_v45 = vrot.slane %v7209_v37, 1  ;;  %v1534_v46 = vrot.slane %v7210_v36, 1  ;;  %6924 = vmatprep.subr.bf16.mxu0 %v7213_v43  ;;  %v7214_v49 = vld [vmem:[%s7555_s13 + $0x28] sm:$0xff]  }
  0x25   : > { %6884 = vmatprep.subr.bf16.mxu1 %v7207_v26  ;;  %v912_v44 = vor.u32 %v910_v34, %v908_v29  ;;  %v924_v48 = vrot.slane %v922_v40, 1  ;;  %v7205_v50 = vld [vmem:[%s7555_s13 + $0x48] sm:$0xff]   ;;  %v930_v51 = vshll.u32 %v7211_v41, 16  ;;  %v7212_v52 = vld [vmem:[%s7555_s13 + $0x10] sm:$0xff]   ;;  %v926_v55 = vshrl.u32 %v7208_v30, 16  ;;  %v7215_v56 = vld [vmem:[%s7555_s13 + $0x18] sm:$0xff]  }
  0x26   : > { %6773 = vmatmul.mubr.msk.bf16.gmra.mxu0 %vm422_vm0, %v7190_v12  ;;  %6793 = vmatmul.mubr.msk.bf16.gmra.mxu1 %vm422_vm0, %v7191_v13  ;;  %v904_v31 = vor.u32 %v903_v27, %v899_v22  ;;  %v920_v47 = vor.u32 %v918_v39, %v916_v42  ;;  %v1535_v54 = vsel %vm1532_vm2, %v1533_v45, %v1534_v46  ;;  %v934_v58 = vshrl.u32 %v7211_v41, 16  ;;  %v7216_v62 = vld [vmem:[%s7555_s13 + $0x30] sm:$0xff]   ;;  %v7218_v3 = vld [vmem:[%s7555_s13 + $0x38] sm:$0xff]   ;;  %v7217_v6 = vld [vmem:[%s7555_s13 + $0x20] sm:$0xff]  }
  0x27   : > { %6776 = vmatprep.mubr.msk.bf16.mxu0 %vm422_vm0, %v7192_v14  ;;  %6796 = vmatprep.mubr.msk.bf16.mxu1 %vm422_vm0, %v7193_v15  ;;  %v917_v53 = vsel %vm897_vm1, %v912_v44, %v916_v42  ;;  %v938_v59 = vshll.u32 %v7214_v49, 16  ;;  %v932_v60 = vrot.slane %v930_v51, 1  ;;  %v1536_v61 = vrot.slane %v7212_v52, 1  ;;  %v7219_v9 = vld [vmem:[%s7555_s13 + $0x28] sm:$0xff]   ;;  %v7220_v14 = vld [vmem:[%s7555_s13 + $0x40] sm:$0xff]   ;;  %v7230_v22 = vld [vmem:[%s8864_s1 + $0x30] sm:$0xff]  }
  0x28   : > { %v909_v38 = vsel %vm897_vm1, %v904_v31, %v908_v29  ;;  %v925_v57 = vsel %vm897_vm1, %v920_v47, %v924_v48  ;;  %v928_v63 = vor.u32 %v926_v55, %v924_v48  ;;  %v1538_v0 = vrot.slane %v7215_v56, 1  ;;  %v7221_v24 = vld [vmem:[%s7555_s13 + $0x30] sm:$0xff]   ;;  %v7231_v25 = vld [vmem:[%s8864_s1 + $0x40] sm:$0xff]   ;;  %v7223_v30 = vld [vmem:[%s7555_s13 + $0x38] sm:$0xff]  }
  0x29   : > { %v936_v1 = vor.u32 %v934_v58, %v932_v60  ;;  %v940_v2 = vrot.slane %v938_v59, 1  ;;  %v1537_v4 = vsel %vm1532_vm2, %v1534_v46, %v1536_v61  ;;  %v946_v5 = vshll.u32 %v7216_v62, 16  ;;  %v7224_v36 = vld [vmem:[%s7555_s13 + $0x50] sm:$0xff]   ;;  %v7226_v41 = vld [vmem:[%s7555_s13 + $0x58] sm:$0xff]   ;;  %v7225_v45 = vld [vmem:[%s7555_s13 + $0x40] sm:$0xff]  }
  0x2a   : > { %v933_v7 = vsel %vm897_vm1, %v928_v63, %v932_v60  ;;  %v942_v8 = vshrl.u32 %v7214_v49, 16  ;;  %v1539_v11 = vsel %vm1532_vm2, %v1536_v61, %v1538_v0  ;;  %v950_v12 = vshrl.u32 %v7216_v62, 16  ;;  %v7227_v49 = vld [vmem:[%s7555_s13 + $0x48] sm:$0xff]   ;;  %v7228_v52 = vld [vmem:[%s7555_s13 + $0x60] sm:$0xff]   ;;  %v7229_v61 = vld [vmem:[%s7555_s13 + $0x50] sm:$0xff]  }
  0x2b   : > { %v941_v10 = vsel %vm897_vm1, %v936_v1, %v940_v2  ;;  %v954_v13 = vshll.u32 %v7218_v3, 16  ;;  %v948_v15 = vrot.slane %v946_v5, 1  ;;  %v962_v23 = vshll.u32 %v7220_v14, 16  ;;  %v7233_v63 = vld [vmem:[%s7555_s13 + $0x58] sm:$0xff]  }
  0x2c   : > { %v958_v29 = vshrl.u32 %v7218_v3, 16  ;;  %v1544_v34 = vrot.slane %v7221_v24, 1  ;;  %v978_v44 = vshll.u32 %v7224_v36, 16  ;;  %v982_v48 = vshrl.u32 %v7224_v36, 16  ;;  %v7239_v36 = vld [vmem:[%s7555_s13 + $0x70] sm:$0xff]  }
  0x2d   : > { %v952_v20 = vor.u32 %v950_v12, %v948_v15  ;;  %v956_v21 = vrot.slane %v954_v13, 1  ;;  %v964_v35 = vrot.slane %v962_v23, 1  ;;  %v986_v51 = vshll.u32 %v7226_v41, 16  ;;  %v7236_v13 = vld [vmem:[%s7555_s13 + $0x78] sm:$0xff]  }
  0x2e   : > { %6777 = vmatmul.mubr.msk.bf16.gmra.mxu0 %vm422_vm0, %v7194_v16  ;;  %6797 = vmatmul.mubr.msk.bf16.gmra.mxu1 %vm422_vm0, %v7195_v17  ;;  %v1540_v16 = vrot.slane %v7217_v6, 1  ;;  %v944_v17 = vor.u32 %v942_v8, %v940_v2  ;;  %v1550_v56 = vrot.slane %v7227_v49, 1  ;;  %v994_v60 = vshll.u32 %v7228_v52, 16  ;;  %v7234_v8 = vld [vmem:[%s7555_s13 + $0x70] sm:$0xff]  }
  0x2f   : > { %6780 = vmatprep.mubr.msk.bf16.mxu0 %vm422_vm0, %v7198_v18  ;;  %6800 = vmatprep.mubr.msk.bf16.mxu1 %vm422_vm0, %v7199_v19  ;;  %v1542_v18 = vrot.slane %v7219_v9, 1  ;;  %v7222_v19 = vld [vmem:[%s7555_s13 + $0x48] sm:$0xff]   ;;  %v957_v31 = vsel %vm897_vm1, %v952_v20, %v956_v21  ;;  %v960_v37 = vor.u32 %v958_v29, %v956_v21  ;;  %v988_v59 = vrot.slane %v986_v51, 1 }
  0x30   : > { %v949_v27 = vsel %vm897_vm1, %v944_v17, %v948_v15  ;;  %v990_v2 = vshrl.u32 %v7226_v41, 16  ;;  %v1552_v5 = vrot.slane %v7229_v61, 1  ;;  %v998_v6 = vshrl.u32 %v7228_v52, 16  ;;  %v7235_v15 = vld [vmem:[%s7555_s13 + $0x60] sm:$0xff]   ;;  %v7237_v21 = vld [vmem:[%s7555_s13 + $0x68] sm:$0xff]   ;;  %v7241_v41 = vld [vmem:[%s7555_s13 + $0x78] sm:$0xff]  }
  0x31   : > { %v1545_v42 = vsel %vm1532_vm2, %v1542_v18, %v1544_v34  ;;  %v965_v46 = vsel %vm897_vm1, %v960_v37, %v964_v35  ;;  %v1554_v9 = vrot.slane %v7233_v63, 1  ;;  %v1010_v17 = vshll.u32 %v7234_v8, 16  ;;  %v7240_v29 = vld [vmem:[%s7555_s13 + $0x88] sm:$0xff]  }
  0x32   : > { %v1014_v23 = vshrl.u32 %v7234_v8, 16  ;;  %v1018_v24 = vshll.u32 %v7236_v13, 16  ;;  %v1034_v37 = vshll.u32 %v7240_v29, 16  ;;  %v1562_v49 = vrot.slane %v7241_v41, 1 }
  0x36   : > { %6781 = vmatmul.mubr.msk.bf16.gmra.mxu0 %vm422_vm0, %v7200_v28  ;;  %6801 = vmatmul.mubr.msk.bf16.gmra.mxu1 %vm422_vm0, %v7201_v32  ;;  %v1543_v28 = vsel %vm1532_vm2, %v1540_v16, %v1542_v18  ;;  %v966_v32 = vshrl.u32 %v7220_v14, 16 }
  0x37   : > { %6784 = vmatprep.mubr.msk.bf16.mxu0 %vm422_vm0, %v7202_v33  ;;  %6808 = vmatprep.mubr.msk.bf16.mxu1 %vm422_vm0, %v909_v38  ;;  %v970_v33 = vshll.u32 %v7222_v19, 16  ;;  %v1546_v38 = vrot.slane %v7223_v30, 1 }
  0x38   : > { %v968_v39 = vor.u32 %v966_v32, %v964_v35 }
  0x39   : > { %v972_v40 = vrot.slane %v970_v33, 1  ;;  %v1547_v47 = vsel %vm1532_vm2, %v1544_v34, %v1546_v38  ;;  %v1020_v33 = vrot.slane %v1018_v24, 1 }
  0x3e   : > { %6785 = vmatmul.mubr.msk.bf16.gmra.mxu0 %vm422_vm0, %v7205_v50  ;;  %6809 = vmatmul.mubr.msk.bf16.vlgmr.msra.gmra.mxu1 %vm422_vm0, %v917_v53  ;;  %v973_v50 = vsel %vm897_vm1, %v968_v39, %v972_v40  ;;  %v980_v53 = vrot.slane %v978_v44, 1  ;;  %v7242_v44 = vld [vmem:[%s7555_s13 + $0x90] ss:$0 sps:$4 sm:$0x11]  }
  0x3f   : > { %6848 = vmatprep.mubr.msk.bf16.mxu0 %vm422_vm0, %v1535_v54  ;;  %6812 = vmatprep.mubr.msk.bf16.mxu1 %vm422_vm0, %v925_v57  ;;  %v1548_v54 = vrot.slane %v7225_v45, 1  ;;  %v7232_v57 = vld [vmem:[%s7555_s13 + $0x68] sm:$0xff]   ;;  %v1042_v52 = vshll.u32 %v7242_v44, 16 }
  0x40   : > { %6885 = vmatpush3.bf16.msra.mxu1 %v7207_v26  ;;  %v1541_v26 = vsel %vm1532_vm2, %v1538_v0, %v1540_v16  ;;  %v984_v58 = vor.u32 %v982_v48, %v980_v53  ;;  %v1002_v3 = vshll.u32 %v7232_v57, 16  ;;  %v1553_v16 = vsel %vm1532_vm2, %v1550_v56, %v1552_v5 }
  0x41   : > { %6886 = vmatprep.subr.bf16.mxu1 %v7230_v22  ;;  %v1549_v62 = vsel %vm1532_vm2, %v1546_v38, %v1548_v54  ;;  %v1551_v1 = vsel %vm1532_vm2, %v1548_v54, %v1550_v56  ;;  %v1006_v20 = vshrl.u32 %v7232_v57, 16  ;;  %v7251_v54 = vld [vmem:[%s7555_s13 + $0x8] sm:$0xfe]   ;;  %v7252_v56 = vld [vmem:[%s7555_s13 + $0x10] sm:$0xff]   ;;  %v1044_v63 = vrot.slane %v1042_v52, 1 }
  0x42   : > { %v1004_v12 = vrot.slane %v1002_v3, 1  ;;  %v2584_v3 = vshll.u32 %v7251_v54, 16 }
  0x44   : > { %6887 = vmatpush3.bf16.msra.mxu1 %v7230_v22  ;;  %v1008_v30 = vor.u32 %v1006_v20, %v1004_v12  ;;  %v7257_v20 = vld [vmem:[%s7555_s13 + $0x20] sm:$0xff]  }
  0x46   : > { %6849 = vmatmul.mubr.msk.bf16.vlgmr.msra.gmra.mxu0 %vm422_vm0, %v1537_v4  ;;  %6813 = vmatmul.mubr.msk.bf16.gmra.mxu1 %vm422_vm0, %v933_v7  ;;  %v989_v4 = vsel %vm897_vm1, %v984_v58, %v988_v59  ;;  %v996_v7 = vrot.slane %v994_v60, 1  ;;  %v7246_v60 = vld [vmem:[%s7555_s13 + $0x10] sm:$0xff]  }
  0x47   : > { %6925 = vmatpush3.bf16.msra.mxu0 %v7213_v43  ;;  %6816 = vmatprep.mubr.msk.bf16.mxu1 %vm422_vm0, %v941_v10  ;;  %v974_v43 = vshrl.u32 %v7222_v19, 16  ;;  %v7680_v10 = vld [vmem:[%s8864_s1 + $0x58] sm:$0xff]   ;;  %v1555_v19 = vsel %vm1532_vm2, %v1552_v5, %v1554_v9 }
  0x48   : > { %6852 = vmatprep.mubr.msk.bf16.mxu0 %vm422_vm0, %v1539_v11  ;;  %6926 = vmatprep.subr.bf16.mxu0 %v7231_v25  ;;  %v992_v11 = vor.u32 %v990_v2, %v988_v59  ;;  %v1000_v14 = vor.u32 %v998_v6, %v996_v7  ;;  %v1038_v59 = vshrl.u32 %v7240_v29, 16  ;;  %v2581_v2 = vshrl.u32 %v7251_v54, 16  ;;  %v7258_v54 = vld [vmem:[%s7555_s13 + $0x38] sm:$0xff]  }
  0x49   : > { %v976_v55 = vor.u32 %v974_v43, %v972_v40  ;;  %6964 = vmatprep.subr.bf16.mxu1 %v7680_v10  ;;  %v1022_v40 = vshrl.u32 %v7236_v13, 16  ;;  %v2057_v6 = vrot.slane %v7246_v60, 1  ;;  %v7260_v60 = vld [vmem:[%s7555_s13 + $0x40] sm:$0xff]  }
  0x4a   : > { %v997_v18 = vsel %vm897_vm1, %v992_v11, %v996_v7  ;;  %v1005_v22 = vsel %vm897_vm1, %v1000_v14, %v1004_v12  ;;  %v2592_v7 = vshll.u32 %v7252_v56, 16  ;;  %v7248_v11 = vld [vmem:[%s7555_s13 + $0x18] sm:$0xff]   ;;  %v2583_v13 = vrot.slane %v2581_v2, 1 }
  0x4b   : > { %6927 = vmatpush3.bf16.msra.mxu0 %v7231_v25  ;;  %v981_v0 = vsel %vm897_vm1, %v976_v55, %v980_v53  ;;  %v1556_v25 = vrot.slane %v7235_v15, 1  ;;  %v1024_v48 = vor.u32 %v1022_v40, %v1020_v33  ;;  %v7244_v53 = vld [vmem:[%s7555_s13 + $0x88] sm:$0xff]   ;;  %v2586_v14 = vrot.slane %v2584_v3, 2  ;;  %v7256_v40 = vld [vmem:[%s7555_s13 + $0x30] sm:$0xff]  }
  0x4c   : > { %v2065_v52 = vrot.slane %v7256_v40, 1 }
  0x4d   : > { %v1557_v34 = vsel %vm1532_vm2, %v1554_v9, %v1556_v25  ;;  %v7247_v9 = vld [vmem:[%s7555_s13 + $0x90] ss:$0 sps:$4 sm:$0x11]  }
  0x4e   : > { %6853 = vmatmul.mubr.msk.bf16.gmra.mxu0 %vm422_vm0, %v1541_v26  ;;  %6817 = vmatmul.mubr.msk.bf16.gmra.mxu1 %vm422_vm0, %v949_v27  ;;  %v7238_v26 = vld [vmem:[%s7555_s13 + $0x80] sm:$0xff]   ;;  %v7696_v27 = vld [vmem:[%s8864_s1 + $0x68] sm:$0xff]  }
  0x4f   : > { %6856 = vmatprep.mubr.msk.bf16.mxu0 %vm422_vm0, %v1543_v28  ;;  %6820 = vmatprep.mubr.msk.bf16.mxu1 %vm422_vm0, %v957_v31  ;;  %v1012_v28 = vrot.slane %v1010_v17, 1  ;;  %v1558_v31 = vrot.slane %v7237_v21, 1  ;;  %v1026_v35 = vshll.u32 %v7238_v26, 16  ;;  %v1030_v43 = vshrl.u32 %v7238_v26, 16 }
  0x50   : > { %7004 = vmatprep.subr.bf16.mxu0 %v7696_v27  ;;  %v2059_v26 = vrot.slane %v7248_v11, 1  ;;  %v2069_v11 = vrot.slane %v7260_v60, 1 }
  0x51   : > { %v1016_v32 = vor.u32 %v1014_v23, %v1012_v28  ;;  %v1013_v38 = vsel %vm897_vm1, %v1008_v30, %v1012_v28  ;;  %v1559_v39 = vsel %vm1532_vm2, %v1556_v25, %v1558_v31  ;;  %v1028_v45 = vrot.slane %v1026_v35, 1 }
  0x52   : > { %v1568_v23 = vrot.slane %v7247_v9, 1  ;;  %v2587_v28 = vor.u32 %v2586_v14, %v2583_v13  ;;  %v2607_v30 = vshrl.u32 %v7257_v20, 16  ;;  %v7776_v9 = vld [vmem:[%s8864_s1 + $0x78] sm:$0xff]   ;;  %v7267_v13 = vld [vmem:[%s7555_s13 + $0x48] sm:$0xff]   ;;  %v7269_v14 = vld [vmem:[%s7555_s13 + $0x50] sm:$0xff]  }
  0x53   : > { %v1032_v51 = vor.u32 %v1030_v43, %v1028_v45  ;;  %v1029_v57 = vsel %vm897_vm1, %v1024_v48, %v1028_v45  ;;  %v7272_v45 = vld [vmem:[%s8864_s1 + $0x50] sm:$0xff]  }
  0x54   : > { %v2609_v41 = vrot.slane %v2607_v30, 1 }
  0x56   : > { %6857 = vmatmul.mubr.msk.bf16.gmra.mxu0 %vm422_vm0, %v1545_v42  ;;  %6821 = vmatmul.mubr.msk.bf16.gmra.mxu1 %vm422_vm0, %v965_v46  ;;  %v1021_v42 = vsel %vm897_vm1, %v1016_v32, %v1020_v33  ;;  %v1560_v46 = vrot.slane %v7239_v36, 1  ;;  %v2610_v32 = vshll.u32 %v7257_v20, 16  ;;  %v7253_v33 = vld [vmem:[%s7555_s13 + $0x28] sm:$0xff]  }
  0x57   : > { %6860 = vmatprep.mubr.msk.bf16.mxu0 %vm422_vm0, %v1547_v47  ;;  %6824 = vmatprep.mubr.msk.bf16.mxu1 %vm422_vm0, %v973_v50  ;;  %v1036_v47 = vrot.slane %v1034_v37, 1  ;;  %v7243_v50 = vld [vmem:[%s7555_s13 + $0x80] sm:$0xff]   ;;  %v7259_v37 = vld [vmem:[%s7555_s13 + $0x28] sm:$0xff]  }
  0x58   : > { %v1561_v55 = vsel %vm1532_vm2, %v1558_v31, %v1560_v46  ;;  %v1563_v58 = vsel %vm1532_vm2, %v1560_v46, %v1562_v49  ;;  %v2612_v44 = vrot.slane %v2610_v32, 2  ;;  %v2063_v46 = vrot.slane %v7253_v33, 1  ;;  %v7794_v32 = vld [vmem:[%s8864_s1 + $0x88] sm:$0xff]   ;;  %v7266_v33 = vld [vmem:[%s7555_s13 + $0x58] sm:$0xff]  }
  0x59   : > { %v1037_v61 = vsel %vm897_vm1, %v1032_v51, %v1036_v47  ;;  %v1040_v5 = vor.u32 %v1038_v59, %v1036_v47  ;;  %v2616_v48 = vshrl.u32 %v7259_v37, 16 }
  0x5b   : > { %v1045_v17 = vsel %vm897_vm1, %v1040_v5, %v1044_v63  ;;  %v7265_v63 = vld [vmem:[%s7555_s13 + $0x40] sm:$0xff]   ;;  %v2067_v5 = vrot.slane %v7258_v54, 1 }
  0x5e   : > { %6861 = vmatmul.mubr.msk.bf16.gmra.mxu0 %vm422_vm0, %v1549_v62  ;;  %6825 = vmatmul.mubr.msk.bf16.gmra.mxu1 %vm422_vm0, %v981_v0  ;;  %v7245_v62 = vld [vmem:[%s7555_s13 + $0x8] sm:$0xfe]   ;;  %v1564_v0 = vrot.slane %v7243_v50, 1 }
  0x5f   : > { %6864 = vmatprep.mubr.msk.bf16.mxu0 %vm422_vm0, %v1551_v1  ;;  %6828 = vmatprep.mubr.msk.bf16.mxu1 %vm422_vm0, %v989_v4  ;;  %v1566_v1 = vrot.slane %v7244_v53, 1  ;;  %v2589_v4 = vshrl.u32 %v7252_v56, 16  ;;  %v2056_v8 = vrot.slane %v7245_v62, 1  ;;  %v2613_v53 = vor.u32 %v2612_v44, %v2609_v41  ;;  %v7268_v44 = vld [vmem:[%s7555_s13 + $0x60] sm:$0xff]  }
  0x60   : > { %v1565_v12 = vsel %vm1532_vm2, %v1562_v49, %v1564_v0  ;;  %v2619_v49 = vshll.u32 %v7259_v37, 16 }
  0x61   : > { %v2591_v15 = vrot.slane %v2589_v4, 1  ;;  %v2058_v21 = vsel %vm1532_vm2, %v2056_v8, %v2057_v6  ;;  %v2646_v8 = vshll.u32 %v7265_v63, 16 }
  0x66   : > { %6865 = vmatmul.mubr.msk.bf16.gmra.mxu0 %vm422_vm0, %v1553_v16  ;;  %6829 = vmatmul.mubr.msk.bf16.gmra.mxu1 %vm422_vm0, %v997_v18  ;;  %v7254_v16 = vld [vmem:[%s7555_s13 + $0x18] sm:$0xff]   ;;  %v1567_v18 = vsel %vm1532_vm2, %v1564_v0, %v1566_v1 }
  0x67   : > { %6868 = vmatprep.mubr.msk.bf16.mxu0 %vm422_vm0, %v1555_v19  ;;  %6832 = vmatprep.mubr.msk.bf16.mxu1 %vm422_vm0, %v1005_v22  ;;  %v2594_v19 = vrot.slane %v2592_v7, 2  ;;  %v7250_v22 = vld [vmem:[%s7555_s13 + $0x20] sm:$0xff]   ;;  %v2598_v24 = vshrl.u32 %v7254_v16, 16  ;;  %v2601_v25 = vshll.u32 %v7254_v16, 16  ;;  %v2643_v7 = vshrl.u32 %v7265_v63, 16 }
  0x68   : > { %v2061_v31 = vrot.slane %v7250_v22, 1  ;;  %v2070_v22 = vsel %vm1532_vm2, %v2067_v5, %v2069_v11 }
  0x69   : > { %v2595_v29 = vor.u32 %v2594_v19, %v2591_v15  ;;  %v2600_v35 = vrot.slane %v2598_v24, 1  ;;  %v2603_v36 = vrot.slane %v2601_v25, 2  ;;  %v2645_v20 = vrot.slane %v2643_v7, 1 }
  0x6a   : > { %v2062_v43 = vsel %vm1532_vm2, %v2059_v26, %v2061_v31  ;;  %v2064_v59 = vsel %vm1532_vm2, %v2061_v31, %v2063_v46  ;;  %v2655_v24 = vshll.u32 %v7267_v13, 16  ;;  %v2661_v25 = vshrl.u32 %v7269_v14, 16 }
  0x6b   : > { %v2604_v47 = vor.u32 %v2603_v36, %v2600_v35  ;;  %v2664_v31 = vshll.u32 %v7269_v14, 16  ;;  %v7271_v35 = vld [vmem:[%s7555_s13 + $0x58] sm:$0xff]  }
  0x6c   : > { %v2657_v37 = vrot.slane %v2655_v24, 2 }
  0x6d   : > { %v2605_v56 = vsel %vm2579_vm3, %v2595_v29, %v2604_v47  ;;  %v2614_v0 = vsel %vm2579_vm3, %v2604_v47, %v2613_v53  ;;  %v2666_v41 = vrot.slane %v2664_v31, 2  ;;  %v7280_v31 = vld [vmem:[%s7555_s13 + $0x88] sm:$0xff]  }
  0x6e   : > { %6869 = vmatmul.mubr.msk.bf16.gmra.mxu0 %vm422_vm0, %v1557_v34  ;;  %6833 = vmatmul.mubr.msk.bf16.gmra.mxu1 %vm422_vm0, %v1013_v38  ;;  %v1569_v34 = vsel %vm1532_vm2, %v1566_v1, %v1568_v23  ;;  %v2060_v38 = vsel %vm1532_vm2, %v2057_v6, %v2059_v26  ;;  %v7273_v1 = vld [vmem:[%s8864_s1 + $0x60] sm:$0xff]   ;;  %v2652_v23 = vshrl.u32 %v7267_v13, 16 }
  0x6f   : > { %6872 = vmatprep.mubr.msk.bf16.mxu0 %vm422_vm0, %v1559_v39  ;;  %6836 = vmatprep.mubr.msk.bf16.mxu1 %vm422_vm0, %v1021_v42  ;;  %v2596_v39 = vsel %vm2579_vm3, %v2587_v28, %v2595_v29  ;;  %v7261_v42 = vld [vmem:[%s7555_s13 + $0x30] sm:$0xff]  }
  0x70   : > { %v2625_v50 = vshrl.u32 %v7261_v42, 16  ;;  %v2628_v51 = vshll.u32 %v7261_v42, 16  ;;  %v7275_v42 = vld [vmem:[%s7555_s13 + $0x60] sm:$0xff]  }
  0x72   : > { %v2630_v62 = vrot.slane %v2628_v51, 2  ;;  %v2682_v51 = vshll.u32 %v7275_v42, 16 }
  0x76   : > { %6873 = vmatmul.mubr.msk.bf16.gmra.mxu0 %vm422_vm0, %v1561_v55  ;;  %6837 = vmatmul.mubr.msk.bf16.gmra.mxu1 %vm422_vm0, %v1029_v57  ;;  %v7263_v55 = vld [vmem:[%s7555_s13 + $0x38] sm:$0xff]   ;;  %v2618_v57 = vrot.slane %v2616_v48, 1  ;;  %v2673_v48 = vshll.u32 %v7271_v35, 16 }
  0x77   : > { %6876 = vmatprep.mubr.msk.bf16.mxu0 %vm422_vm0, %v1563_v58  ;;  %6840 = vmatprep.mubr.msk.bf16.mxu1 %vm422_vm0, %v1037_v61  ;;  %v2621_v58 = vrot.slane %v2619_v49, 2  ;;  %v2627_v61 = vrot.slane %v2625_v50, 1  ;;  %v2634_v3 = vshrl.u32 %v7263_v55, 16  ;;  %v2637_v4 = vshll.u32 %v7263_v55, 16  ;;  %v7277_v55 = vld [vmem:[%s7555_s13 + $0x68] sm:$0xff]  }
  0x78   : > { %v2679_v50 = vshrl.u32 %v7275_v42, 16 }
  0x79   : > { %v2622_v2 = vor.u32 %v2621_v58, %v2618_v57  ;;  %v2631_v6 = vor.u32 %v2630_v62, %v2627_v61  ;;  %v2636_v16 = vrot.slane %v2634_v3, 1  ;;  %v2675_v57 = vrot.slane %v2673_v48, 2  ;;  %v7279_v58 = vld [vmem:[%s7555_s13 + $0x70] sm:$0xff]  }
  0x7a   : > { %v2681_v61 = vrot.slane %v2679_v50, 1  ;;  %v2684_v62 = vrot.slane %v2682_v51, 2  ;;  %v2697_v3 = vshrl.u32 %v7279_v58, 16 }
  0x7b   : > { %v2623_v15 = vsel %vm2579_vm3, %v2613_v53, %v2622_v2  ;;  %v2632_v19 = vsel %vm2579_vm3, %v2622_v2, %v2631_v6  ;;  %v7270_v53 = vld [vmem:[%s7555_s13 + $0x68] sm:$0xff]   ;;  %v2691_v2 = vshll.u32 %v7277_v55, 16 }
  0x7c   : > { %v2699_v14 = vrot.slane %v2697_v3, 1 }
  0x7d   : > { %v2693_v13 = vrot.slane %v2691_v2, 2 }
  0x7e   : > { %6877 = vmatmul.mubr.msk.bf16.gmra.mxu0 %vm422_vm0, %v1565_v12  ;;  %6841 = vmatmul.mubr.msk.bf16.gmra.mxu1 %vm422_vm0, %v1045_v17  ;;  %v7264_v12 = vld [vmem:[%s7555_s13 + $0x50] sm:$0xff]   ;;  %v2639_v17 = vrot.slane %v2637_v4, 2  ;;  %v2079_v4 = vrot.slane %v7270_v53, 1 }
  0x7f   : > { %6880 = vmatprep.mubr.msk.bf16.mxu0 %vm422_vm0, %v1567_v18  ;;  %6888 = vmatprep.mubr.msk.bf16.mxu1 %vm422_vm0, %v2058_v21  ;;  %v2068_v18 = vsel %vm1532_vm2, %v2065_v52, %v2067_v5  ;;  %v2648_v21 = vrot.slane %v2646_v8, 2  ;;  %v2073_v29 = vrot.slane %v7264_v12, 1  ;;  %v2685_v5 = vor.u32 %v2684_v62, %v2681_v61  ;;  %v7276_v8 = vld [vmem:[%s7555_s13 + $0x78] sm:$0xff]   ;;  %v7287_v61 = vld [vmem:[%s7555_s13 + $0x8] sm:$0xfc]  }
  0x80   : > { %v2640_v26 = vor.u32 %v2639_v17, %v2636_v16 }
  0x81   : > { %v2649_v30 = vor.u32 %v2648_v21, %v2645_v20  ;;  %v7278_v20 = vld [vmem:[%s7555_s13 + $0x80] sm:$0xff]  }
  0x82   : > { %v2641_v36 = vsel %vm2579_vm3, %v2631_v6, %v2640_v26  ;;  %v2700_v6 = vshll.u32 %v7279_v58, 16 }
  0x83   : > { %v2650_v40 = vsel %vm2579_vm3, %v2640_v26, %v2649_v30 }
  0x84   : > { %v2702_v17 = vrot.slane %v2700_v6, 2  ;;  %v7290_v6 = vld [vmem:[%s7555_s13 + $0x18] sm:$0xff]  }
  0x86   : > { %6881 = vmatmul.mubr.msk.bf16.gmra.mxu0 %vm422_vm0, %v1569_v34  ;;  %6889 = vmatmul.mubr.msk.bf16.vlgmr.msra.gmra.mxu1 %vm422_vm0, %v2060_v38  ;;  %v2654_v34 = vrot.slane %v2652_v23, 1  ;;  %v2663_v38 = vrot.slane %v2661_v25, 1  ;;  %v2083_v23 = vrot.slane %v7276_v8, 1  ;;  %v2703_v26 = vor.u32 %v2702_v17, %v2699_v14  ;;  %v7292_v17 = vld [vmem:[%s7555_s13 + $0x20] sm:$0xff]  }
  0x87   : > { %6928 = vmatprep.mubr.msk.bf16.mxu0 %vm422_vm0, %v2596_v39  ;;  %6892 = vmatprep.mubr.msk.bf16.mxu1 %vm422_vm0, %v2062_v43 }
  0x88   : > { %6965 = vmatpush3.bf16.msra.mxu1 %v7680_v10  ;;  %v2066_v10 = vsel %vm1532_vm2, %v2063_v46, %v2065_v52  ;;  %v2075_v46 = vrot.slane %v7266_v33, 1  ;;  %v2658_v47 = vor.u32 %v2657_v37, %v2654_v34  ;;  %v2667_v49 = vor.u32 %v2666_v41, %v2663_v38  ;;  %v7285_v34 = vld [vmem:[%s7555_s13 + $0x88] sm:$0xff]   ;;  %v7286_v37 = vld [vmem:[%s7555_s13 + $0x90] sm:$0xff]  }
  0x89   : > { %6966 = vmatprep.subr.bf16.mxu1 %v7272_v45  ;;  %v2077_v52 = vrot.slane %v7268_v44, 1  ;;  %v2724_v44 = vshrl.u32 %v7285_v34, 16  ;;  %v2736_v50 = vshll.u32 %v7286_v37, 16 }
  0x8a   : > { %v2668_v60 = vsel %vm2579_vm3, %v2658_v47, %v2667_v49 }
  0x8b   : > { %v2078_v63 = vsel %vm1532_vm2, %v2075_v46, %v2077_v52  ;;  %v2726_v53 = vrot.slane %v2724_v44, 1  ;;  %v7301_v44 = vld [vmem:[%s7555_s13 + $0x30] sm:$0xff]  }
  0x8c   : > { %6967 = vmatpush3.bf16.msra.mxu1 %v7272_v45  ;;  %v2670_v45 = vshrl.u32 %v7271_v35, 16 }
  0x8d   : > { %7044 = vmatprep.subr.bf16.mxu1 %v7776_v9 }
  0x8e   : > { %6929 = vmatmul.mubr.msk.bf16.vlgmr.msra.gmra.mxu0 %vm422_vm0, %v2605_v56  ;;  %6893 = vmatmul.mubr.msk.bf16.gmra.mxu1 %vm422_vm0, %v2064_v59  ;;  %v2672_v54 = vrot.slane %v2670_v45, 1  ;;  %v2659_v56 = vsel %vm2579_vm3, %v2649_v30, %v2658_v47  ;;  %v2076_v59 = vsel %vm1532_vm2, %v2073_v29, %v2075_v46  ;;  %v2085_v30 = vrot.slane %v7278_v20, 1 }
  0x8f   : > { %7005 = vmatpush3.bf16.msra.mxu0 %v7696_v27  ;;  %6896 = vmatprep.mubr.msk.bf16.mxu1 %vm422_vm0, %v2066_v10  ;;  %v7262_v27 = vld [vmem:[%s7555_s13 + $0x48] sm:$0xff]   ;;  %v7274_v10 = vld [vmem:[%s7555_s13 + $0x70] sm:$0xff]   ;;  %v2087_v45 = vrot.slane %v7280_v31, 1  ;;  %v2727_v47 = vshll.u32 %v7285_v34, 16 }
  0x90   : > { %6932 = vmatprep.mubr.msk.bf16.mxu0 %vm422_vm0, %v2614_v0  ;;  %7006 = vmatprep.subr.bf16.mxu0 %v7273_v1  ;;  %v2071_v28 = vrot.slane %v7262_v27, 1  ;;  %v2688_v0 = vshrl.u32 %v7277_v55, 16  ;;  %v2081_v7 = vrot.slane %v7274_v10, 1  ;;  %v7281_v27 = vld [vmem:[%s7555_s13 + $0x78] sm:$0xff]   ;;  %v2086_v42 = vsel %vm1532_vm2, %v2083_v23, %v2085_v30  ;;  %v7299_v34 = vld [vmem:[%s7555_s13 + $0x28] sm:$0xff]  }
  0x91   : > { %v2706_v21 = vshrl.u32 %v7281_v27, 16  ;;  %v2709_v25 = vshll.u32 %v7281_v27, 16  ;;  %v2729_v55 = vrot.slane %v2727_v47, 2 }
  0x92   : > { %v2072_v39 = vsel %vm1532_vm2, %v2069_v11, %v2071_v28  ;;  %v2074_v43 = vsel %vm1532_vm2, %v2071_v28, %v2073_v29  ;;  %v2690_v11 = vrot.slane %v2688_v0, 1  ;;  %v2084_v38 = vsel %vm1532_vm2, %v2081_v7, %v2083_v23  ;;  %v5331_v23 = vld [vmem:[%s8865_s2 + $0x10] sm:$0xff] }
  0x93   : > { %7007 = vmatpush3.bf16.msra.mxu0 %v7273_v1  ;;  %v2676_v1 = vor.u32 %v2675_v57, %v2672_v54  ;;  %v2708_v33 = vrot.slane %v2706_v21, 1  ;;  %v2088_v57 = vsel %vm1532_vm2, %v2085_v30, %v2087_v45  ;;  %v2730_v0 = vor.u32 %v2729_v55, %v2726_v53  ;;  %v5332_v30 = vld [vmem:[%s8865_s2 + $0x18] sm:$0xff]  ;;  %v5337_v53 = vld [vmem:[%s8865_s2 + $0x40] sm:$0xff] }
  0x94   : > { %7084 = vmatprep.subr.bf16.mxu0 %v7794_v32  ;;  %v2694_v24 = vor.u32 %v2693_v13, %v2690_v11  ;;  %v3767_v55 = vrot.slane %v7301_v44, 2  ;;  %v7313_v44 = vld [vmem:[%s7555_s13 + $0x60] sm:$0xff]  }
  0x95   : > { %v2677_v12 = vsel %vm2579_vm3, %v2667_v49, %v2676_v1  ;;  %v2686_v16 = vsel %vm2579_vm3, %v2676_v1, %v2685_v5  ;;  %v2733_v49 = vshrl.u32 %v7286_v37, 16  ;;  %v5333_v37 = vld [vmem:[%s8865_s2 + $0x20] sm:$0xff] }
  0x96   : > { %6933 = vmatmul.mubr.msk.bf16.gmra.mxu0 %vm422_vm0, %v2623_v15  ;;  %6897 = vmatmul.mubr.msk.bf16.gmra.mxu1 %vm422_vm0, %v2068_v18  ;;  %v2080_v15 = vsel %vm1532_vm2, %v2077_v52, %v2079_v4  ;;  %v7283_v18 = vld [vmem:[%s7555_s13 + $0x80] sm:$0xff]   ;;  %v2695_v35 = vsel %vm2579_vm3, %v2685_v5, %v2694_v24  ;;  %v7284_v52 = vld [vmem:[%s7555_s13 + $0x98] ss:$0 sps:$4 sm:$0x11]  }
  0x97   : > { %6936 = vmatprep.mubr.msk.bf16.mxu0 %vm422_vm0, %v2632_v19  ;;  %6900 = vmatprep.mubr.msk.bf16.mxu1 %vm422_vm0, %v2070_v22  ;;  %v2082_v19 = vsel %vm1532_vm2, %v2079_v4, %v2081_v7  ;;  %v7460_v22 = vmov 0   ;;  %v2715_v28 = vshrl.u32 %v7283_v18, 16  ;;  %v2718_v29 = vshll.u32 %v7283_v18, 16  ;;  %v7294_v7 = vld [vmem:[%s7555_s13 + $0x18] sm:$0xff]  }
  0x98   : > { %7178 = vset.pattern.permute.xlu0 %v7460_v22  ;;  %7179 = vset.pattern.permute.xlu1 %v7460_v22  ;;  %v2091_v10 = vrot.slane %v7284_v52, 1  ;;  %v3237_v4 = vrot.slane %v7287_v61, 2  ;;  %v3761_v21 = vrot.slane %v7294_v7, 2  ;;  %v3242_v22 = vrot.slane %v7292_v17, 2  ;;  %v7315_v52 = vld [vmem:[%s8864_s1 + $0x80] sm:$0xff]   ;;  %v5340_v61 = vld [vmem:[%s8865_s2 + $0x58] sm:$0xff] }
  0x99   : > { %v2720_v41 = vrot.slane %v2718_v29, 2  ;;  %5377 = vperm.xlu1 %7179, %v5331_v23   ;;  %v5342_v7 = vld [vmem:[%s8865_s2 + $0x68] sm:$0xff]  ;;  %v5343_v17 = vld [vmem:[%s8865_s2 + $0x70] sm:$0xff] }
  0x9d   : > { %5382 = vperm.xlu1 %7179, %v5332_v30   ;;  %v5345_v30 = vld [vmem:[%s8865_s2 + $0x80] sm:$0xff] }
  0x9e   : > { %6937 = vmatmul.mubr.msk.bf16.gmra.mxu0 %vm422_vm0, %v2641_v36  ;;  %6901 = vmatmul.mubr.msk.bf16.gmra.mxu1 %vm422_vm0, %v2072_v39  ;;  %v2711_v36 = vrot.slane %v2709_v25, 2  ;;  %v2704_v39 = vsel %vm2579_vm3, %v2694_v24, %v2703_v26  ;;  %v7295_v24 = vld [vmem:[%s7555_s13 + $0x28] sm:$0xff]   ;;  %v7296_v25 = vld [vmem:[%s7555_s13 + $0x20] sm:$0xff]  }
  0x9f   : > { %6940 = vmatprep.mubr.msk.bf16.mxu0 %vm422_vm0, %v2650_v40  ;;  %6904 = vmatprep.mubr.msk.bf16.mxu1 %vm422_vm0, %v2074_v43  ;;  %v2717_v40 = vrot.slane %v2715_v28, 1  ;;  %v7282_v43 = vld [vmem:[%s7555_s13 + $0x90] sm:$0xff]   ;;  %v5330_v28 = vld [vmem:[%s8865_s2 + $0x8] sm:$0xff] }
  0xa0   : > { %v2712_v46 = vor.u32 %v2711_v36, %v2708_v33  ;;  %v2089_v51 = vrot.slane %v7282_v43, 1  ;;  %v7314_v36 = vld [vmem:[%s8864_s1 + $0x70] sm:$0xff]   ;;  %v7300_v43 = vld [vmem:[%s7555_s13 + $0x38] sm:$0xff]  }
  0xa1   : > { %v2721_v48 = vor.u32 %v2720_v41, %v2717_v40  ;;  %v3244_v40 = vrot.slane %v7295_v24, 2  ;;  %v7311_v24 = vld [vmem:[%s7555_s13 + $0x58] sm:$0xff]  }
  0xa2   : > { %v2713_v54 = vsel %vm2579_vm3, %v2703_v26, %v2712_v46  ;;  %v2090_v62 = vsel %vm1532_vm2, %v2087_v45, %v2089_v51  ;;  %v2092_v13 = vsel %vm1532_vm2, %v2089_v51, %v2091_v10  ;;  %v7298_v26 = vld [vmem:[%s7555_s13 + $0x30] sm:$0xff]   ;;  %v7906_v45 = vld [vmem:[%s7555_s13 + $0x38] sm:$0xff]   ;;  %v7304_v10 = vld [vmem:[%s7555_s13 + $0x48] sm:$0xff]  }
  0xa3   : > { %v2722_v58 = vsel %vm2579_vm3, %v2712_v46, %v2721_v48  ;;  %v2731_v8 = vsel %vm2579_vm3, %v2721_v48, %v2730_v0  ;;  %v3246_v41 = vrot.slane %v7298_v26, 2  ;;  %v5335_v46 = vld [vmem:[%s8865_s2 + $0x30] sm:$0xff]  ;;  %v3245_v48 = vsel %vm3236_vm4, %v3242_v22, %v3244_v40 }
  0xa6   : > { %6941 = vmatmul.mubr.msk.bf16.gmra.mxu0 %vm422_vm0, %v2659_v56  ;;  %6905 = vmatmul.mubr.msk.bf16.gmra.mxu1 %vm422_vm0, %v2076_v59  ;;  %v7289_v56 = vld [vmem:[%s7555_s13 + $0x98] ss:$0 sps:$4 sm:$0x33]   ;;  %v2735_v59 = vrot.slane %v2733_v49, 1  ;;  %v7302_v49 = vld [vmem:[%s7555_s13 + $0x40] sm:$0xff]  }
  0xa7   : > { %6944 = vmatprep.mubr.msk.bf16.mxu0 %vm422_vm0, %v2668_v60  ;;  %6908 = vmatprep.mubr.msk.bf16.mxu1 %vm422_vm0, %v2078_v63  ;;  %v2738_v60 = vrot.slane %v2736_v50, 2  ;;  %v7288_v63 = vld [vmem:[%s7555_s13 + $0x10] sm:$0xff]   ;;  %v2742_v1 = vshrl.u32 %v7289_v56, 16  ;;  %v2745_v2 = vshll.u32 %v7289_v56, 16  ;;  %v3247_v50 = vsel %vm3236_vm4, %v3244_v40, %v3246_v41 }
  0xa8   : > { %v3238_v5 = vrot.slane %v7288_v63, 2  ;;  %v3769_v56 = vrot.slane %v7906_v45, 2  ;;  %v5347_v40 = vld [vmem:[%s8865_s2 + $0x90] sm:$0xff]  ;;  %v5348_v45 = vld [vmem:[%s8865_s2 + $0x98] sm:$0xff] }
  0xa9   : > { %v2739_v3 = vor.u32 %v2738_v60, %v2735_v59  ;;  %v2744_v11 = vrot.slane %v2742_v1, 1  ;;  %v2747_v27 = vrot.slane %v2745_v2, 2  ;;  %v7305_v60 = vld [vmem:[%s7555_s13 + $0x40] sm:$0xff]   ;;  %v7306_v2 = vld [vmem:[%s7555_s13 + $0x50] sm:$0xff]  }
  0xaa   : > { %v3770_v63 = vsel %vm3236_vm4, %v3767_v55, %v3769_v56 }
  0xab   : > { %v2740_v14 = vsel %vm2579_vm3, %v2730_v0, %v2739_v3  ;;  %v2748_v18 = vor.u32 %v2747_v27, %v2744_v11  ;;  %v7307_v0 = vld [vmem:[%s7555_s13 + $0x48] sm:$0xff]   ;;  %v3252_v11 = vrot.slane %v7304_v10, 2 }
  0xac   : > { %v3773_v27 = vrot.slane %v7307_v0, 2 }
  0xad   : > { %v2749_v29 = vsel %vm2579_vm3, %v2739_v3, %v2748_v18 }
  0xae   : > { %6945 = vmatmul.mubr.msk.bf16.gmra.mxu0 %vm422_vm0, %v2677_v12  ;;  %6909 = vmatmul.mubr.msk.bf16.gmra.mxu1 %vm422_vm0, %v2080_v15  ;;  %v7293_v12 = vld [vmem:[%s7555_s13 + $0x10] sm:$0xfc]   ;;  %v5329_v15 = vld [vmem:[%s8865_s2] sm:$0xff] }
  0xaf   : > { %6948 = vmatprep.mubr.msk.bf16.mxu0 %vm422_vm0, %v2686_v16  ;;  %6912 = vmatprep.mubr.msk.bf16.mxu1 %vm422_vm0, %v2082_v19  ;;  %v3239_v16 = vsel %vm3236_vm4, %v3237_v4, %v3238_v5  ;;  %v3240_v19 = vrot.slane %v7290_v6, 2  ;;  %v3760_v20 = vrot.slane %v7293_v12, 2  ;;  %v5341_v4 = vld [vmem:[%s8865_s2 + $0x60] sm:$0xff]  ;;  %v3771_v6 = vrot.slane %v7305_v60, 2 }
  0xb0   : > { %5367 = vperm.xlu0 %7178, %v5329_v15   ;;  %v7308_v15 = vld [vmem:[%s7555_s13 + $0x58] sm:$0xff]  }
  0xb1   : > { %v3241_v31 = vsel %vm3236_vm4, %v3238_v5, %v3240_v19  ;;  %v3762_v33 = vsel %vm3236_vm4, %v3760_v20, %v3761_v21  ;;  %v5344_v20 = vld [vmem:[%s8865_s2 + $0x78] sm:$0xff]  ;;  %v3774_v23 = vsel %vm3236_vm4, %v3771_v6, %v3773_v27 }
  0xb4   : > { %5372 = vperm.xlu0 %7178, %v5330_v28   ;;  %v7310_v28 = vld [vmem:[%s7555_s13 + $0x60] sm:$0xff]  }
  0xb6   : > { %6949 = vmatmul.mubr.msk.bf16.gmra.mxu0 %vm422_vm0, %v2695_v35  ;;  %6913 = vmatmul.mubr.msk.bf16.gmra.mxu1 %vm422_vm0, %v2084_v38  ;;  %v3243_v35 = vsel %vm3236_vm4, %v3240_v19, %v3242_v22  ;;  %v3763_v38 = vrot.slane %v7296_v25, 2  ;;  %v3772_v19 = vsel %vm3236_vm4, %v3769_v56, %v3771_v6  ;;  %v3779_v56 = vrot.slane %v7313_v44, 2  ;;  %v5356_v44 = vld [vmem:[%s8865_s2 + $0xd8] sm:$0xff] }
  0xb7   : > { %6952 = vmatprep.mubr.msk.bf16.mxu0 %vm422_vm0, %v2704_v39  ;;  %6916 = vmatprep.mubr.msk.bf16.mxu1 %vm422_vm0, %v2086_v42  ;;  %v5334_v39 = vld [vmem:[%s8865_s2 + $0x28] sm:$0xff]  ;;  %v3765_v42 = vrot.slane %v7299_v34, 2 }
  0xb8   : > { %5387 = vperm.xlu0 %7178, %v5333_v37   ;;  %5392 = vperm.xlu1 %7179, %v5334_v39   ;;  %v3764_v47 = vsel %vm3236_vm4, %v3761_v21, %v3763_v38  ;;  %v5346_v34 = vld [vmem:[%s8865_s2 + $0x88] sm:$0xff]  ;;  %v3777_v37 = vrot.slane %v7311_v24, 2  ;;  %v3258_v39 = vrot.slane %v7310_v28, 2 }
  0xb9   : > { %v3766_v51 = vsel %vm3236_vm4, %v3763_v38, %v3765_v42  ;;  %v3768_v59 = vsel %vm3236_vm4, %v3765_v42, %v3767_v55 }
  0xba   : > { %v3780_v0 = vsel %vm3236_vm4, %v3777_v37, %v3779_v56 }
  0xbc   : > { %5397 = vperm.xlu0 %7178, %v5335_v46  }
  0xbe   : > { %6953 = vmatmul.mubr.msk.bf16.gmra.mxu0 %vm422_vm0, %v2713_v54  ;;  %6917 = vmatmul.mubr.msk.bf16.gmra.mxu1 %vm422_vm0, %v2088_v57  ;;  %v3248_v54 = vrot.slane %v7300_v43, 2  ;;  %v5338_v57 = vld [vmem:[%s8865_s2 + $0x48] sm:$0xff] }
  0xbf   : > { %6956 = vmatprep.mubr.msk.bf16.mxu0 %vm422_vm0, %v2722_v58  ;;  %6920 = vmatprep.mubr.msk.bf16.mxu1 %vm422_vm0, %v2090_v62  ;;  %v3250_v58 = vrot.slane %v7302_v49, 2  ;;  %v7317_v49 = vld [vmem:[%s7555_s13 + $0x68] sm:$0xff]  }
  0xc0   : > { %5407 = vperm.xlu0 %7178, %v5337_v53   ;;  %v3249_v62 = vsel %vm3236_vm4, %v3246_v41, %v3248_v54 }
  0xc1   : > { %v3251_v1 = vsel %vm3236_vm4, %v3248_v54, %v3250_v58  ;;  %v3253_v22 = vsel %vm3236_vm4, %v3250_v58, %v3252_v11  ;;  %v5349_v54 = vld [vmem:[%s8865_s2 + $0xa0] sm:$0xff] }
  0xc6   : > { %6957 = vmatmul.mubr.msk.bf16.gmra.mxu0 %vm422_vm0, %v2731_v8  ;;  %6921 = vmatmul.mubr.msk.bf16.gmra.mxu1 %vm422_vm0, %v2092_v13  ;;  %v3254_v13 = vrot.slane %v7306_v2, 2  ;;  %v5352_v2 = vld [vmem:[%s8865_s2 + $0xb8] sm:$0xff] }
  0xc7   : > { %6960 = vmatprep.mubr.msk.bf16.mxu0 %vm422_vm0, %v2740_v14  ;;  %6968 = vmatprep.mubr.msk.bf16.mxu1 %vm422_vm0, %v3239_v16  ;;  %v7309_v16 = vld [vmem:[%s7555_s13 + $0x50] sm:$0xff]  }
  0xc8   : > { %v3255_v26 = vsel %vm3236_vm4, %v3252_v11, %v3254_v13  ;;  %v7318_v11 = vld [vmem:[%s7555_s13 + $0x78] sm:$0xff]  }
  0xce   : > { %6961 = vmatmul.mubr.msk.bf16.gmra.mxu0 %vm422_vm0, %v2749_v29  ;;  %6969 = vmatmul.mubr.msk.bf16.vlgmr.msra.gmra.mxu1 %vm422_vm0, %v3241_v31 }
  0xcf   : > { %7008 = vmatprep.mubr.msk.bf16.mxu0 %vm422_vm0, %v3762_v33  ;;  %6972 = vmatprep.mubr.msk.bf16.mxu1 %vm422_vm0, %v3243_v35  ;;  %v3775_v33 = vrot.slane %v7309_v16, 2  ;;  %v8070_v16 = vld [vmem:[%s7555_s13 + $0x80] sm:$0xff]  }
  0xd0   : > { %7045 = vmatpush3.bf16.msra.mxu1 %v7776_v9  ;;  %v5336_v9 = vld [vmem:[%s8865_s2 + $0x38] sm:$0xff] }
  0xd1   : > { %7046 = vmatprep.subr.bf16.mxu1 %v7314_v36  ;;  %5402 = vperm.xlu1 %7179, %v5336_v9   ;;  %v3776_v43 = vsel %vm3236_vm4, %v3773_v27, %v3775_v33  ;;  %v3778_v9 = vsel %vm3236_vm4, %v3775_v33, %v3777_v37  ;;  %v8064_v27 = vld [vmem:[%s7555_s13 + $0x78] sm:$0xff]   ;;  %v3266_v33 = vrot.slane %v8070_v16, 2 }
  0xd2   : > { %v3785_v28 = vrot.slane %v8064_v27, 2 }
  0xd4   : > { %7047 = vmatpush3.bf16.msra.mxu1 %v7314_v36  ;;  %v3256_v36 = vrot.slane %v7308_v15, 2 }
  0xd5   : > { %5412 = vperm.xlu1 %7179, %v5338_v57   ;;  %v5350_v57 = vld [vmem:[%s8865_s2 + $0xa8] sm:$0xff] }
  0xd6   : > { %7009 = vmatmul.mubr.msk.bf16.vlgmr.msra.gmra.mxu0 %vm422_vm0, %v3764_v47  ;;  %6973 = vmatmul.mubr.msk.bf16.gmra.mxu1 %vm422_vm0, %v3245_v48  ;;  %v3257_v47 = vsel %vm3236_vm4, %v3254_v13, %v3256_v36  ;;  %v7312_v48 = vld [vmem:[%s7555_s13 + $0x68] sm:$0xff]  }
  0xd7   : > { %7085 = vmatpush3.bf16.msra.mxu0 %v7794_v32  ;;  %6976 = vmatprep.mubr.msk.bf16.mxu1 %vm422_vm0, %v3247_v50  ;;  %v5339_v32 = vld [vmem:[%s8865_s2 + $0x50] sm:$0xff] }
  0xd8   : > { %7012 = vmatprep.mubr.msk.bf16.mxu0 %vm422_vm0, %v3766_v51  ;;  %7086 = vmatprep.subr.bf16.mxu0 %v7315_v52  ;;  %v3259_v51 = vsel %vm3236_vm4, %v3256_v36, %v3258_v39  ;;  %v5355_v36 = vld [vmem:[%s8865_s2 + $0xd0] sm:$0xff] }
  0xd9   : > { %5417 = vperm.xlu0 %7178, %v5339_v32   ;;  %5422 = vperm.xlu1 %7179, %v5340_v61   ;;  %v3260_v32 = vrot.slane %v7312_v48, 2  ;;  %v8110_v48 = vld [vmem:[%s7555_s13 + $0x88] sm:$0xff]  }
  0xdb   : > { %7087 = vmatpush3.bf16.msra.mxu0 %v7315_v52  ;;  %v7316_v52 = vld [vmem:[%s7555_s13 + $0x70] sm:$0xff]   ;;  %v3261_v6 = vsel %vm3236_vm4, %v3258_v39, %v3260_v32 }
  0xdc   : > { %v3262_v61 = vrot.slane %v7316_v52, 2 }
  0xdd   : > { %5427 = vperm.xlu0 %7178, %v5341_v4   ;;  %5432 = vperm.xlu1 %7179, %v5342_v7  }
  0xde   : > { %v7948_v3 = vpop.f32.mrf.mxu0  ;;  %7013 = vmatmul.mubr.msk.bf16.gmra.mxu0 %vm422_vm0, %v3768_v59  ;;  %v7954_v5 = vpop.f32.mrf.mxu1  ;;  %6977 = vmatmul.mubr.msk.bf16.gmra.mxu1 %vm422_vm0, %v3249_v62  ;;  %v3781_v59 = vrot.slane %v7317_v49, 2  ;;  %v3263_v15 = vsel %vm3236_vm4, %v3260_v32, %v3262_v61  ;;  %v7330_v49 = vld [vmem:[%s7555_s13 + $0x18] sm:$0xff]   ;;  %v5357_v32 = vld [vmem:[%s8865_s2 + $0xe0] sm:$0xff] }
  0xdf   : > { %7016 = vmatprep.mubr.msk.bf16.mxu0 %vm422_vm0, %v3770_v63  ;;  %6980 = vmatprep.mubr.msk.bf16.mxu1 %vm422_vm0, %v3251_v1  ;;  %v5351_v63 = vld [vmem:[%s8865_s2 + $0xb0] sm:$0xff] }
  0xe0   : > { %v7961_v8 = vpop.f32.mrf.mxu0  ;;  %v7964_v12 = vpop.f32.mrf.mxu1  ;;  %v7319_v1 = vld [vmem:[%s7555_s13 + $0x70] sm:$0xff]   ;;  %v3782_v7 = vsel %vm3236_vm4, %v3779_v56, %v3781_v59 }
  0xe1   : > { %5437 = vperm.xlu0 %7178, %v5343_v17   ;;  %5442 = vperm.xlu1 %7179, %v5344_v20   ;;  %v7329_v56 = vld [vmem:[%s7555_s13 + $0x10] sm:$0xfc]  }
  0xe2   : > { %v7966_v14 = vpop.f32.mrf.mxu0  ;;  %v7973_v18 = vpop.f32.mrf.mxu1  ;;  %v4285_v16 = vshrl.u32 %v7329_v56, 16 }
  0xe4   : > { %v7979_v21 = vpop.f32.mrf.mxu0  ;;  %v7984_v25 = vpop.f32.mrf.mxu1 }
  0xe5   : > { %5447 = vperm.xlu0 %7178, %v5345_v30   ;;  %5452 = vperm.xlu1 %7179, %v5346_v34  }
  0xe6   : > { %v7988_v29 = vpop.f32.mrf.mxu0  ;;  %7017 = vmatmul.mubr.msk.bf16.gmra.mxu0 %vm422_vm0, %v3772_v19  ;;  %v7994_v31 = vpop.f32.mrf.mxu1  ;;  %6981 = vmatmul.mubr.msk.bf16.gmra.mxu1 %vm422_vm0, %v3253_v22  ;;  %v5353_v19 = vld [vmem:[%s8865_s2 + $0xc0] sm:$0xff]  ;;  %v3783_v22 = vrot.slane %v7319_v1, 2 }
  0xe7   : > { %7020 = vmatprep.mubr.msk.bf16.mxu0 %vm422_vm0, %v3774_v23  ;;  %6984 = vmatprep.mubr.msk.bf16.mxu1 %vm422_vm0, %v3255_v26  ;;  %v5354_v23 = vld [vmem:[%s8865_s2 + $0xc8] sm:$0xff]  ;;  %v3264_v26 = vrot.slane %v7318_v11, 2  ;;  %v4296_v11 = vshll.u32 %v7330_v49, 16 }
  0xe8   : > { %v8001_v35 = vpop.f32.mrf.mxu0  ;;  %v8004_v38 = vpop.f32.mrf.mxu1  ;;  %v3784_v39 = vsel %vm3236_vm4, %v3781_v59, %v3783_v22 }
  0xe9   : > { %5457 = vperm.xlu0 %7178, %v5347_v40   ;;  %5462 = vperm.xlu1 %7179, %v5348_v45   ;;  %v7322_v40 = vld [vmem:[%s7555_s13 + $0x88] sm:$0xff]   ;;  %v3267_v52 = vsel %vm3236_vm4, %v3264_v26, %v3266_v33 }
  0xea   : > { %v8009_v41 = vpop.f32.mrf.mxu0  ;;  %v8011_v42 = vpop.f32.mrf.mxu1 }
  0xec   : > { %v8018_v46 = vpop.f32.mrf.mxu0  ;;  %v8024_v50 = vpop.f32.mrf.mxu1 }
  0xed   : > { %5467 = vperm.xlu0 %7178, %v5349_v54   ;;  %5472 = vperm.xlu1 %7179, %v5350_v57   ;;  %v8117_v54 = vld [vmem:[%s7555_s13 + $0x90] sm:$0xff]  }
  0xee   : > { %v8028_v53 = vpop.f32.mrf.mxu0  ;;  %7021 = vmatmul.mubr.msk.bf16.gmra.mxu0 %vm422_vm0, %v3776_v43  ;;  %v8034_v55 = vpop.f32.mrf.mxu1  ;;  %6985 = vmatmul.mubr.msk.bf16.gmra.mxu1 %vm422_vm0, %v3257_v47  ;;  %v7323_v43 = vld [vmem:[%s7555_s13 + $0x80] sm:$0xff]   ;;  %v3265_v47 = vsel %vm3236_vm4, %v3262_v61, %v3264_v26  ;;  %v3268_v61 = vrot.slane %v7322_v40, 2  ;;  %v5359_v26 = vld [vmem:[%s8865_s2 + $0xf0] sm:$0xff] }
  0xef   : > { %7024 = vmatprep.mubr.msk.bf16.mxu0 %vm422_vm0, %v3778_v9  ;;  %6988 = vmatprep.mubr.msk.bf16.mxu1 %vm422_vm0, %v3259_v51  ;;  %v3786_v9 = vsel %vm3236_vm4, %v3783_v22, %v3785_v28 }
  0xf0   : > { %v8041_v58 = vpop.f32.mrf.mxu0  ;;  %v8044_v60 = vpop.f32.mrf.mxu1 }
  0xf1   : > { %5477 = vperm.xlu0 %7178, %v5351_v63   ;;  %5482 = vperm.xlu1 %7179, %v5352_v2   ;;  %v3787_v63 = vrot.slane %v7323_v43, 2  ;;  %v7327_v43 = vld [vmem:[%s7555_s13 + $0x90] sm:$0xff]  }
  0xf2   : > { %v8046_v62 = vpop.f32.mrf.mxu0  ;;  %v8051_v10 = vpop.f32.mrf.mxu1 }
  0xf3   : > { %v3788_v40 = vsel %vm3236_vm4, %v3785_v28, %v3787_v63 }
  0xf4   : > { %v8058_v4 = vpop.f32.mrf.mxu0  ;;  %v8066_v13 = vpop.f32.mrf.mxu1 }
  0xf5   : > { %5487 = vperm.xlu0 %7178, %v5353_v19   ;;  %5492 = vperm.xlu1 %7179, %v5354_v23   ;;  %v4288_v19 = vshll.u32 %v7329_v56, 16  ;;  %v7326_v23 = vld [vmem:[%s7555_s13 + $0x98] ss:$0 sps:$4 sm:$0x33]  }
  0xf6   : > { %v8072_v17 = vpop.f32.mrf.mxu0  ;;  %7025 = vmatmul.mubr.msk.bf16.gmra.mxu0 %vm422_vm0, %v3780_v0  ;;  %v8078_v20 = vpop.f32.mrf.mxu1  ;;  %6989 = vmatmul.mubr.msk.bf16.gmra.mxu1 %vm422_vm0, %v3261_v6  ;;  %v5358_v0 = vld [vmem:[%s8865_s2 + $0xe8] sm:$0xff]  ;;  %v3789_v6 = vrot.slane %v8110_v48, 2  ;;  %v8202_v48 = vld [vmem:[%s7555_s13 + $0x18] sm:$0xff]  }
  0xf7   : > { %7028 = vmatprep.mubr.msk.bf16.mxu0 %vm422_vm0, %v3782_v7  ;;  %6992 = vmatprep.mubr.msk.bf16.mxu1 %vm422_vm0, %v3263_v15  ;;  %v4293_v7 = vshrl.u32 %v7330_v49, 16  ;;  %v3270_v15 = vrot.slane %v8117_v54, 2  ;;  %v4298_v54 = vrot.slane %v4296_v11, 3  ;;  %v3791_v11 = vrot.slane %v7327_v43, 2 }
  0xf8   : > { %v8085_v24 = vpop.f32.mrf.mxu0  ;;  %v8089_v30 = vpop.f32.mrf.mxu1  ;;  %v3790_v49 = vsel %vm3236_vm4, %v3787_v63, %v3789_v6 }
  0xf9   : > { %5497 = vperm.xlu0 %7178, %v5355_v36   ;;  %5502 = vperm.xlu1 %7179, %v5356_v44   ;;  %v8148_v44 = vld [vmem:[%s7555_s13 + $0x98] sm:$0xff]   ;;  %v3271_v28 = vsel %vm3236_vm4, %v3268_v61, %v3270_v15 }
  0xfa   : > { %v8092_v34 = vpop.f32.mrf.mxu0  ;;  %v8097_v37 = vpop.f32.mrf.mxu1 }
  0xfc   : > { %v8105_v45 = vpop.f32.mrf.mxu0  ;;  %v8113_v51 = vpop.f32.mrf.mxu1 }
  0xfd   : > { %8870 = vst [vmem:[#allocation9_spill] sm:$0xff] %v8113_v51  ;;  %5507 = vperm.xlu0 %7178, %v5357_v32   ;;  %5512 = vperm.xlu1 %7179, %v5358_v0   ;;  %v4287_v32 = vrot.slane %v4285_v16, 2  ;;  %v7333_v0 = vld [vmem:[%s7555_s13 + $0x28] sm:$0xff]   ;;  %v3793_v16 = vrot.slane %v8148_v44, 2 }
  0xfe   : > { %v8120_v57 = vpop.f32.mrf.mxu0  ;;  %7029 = vmatmul.mubr.msk.bf16.gmra.mxu0 %vm422_vm0, %v3784_v39  ;;  %v6810_v59 = vpop.f32.mrf.mxu1  ;;  %6993 = vmatmul.mubr.msk.bf16.gmra.mxu1 %vm422_vm0, %v3265_v47  ;;  %v3269_v39 = vsel %vm3236_vm4, %v3266_v33, %v3268_v61  ;;  %v7332_v33 = vld [vmem:[%s7555_s13 + $0x20] sm:$0xff]   ;;  %v3272_v61 = vrot.slane %v7326_v23, 2  ;;  %v4311_v43 = vshrl.u32 %v7333_v0, 16 }
  0xff   : > { %7032 = vmatprep.mubr.msk.bf16.mxu0 %vm422_vm0, %v3786_v9  ;;  %v1291_v1 = vadd.f32 %v6810_v59, %v7948_v3  ;;  %6996 = vmatprep.mubr.msk.bf16.mxu1 %vm422_vm0, %v3267_v52  ;;  %v4295_v52 = vrot.slane %v4293_v7, 2  ;;  %v4290_v59 = vrot.slane %v4288_v19, 3 }
 0x100   : > { %v8132_v2 = vpop.f32.mrf.mxu0  ;;  %v1146_v27 = vpop.f32.mrf.mxu1 }
 0x101   : > { %v1289_v22 = vadd.f32 %v1146_v27, %v7961_v8  ;;  %v5360_v8 = vld [vmem:[%s8865_s2 + $0xf8] sm:$0xff]  ;;  %5517 = vperm.xlu0 %7178, %v5359_v26  }
 0x102   : > { %v8138_v3 = vpop.f32.mrf.mxu0  ;;  %v6811_v36 = vpop.f32.mrf.mxu1  ;;  %5522 = vperm.xlu1 %7179, %v5360_v8   ;;  %v4314_v8 = vshll.u32 %v7333_v0, 16 }
 0x103   : > { %v1292_v47 = vadd.f32 %v6811_v36, %v7966_v14  ;;  %v5361_v14 = vld [vmem:[%s8865_s2 + $0x100] sm:$0xff]  ;;  %v8177_v36 = vor.u32 %v4298_v54, %v4295_v52 }
 0x104   : > { %v8154_v9 = vpop.f32.mrf.mxu0  ;;  %v1149_v56 = vpop.f32.mrf.mxu1 }
 0x105   : > { %v1290_v27 = vadd.f32 %v1149_v56, %v7979_v21  ;;  %v5362_v21 = vld [vmem:[%s8865_s2 + $0x108] sm:$0xff]  ;;  %5527 = vperm.xlu0 %7178, %v5361_v14  }
 0x106   : > { %v6850_v51 = vpop.f32.mrf.mxu0  ;;  %7033 = vmatmul.mubr.msk.bf16.gmra.mxu0 %vm422_vm0, %v3788_v40  ;;  %v6814_v63 = vpop.f32.mrf.mxu1  ;;  %6997 = vmatmul.mubr.msk.bf16.gmra.mxu1 %vm422_vm0, %v3269_v39  ;;  %v4291_v40 = vor.u32 %v4290_v59, %v4287_v32  ;;  %v5364_v32 = vld [vmem:[%s8865_s2 + $0x118] sm:$0xff] }
 0x107   : > { %v8167_v7 = vadd.f32 %v6850_v51, %v1291_v1  ;;  %7036 = vmatprep.mubr.msk.bf16.mxu0 %vm422_vm0, %v3790_v49  ;;  %v1295_v19 = vadd.f32 %v6814_v63, %v7988_v29  ;;  %7000 = vmatprep.mubr.msk.bf16.mxu1 %vm422_vm0, %v3271_v28  ;;  %v4302_v51 = vshrl.u32 %v7332_v33, 16  ;;  %v4305_v1 = vshll.u32 %v7332_v33, 16  ;;  %v5363_v29 = vld [vmem:[%s8865_s2 + $0x110] sm:$0xff] }
 0x108   : > { %v1670_v26 = vpop.f32.mrf.mxu0  ;;  %v1162_v39 = vpop.f32.mrf.mxu1  ;;  %5532 = vperm.xlu1 %7179, %v5362_v21   ;;  %v3792_v33 = vsel %vm3236_vm4, %v3789_v6, %v3791_v11  ;;  %v7336_v28 = vld [vmem:[%s7555_s13 + $0x30] sm:$0xff]   ;;  %v4300_v21 = vsel %vm4283_vm5, %v4291_v40, %v8177_v36 }
 0x109   : > { %v8179_v23 = vadd.f32 %v1670_v26, %v1289_v22  ;;  %v1293_v49 = vadd.f32 %v1162_v39, %v8001_v35  ;;  %v3273_v22 = vsel %vm3236_vm4, %v3270_v15, %v3272_v61  ;;  %v7331_v35 = vld [vmem:[%s7555_s13 + $0xa0] ss:$0 sps:$4 sm:$0x33]   ;;  %v4304_v14 = vrot.slane %v4302_v51, 2  ;;  %v7334_v63 = vld [vmem:[%s7555_s13 + $0x10] sm:$0xf8]   ;;  %5537 = vperm.xlu0 %7178, %v5363_v29  }
 0x10a   : > { %v6851_v56 = vpop.f32.mrf.mxu0  ;;  %v6815_v52 = vpop.f32.mrf.mxu1  ;;  %v4307_v15 = vrot.slane %v4305_v1, 3  ;;  %v4313_v26 = vrot.slane %v4311_v43, 2  ;;  %v4316_v39 = vrot.slane %v4314_v8, 3  ;;  %v4320_v1 = vshrl.u32 %v7336_v28, 16 }
 0x10b   : > { %v8185_v54 = vadd.f32 %v6851_v56, %v1292_v47  ;;  %v1296_v59 = vadd.f32 %v6815_v52, %v8009_v41  ;;  %v3794_v47 = vsel %vm3236_vm4, %v3791_v11, %v3793_v16  ;;  %v7338_v56 = vld [vmem:[%s7555_s13 + $0x38] sm:$0xff]   ;;  %v4323_v40 = vshll.u32 %v7336_v28, 16 }
 0x10c   : > { %v1673_v0 = vpop.f32.mrf.mxu0  ;;  %v1165_v6 = vpop.f32.mrf.mxu1  ;;  %5542 = vperm.xlu1 %7179, %v5364_v32   ;;  %v4941_v29 = vrot.slane %v7334_v63, 3 }
 0x10d   : > { %v8204_v61 = vadd.f32 %v1673_v0, %v1290_v27  ;;  %v1294_v41 = vadd.f32 %v1165_v6, %v8018_v46  ;;  %v3795_v27 = vrot.slane %v7331_v35, 2  ;;  %v4308_v46 = vor.u32 %v4307_v15, %v4304_v14 }
 0x10e   : > { %v6854_v52 = vpop.f32.mrf.mxu0  ;;  %7037 = vmatmul.mubr.msk.bf16.gmra.mxu0 %vm422_vm0, %v3792_v33  ;;  %v6818_v11 = vpop.f32.mrf.mxu1  ;;  %7001 = vmatmul.mubr.msk.bf16.gmra.mxu1 %vm422_vm0, %v3273_v22  ;;  %v4942_v33 = vrot.slane %v8202_v48, 3  ;;  %v4317_v22 = vor.u32 %v4316_v39, %v4313_v26  ;;  %v4329_v0 = vshrl.u32 %v7338_v56, 16  ;;  %v4332_v35 = vshll.u32 %v7338_v56, 16  ;;  %v8232_v39 = vld [vmem:[%s7555_s13 + $0x28] sm:$0xff]  }
 0x10f   : > { %v8211_v51 = vadd.f32 %v6854_v52, %v1295_v19  ;;  %7040 = vmatprep.mubr.msk.bf16.mxu0 %vm422_vm0, %v3794_v47  ;;  %v1299_v43 = vadd.f32 %v6818_v11, %v8028_v53  ;;  %7048 = vmatprep.mubr.msk.bf16.mxu1 %vm422_vm0, %v4300_v21  ;;  %v3796_v14 = vsel %vm3236_vm4, %v3793_v16, %v3795_v27  ;;  %v4322_v15 = vrot.slane %v4320_v1, 2  ;;  %v7342_v27 = vld [vmem:[%s7555_s13 + $0x48] sm:$0xff]  }
 0x110   : > { %v1686_v8 = vpop.f32.mrf.mxu0  ;;  %v1178_v32 = vpop.f32.mrf.mxu1  ;;  %v4325_v63 = vrot.slane %v4323_v40, 3  ;;  %v4309_v26 = vsel %vm4283_vm5, %v8177_v36, %v4308_v46  ;;  %v4318_v44 = vsel %vm4283_vm5, %v4308_v46, %v4317_v22  ;;  %v4331_v16 = vrot.slane %v4329_v0, 2 }
 0x111   : > { %v8218_v19 = vadd.f32 %v1686_v8, %v1293_v49  ;;  %v1297_v28 = vadd.f32 %v1178_v32, %v8041_v58  ;;  %v7337_v49 = vld [vmem:[%s7555_s13 + $0x20] sm:$0xff]   ;;  %v4943_v58 = vsel %vm4940_vm6, %v4941_v29, %v4942_v33  ;;  %v4334_v11 = vrot.slane %v4332_v35, 3 }
 0x112   : > { %v6855_v47 = vpop.f32.mrf.mxu0  ;;  %v6819_v53 = vpop.f32.mrf.mxu1  ;;  %v4326_v8 = vor.u32 %v4325_v63, %v4322_v15 }
 0x113   : > { %v8221_v6 = vadd.f32 %v6855_v47, %v1296_v59  ;;  %v1300_v48 = vadd.f32 %v6819_v53, %v8046_v62  ;;  %v7340_v59 = vld [vmem:[%s7555_s13 + $0x40] sm:$0xff]   ;;  %v4335_v47 = vor.u32 %v4334_v11, %v4331_v16  ;;  %v4347_v53 = vshrl.u32 %v7342_v27, 16  ;;  %v8260_v11 = vld [vmem:[%s7555_s13 + $0x38] sm:$0xff]  }
 0x114   : > { %v1689_v21 = vpop.f32.mrf.mxu0  ;;  %v1181_v56 = vpop.f32.mrf.mxu1  ;;  %v4338_v32 = vshrl.u32 %v7340_v59, 16  ;;  %v4341_v0 = vshll.u32 %v7340_v59, 16 }
 0x115   : > { %v8235_v52 = vadd.f32 %v1689_v21, %v1294_v41  ;;  %v1298_v1 = vadd.f32 %v1181_v56, %v8058_v4  ;;  %v4944_v41 = vrot.slane %v7337_v49, 3  ;;  %v4946_v4 = vrot.slane %v8232_v39, 3  ;;  %v7344_v39 = vld [vmem:[%s7555_s13 + $0x50] sm:$0xff]  }
 0x116   : > { %v6858_v62 = vpop.f32.mrf.mxu0  ;;  %7041 = vmatmul.mubr.msk.bf16.gmra.mxu0 %vm422_vm0, %v3796_v14  ;;  %v6822_v40 = vpop.f32.mrf.mxu1  ;;  %7049 = vmatmul.mubr.msk.bf16.vlgmr.msra.gmra.mxu1 %vm422_vm0, %v4309_v26  ;;  %v4350_v14 = vshll.u32 %v7342_v27, 16  ;;  %v4327_v21 = vsel %vm4283_vm5, %v4317_v22, %v4326_v8  ;;  %v4343_v16 = vrot.slane %v4341_v0, 3 }
 0x117   : > { %v8241_v36 = vadd.f32 %v6858_v62, %v1299_v43  ;;  %7088 = vmatprep.mubr.msk.bf16.mxu0 %vm422_vm0, %v4943_v58  ;;  %v1303_v29 = vadd.f32 %v6822_v40, %v8072_v17  ;;  %7052 = vmatprep.mubr.msk.bf16.mxu1 %vm422_vm0, %v4318_v44  ;;  %v4945_v26 = vsel %vm4940_vm6, %v4942_v33, %v4944_v41  ;;  %v7341_v58 = vld [vmem:[%s7555_s13 + $0x30] sm:$0xff]   ;;  %v4340_v44 = vrot.slane %v4338_v32, 2  ;;  %v7346_v40 = vld [vmem:[%s7555_s13 + $0x58] sm:$0xff]  }
 0x118   : > { %v1702_v46 = vpop.f32.mrf.mxu0  ;;  %v1194_v35 = vpop.f32.mrf.mxu1  ;;  %v4947_v56 = vsel %vm4940_vm6, %v4944_v41, %v4946_v4  ;;  %v4349_v62 = vrot.slane %v4347_v53, 2  ;;  %v4352_v22 = vrot.slane %v4350_v14, 3  ;;  %v4948_v41 = vrot.slane %v7341_v58, 3 }
 0x119   : > { %v8248_v43 = vadd.f32 %v1702_v46, %v1297_v28  ;;  %v1301_v15 = vadd.f32 %v1194_v35, %v8085_v24  ;;  %v4359_v32 = vshll.u32 %v7344_v39, 16  ;;  %v4950_v53 = vrot.slane %v8260_v11, 3  ;;  %v8283_v11 = vld [vmem:[%s7555_s13 + $0x48] sm:$0xff]  }
 0x11a   : > { %v6859_v63 = vpop.f32.mrf.mxu0  ;;  %v6823_v17 = vpop.f32.mrf.mxu1 }
 0x11b   : > { %v8251_v49 = vadd.f32 %v6859_v63, %v1300_v48  ;;  %v1304_v28 = vadd.f32 %v6823_v17, %v8092_v34  ;;  %v4336_v48 = vsel %vm4283_vm5, %v4326_v8, %v4335_v47  ;;  %v4353_v63 = vor.u32 %v4352_v22, %v4349_v62  ;;  %v7348_v22 = vld [vmem:[%s7555_s13 + $0x60] sm:$0xff]  }
 0x11c   : > { %v1705_v59 = vpop.f32.mrf.mxu0  ;;  %v1197_v24 = vpop.f32.mrf.mxu1  ;;  %v4365_v17 = vshrl.u32 %v7346_v40, 16  ;;  %v4951_v62 = vsel %vm4940_vm6, %v4948_v41, %v4950_v53 }
 0x11d   : > { %v8262_v27 = vadd.f32 %v1705_v59, %v1298_v1  ;;  %v1302_v33 = vadd.f32 %v1197_v24, %v8105_v45  ;;  %v4356_v1 = vshrl.u32 %v7344_v39, 16  ;;  %v4344_v45 = vor.u32 %v4343_v16, %v4340_v44  ;;  %v7345_v16 = vld [vmem:[%s7555_s13 + $0x40] sm:$0xff]  }
 0x11e   : > { %v6862_v46 = vpop.f32.mrf.mxu0  ;;  %7089 = vmatmul.mubr.msk.bf16.vlgmr.msra.gmra.mxu0 %vm422_vm0, %v4945_v26  ;;  %v6826_v34 = vpop.f32.mrf.mxu1  ;;  %7053 = vmatmul.mubr.msk.bf16.gmra.mxu1 %vm422_vm0, %v4327_v21  ;;  %v4368_v21 = vshll.u32 %v7346_v40, 16  ;;  %v4949_v59 = vsel %vm4940_vm6, %v4946_v4, %v4948_v41  ;;  %v4361_v44 = vrot.slane %v4359_v32, 3  ;;  %v4367_v4 = vrot.slane %v4365_v17, 2 }
 0x11f   : > { %v8268_v35 = vadd.f32 %v6862_v46, %v1303_v29  ;;  %7092 = vmatprep.mubr.msk.bf16.mxu0 %vm422_vm0, %v4947_v56  ;;  %v1307_v8 = vadd.f32 %v6826_v34, %v8120_v57  ;;  %7056 = vmatprep.mubr.msk.bf16.mxu1 %vm422_vm0, %v4336_v48  ;;  %v4358_v56 = vrot.slane %v4356_v1, 2  ;;  %v4345_v48 = vsel %vm4283_vm5, %v4335_v47, %v4344_v45 }
 0x120   : > { %v1718_v0 = vpop.f32.mrf.mxu0  ;;  %v1210_v14 = vpop.f32.mrf.mxu1  ;;  %v4370_v34 = vrot.slane %v4368_v21, 3  ;;  %v4954_v41 = vrot.slane %v8283_v11, 3 }
 0x121   : > { %v8275_v29 = vadd.f32 %v1718_v0, %v1301_v15  ;;  %v1305_v26 = vadd.f32 %v1210_v14, %v8132_v2  ;;  %v7350_v2 = vld [vmem:[%s7555_s13 + $0x68] sm:$0xff]   ;;  %v4362_v47 = vor.u32 %v4361_v44, %v4358_v56  ;;  %v4377_v14 = vshll.u32 %v7348_v22, 16 }
 0x122   : > { %v6863_v58 = vpop.f32.mrf.mxu0  ;;  %v6827_v57 = vpop.f32.mrf.mxu1  ;;  %v4383_v17 = vshrl.u32 %v7350_v2, 16  ;;  %v4386_v21 = vshll.u32 %v7350_v2, 16 }
 0x123   : > { %v8278_v39 = vadd.f32 %v6863_v58, %v1304_v28  ;;  %v1308_v15 = vadd.f32 %v6827_v57, %v8138_v3  ;;  %v4354_v28 = vsel %vm4283_vm5, %v4344_v45, %v4353_v63  ;;  %v4371_v57 = vor.u32 %v4370_v34, %v4367_v4 }
 0x124   : > { %v1721_v24 = vpop.f32.mrf.mxu0  ;;  %v1213_v40 = vpop.f32.mrf.mxu1  ;;  %v4363_v44 = vsel %vm4283_vm5, %v4353_v63, %v4362_v47  ;;  %v7354_v63 = vld [vmem:[%s7555_s13 + $0x78] sm:$0xff]  }
 0x125   : > { %v8290_v46 = vadd.f32 %v1721_v24, %v1302_v33  ;;  %v1306_v1 = vadd.f32 %v1213_v40, %v8154_v9  ;;  %v4952_v33 = vrot.slane %v7345_v16, 3  ;;  %v4374_v9 = vshrl.u32 %v7348_v22, 16  ;;  %v7349_v24 = vld [vmem:[%s7555_s13 + $0x50] sm:$0xff]  }
 0x126   : > { %v6866_v32 = vpop.f32.mrf.mxu0  ;;  %7093 = vmatmul.mubr.msk.bf16.gmra.mxu0 %vm422_vm0, %v4949_v59  ;;  %v6830_v3 = vpop.f32.mrf.mxu1  ;;  %7057 = vmatmul.mubr.msk.bf16.gmra.mxu1 %vm422_vm0, %v4345_v48  ;;  %v4379_v40 = vrot.slane %v4377_v14, 3 }
 0x127   : > { %v8295_v0 = vadd.f32 %v6866_v32, %v1307_v8  ;;  %7096 = vmatprep.mubr.msk.bf16.mxu0 %vm422_vm0, %v4951_v62  ;;  %7060 = vmatprep.mubr.msk.bf16.mxu1 %vm422_vm0, %v4354_v28  ;;  %v4953_v16 = vsel %vm4940_vm6, %v4950_v53, %v4952_v33  ;;  %v4955_v11 = vsel %vm4940_vm6, %v4952_v33, %v4954_v41  ;;  %v7352_v62 = vld [vmem:[%s7555_s13 + $0x70] sm:$0xff]   ;;  %v4376_v2 = vrot.slane %v4374_v9, 2  ;;  %v8311_v32 = vld [vmem:[%s7555_s13 + $0x58] sm:$0xff]  }
 0x128   : > { %v1734_v45 = vpop.f32.mrf.mxu0  ;;  %v1226_v58 = vpop.f32.mrf.mxu1  ;;  %v4385_v28 = vrot.slane %v4383_v17, 2  ;;  %v1311_v4 = vadd.f32 %v6830_v3, %v7954_v5  ;;  %v4956_v53 = vrot.slane %v7349_v24, 3  ;;  %v4392_v5 = vshrl.u32 %v7352_v62, 16 }
 0x129   : > { %v8301_v8 = vadd.f32 %v1734_v45, %v1305_v26  ;;  %v4388_v26 = vrot.slane %v4386_v21, 3  ;;  %v1309_v33 = vadd.f32 %v1226_v58, %v7964_v12  ;;  %v4958_v21 = vrot.slane %v8311_v32, 3  ;;  %v8335_v32 = vld [vmem:[%s7555_s13 + $0x68] sm:$0xff]  }
 0x12a   : > { %v6867_v59 = vpop.f32.mrf.mxu0  ;;  %v6831_v48 = vpop.f32.mrf.mxu1 }
 0x12b   : > { %v8304_v56 = vadd.f32 %v6867_v59, %v1308_v15  ;;  %v4372_v15 = vsel %vm4283_vm5, %v4362_v47, %v4371_v57  ;;  %v4380_v47 = vor.u32 %v4379_v40, %v4376_v2  ;;  %v4389_v17 = vor.u32 %v4388_v26, %v4385_v28 }
 0x12c   : > { %v1737_v22 = vpop.f32.mrf.mxu0  ;;  %v1229_v34 = vpop.f32.mrf.mxu1  ;;  %v1312_v12 = vadd.f32 %v6831_v48, %v7973_v18  ;;  %v4394_v28 = vrot.slane %v4392_v5, 2 }
 0x12d   : > { %v8314_v45 = vadd.f32 %v1737_v22, %v1306_v1  ;;  %v4395_v1 = vshll.u32 %v7352_v62, 16  ;;  %v4957_v62 = vsel %vm4940_vm6, %v4954_v41, %v4956_v53  ;;  %v7353_v22 = vld [vmem:[%s7555_s13 + $0x60] sm:$0xff]   ;;  %v4381_v48 = vsel %vm4283_vm5, %v4371_v57, %v4380_v47 }
 0x12e   : > { %v6870_v59 = vpop.f32.mrf.mxu0  ;;  %7097 = vmatmul.mubr.msk.bf16.gmra.mxu0 %vm422_vm0, %v4953_v16  ;;  %v6834_v9 = vpop.f32.mrf.mxu1  ;;  %7061 = vmatmul.mubr.msk.bf16.gmra.mxu1 %vm422_vm0, %v4363_v44  ;;  %v4401_v44 = vshrl.u32 %v7354_v63, 16  ;;  %v4404_v16 = vshll.u32 %v7354_v63, 16  ;;  %v4959_v63 = vsel %vm4940_vm6, %v4956_v53, %v4958_v21  ;;  %v4962_v53 = vrot.slane %v8335_v32, 3 }
 0x12f   : > { %v8320_v14 = vadd.f32 %v6870_v59, %v1311_v4  ;;  %7100 = vmatprep.mubr.msk.bf16.mxu0 %vm422_vm0, %v4955_v11  ;;  %7064 = vmatprep.mubr.msk.bf16.mxu1 %vm422_vm0, %v4372_v15  ;;  %v1310_v4 = vadd.f32 %v1229_v34, %v7984_v25  ;;  %v4397_v26 = vrot.slane %v4395_v1, 3  ;;  %v4390_v15 = vsel %vm4283_vm5, %v4380_v47, %v4389_v17  ;;  %v7356_v59 = vld [vmem:[%s7555_s13 + $0x80] sm:$0xff]  }
 0x130   : > { %v1750_v3 = vpop.f32.mrf.mxu0  ;;  %v1242_v58 = vpop.f32.mrf.mxu1  ;;  %v1315_v41 = vadd.f32 %v6834_v9, %v7994_v31  ;;  %v4403_v34 = vrot.slane %v4401_v44, 2  ;;  %v4960_v1 = vrot.slane %v7353_v22, 3  ;;  %v4410_v47 = vshrl.u32 %v7356_v59, 16 }
 0x131   : > { %v8327_v24 = vadd.f32 %v1750_v3, %v1309_v33  ;;  %v7358_v33 = vld [vmem:[%s7555_s13 + $0x88] sm:$0xff]   ;;  %v4398_v31 = vor.u32 %v4397_v26, %v4394_v28  ;;  %v4413_v44 = vshll.u32 %v7356_v59, 16  ;;  %v7357_v26 = vld [vmem:[%s7555_s13 + $0x70] sm:$0xff]  }
 0x132   : > { %v6871_v11 = vpop.f32.mrf.mxu0  ;;  %v6835_v2 = vpop.f32.mrf.mxu1  ;;  %v4961_v28 = vsel %vm4940_vm6, %v4958_v21, %v4960_v1  ;;  %v4963_v59 = vsel %vm4940_vm6, %v4960_v1, %v4962_v53 }
 0x133   : > { %v8332_v40 = vadd.f32 %v6871_v11, %v1312_v12  ;;  %v4406_v12 = vrot.slane %v4404_v16, 3  ;;  %v1313_v11 = vadd.f32 %v1242_v58, %v8004_v38  ;;  %v4419_v16 = vshrl.u32 %v7358_v33, 16 }
 0x134   : > { %v1753_v18 = vpop.f32.mrf.mxu0  ;;  %v1245_v3 = vpop.f32.mrf.mxu1  ;;  %v1316_v38 = vadd.f32 %v6835_v2, %v8011_v42  ;;  %v7360_v42 = vld [vmem:[%s7555_s13 + $0x90] sm:$0xff]  }
 0x135   : > { %8871 = vst [vmem:[#allocation10_spill] sm:$0xff] %v8332_v40  ;;  %v8343_v25 = vadd.f32 %v1753_v18, %v1310_v4  ;;  %v4407_v4 = vor.u32 %v4406_v12, %v4403_v34  ;;  %v1314_v32 = vadd.f32 %v1245_v3, %v8024_v50  ;;  %v8365_v12 = vld [vmem:[%s7555_s13 + $0x78] sm:$0xff]  }
 0x136   : > { %v6874_v5 = vpop.f32.mrf.mxu0  ;;  %7101 = vmatmul.mubr.msk.bf16.gmra.mxu0 %vm422_vm0, %v4957_v62  ;;  %v6838_v57 = vpop.f32.mrf.mxu1  ;;  %7065 = vmatmul.mubr.msk.bf16.gmra.mxu1 %vm422_vm0, %v4381_v48  ;;  %v4422_v62 = vshll.u32 %v7358_v33, 16  ;;  %v4412_v33 = vrot.slane %v4410_v47, 2 }
 0x137   : > { %v8347_v40 = vadd.f32 %v6874_v5, %v1315_v41  ;;  %7104 = vmatprep.mubr.msk.bf16.mxu0 %vm422_vm0, %v4959_v63  ;;  %7068 = vmatprep.mubr.msk.bf16.mxu1 %vm422_vm0, %v4390_v15  ;;  %v4399_v63 = vsel %vm4283_vm5, %v4389_v17, %v4398_v31  ;;  %v4415_v41 = vrot.slane %v4413_v44, 3  ;;  %v4421_v5 = vrot.slane %v4419_v16, 2 }
 0x138   : > { %v1766_v9 = vpop.f32.mrf.mxu0  ;;  %v1258_v58 = vpop.f32.mrf.mxu1  ;;  %v4424_v34 = vrot.slane %v4422_v62, 3  ;;  %v1319_v21 = vadd.f32 %v6838_v57, %v8034_v55  ;;  %v4408_v3 = vsel %vm4283_vm5, %v4398_v31, %v4407_v4  ;;  %v4964_v17 = vrot.slane %v7357_v26, 3 }
 0x139   : > { %v8354_v22 = vadd.f32 %v1766_v9, %v1313_v11  ;;  %v7362_v9 = vld [vmem:[%s7555_s13 + $0x98] sm:$0xff]   ;;  %v1317_v1 = vadd.f32 %v1258_v58, %v8044_v60  ;;  %v4428_v55 = vshrl.u32 %v7360_v42, 16  ;;  %v4431_v57 = vshll.u32 %v7360_v42, 16 }
 0x13a   : > { %v6875_v18 = vpop.f32.mrf.mxu0  ;;  %v6839_v48 = vpop.f32.mrf.mxu1  ;;  %v4416_v31 = vor.u32 %v4415_v41, %v4412_v33  ;;  %v4425_v62 = vor.u32 %v4424_v34, %v4421_v5  ;;  %v4437_v26 = vshrl.u32 %v7362_v9, 16  ;;  %v7361_v5 = vld [vmem:[%s7555_s13 + $0x80] sm:$0xff]  }
 0x13b   : > { %v8359_v15 = vadd.f32 %v6875_v18, %v1316_v38  ;;  %v4966_v18 = vrot.slane %v8365_v12, 3  ;;  %v4430_v33 = vrot.slane %v4428_v55, 2  ;;  %v4433_v41 = vrot.slane %v4431_v57, 3 }
 0x13c   : > { %v1769_v2 = vpop.f32.mrf.mxu0  ;;  %v1261_v11 = vpop.f32.mrf.mxu1 }
 0x13d   : > { %v8368_v50 = vadd.f32 %v1769_v2, %v1314_v32  ;;  %v4440_v32 = vshll.u32 %v7362_v9, 16  ;;  %v1318_v42 = vadd.f32 %v1261_v11, %v8066_v13  ;;  %v4967_v12 = vsel %vm4940_vm6, %v4964_v17, %v4966_v18  ;;  %v7364_v9 = vld [vmem:[%s7555_s13 + $0xa0] ss:$0 sps:$4 sm:$0x77]  }
 0x13e   : > { %v6878_v38 = vpop.f32.mrf.mxu0  ;;  %7105 = vmatmul.mubr.msk.bf16.gmra.mxu0 %vm422_vm0, %v4961_v28  ;;  %v6842_v47 = vpop.f32.mrf.mxu1  ;;  %7069 = vmatmul.mubr.msk.bf16.gmra.mxu1 %vm422_vm0, %v4399_v63  ;;  %v1320_v28 = vadd.f32 %v6839_v48, %v8051_v10  ;;  %v4417_v10 = vsel %vm4283_vm5, %v4407_v4, %v4416_v31  ;;  %v4426_v48 = vsel %vm4283_vm5, %v4416_v31, %v4425_v62  ;;  %v4439_v11 = vrot.slane %v4437_v26, 2 }
 0x13f   : > { %v8374_v44 = vadd.f32 %v6878_v38, %v1319_v21  ;;  %7108 = vmatprep.mubr.msk.bf16.mxu0 %vm422_vm0, %v4963_v59  ;;  %7072 = vmatprep.mubr.msk.bf16.mxu1 %vm422_vm0, %v4408_v3  ;;  %v4965_v59 = vsel %vm4940_vm6, %v4962_v53, %v4964_v17  ;;  %v8392_v3 = vld [vmem:[%s7555_s13 + $0x88] sm:$0xff]   ;;  %v1323_v53 = vadd.f32 %v6842_v47, %v8078_v20  ;;  %v4968_v31 = vrot.slane %v7361_v5, 3 }
 0x140   : > { %v1782_v16 = vpop.f32.mrf.mxu0  ;;  %v1274_v60 = vpop.f32.mrf.mxu1  ;;  %v4434_v17 = vor.u32 %v4433_v41, %v4430_v33  ;;  %v4446_v26 = vshrl.u32 %v7364_v9, 16  ;;  %v8872_v41 = vld [vmem:[#allocation9_spill] sm:$0xff] }
 0x141   : > { %v8381_v58 = vadd.f32 %v1782_v16, %v1317_v1  ;;  %v4442_v1 = vrot.slane %v4440_v32, 3  ;;  %v1321_v57 = vadd.f32 %v1274_v60, %v8089_v30  ;;  %v4449_v32 = vshll.u32 %v7364_v9, 16 }
 0x142   : > { %v6879_v63 = vpop.f32.mrf.mxu0  ;;  %v6843_v2 = vpop.f32.mrf.mxu1  ;;  %v4448_v9 = vrot.slane %v4446_v26, 2 }
 0x143   : > { %v8385_v21 = vadd.f32 %v6879_v63, %v1320_v28  ;;  %v4970_v28 = vrot.slane %v8392_v3, 3  ;;  %v1324_v30 = vadd.f32 %v6843_v2, %v8097_v37 }
 0x144   : > { %v1785_v34 = vpop.f32.mrf.mxu0  ;;  %v1277_v38 = vpop.f32.mrf.mxu1 }
 0x145   : > { %v8396_v13 = vadd.f32 %v1785_v34, %v1318_v42  ;;  %v4971_v3 = vsel %vm4940_vm6, %v4968_v31, %v4970_v28 }
 0x146   : > { %v6882_v55 = vpop.f32.mrf.mxu0  ;;  %7109 = vmatmul.mubr.msk.bf16.gmra.mxu0 %vm422_vm0, %v4965_v59  ;;  %v6890_v16 = vpop.f32.mrf.mxu1  ;;  %7073 = vmatmul.mubr.msk.bf16.gmra.mxu1 %vm422_vm0, %v4417_v10  ;;  %v4443_v59 = vor.u32 %v4442_v1, %v4439_v11  ;;  %v4435_v10 = vsel %vm4283_vm5, %v4425_v62, %v4434_v17  ;;  %v7366_v11 = vld [vmem:[%s7555_s13 + $0x98] sm:$0xff]  }
 0x147   : > { %v8400_v4 = vadd.f32 %v6882_v55, %v1323_v53  ;;  %7112 = vmatprep.mubr.msk.bf16.mxu0 %vm422_vm0, %v4967_v12  ;;  %v2338_v20 = vadd.f32 %v6890_v16, %v8167_v7  ;;  %7076 = vmatprep.mubr.msk.bf16.mxu1 %vm422_vm0, %v4426_v48  ;;  %v1322_v7 = vadd.f32 %v1277_v38, %v8872_v41  ;;  %v7365_v12 = vld [vmem:[%s7555_s13 + $0x90] sm:$0xff]   ;;  %v4451_v53 = vrot.slane %v4449_v32, 3  ;;  %v7367_v41 = vld [vmem:[%s7555_s13 + $0xa0] ss:$0 sps:$4 sm:$0x77]   ;;  %s8676_s13 = sand.u32 1, %s7450_s16  }
 0x148   : > { %v1798_v47 = vpop.f32.mrf.mxu0  ;;  %v2193_v63 = vpop.f32.mrf.mxu1  ;;  %v4969_v48 = vsel %vm4940_vm6, %v4966_v18, %v4968_v31  ;;  %v4444_v38 = vsel %vm4283_vm5, %v4434_v17, %v4443_v59  ;;  %s7128_s27 = smul.u32 144, %s8676_s13  ;;  %s5887_s8 = scalar_lea.sflag [#allocation4], %s8676_s13 }
 0x149   : > { %v8408_v60 = vadd.f32 %v1798_v47, %v1321_v57  ;;  %v2336_v42 = vadd.f32 %v2193_v63, %v8179_v23  ;;  %v4452_v17 = vor.u32 %v4451_v53, %v4448_v9  ;;  %v4974_v47 = vrot.slane %v7366_v11, 3 }
 0x14a   : > { %v6883_v33 = vpop.f32.mrf.mxu0  ;;  %v6891_v34 = vpop.f32.mrf.mxu1  ;;  %s8696_s28 = scalar_lea.vmem [#allocation3], %s7128_s27 }
 0x14b   : > { %v8412_v5 = vadd.f32 %v6883_v33, %v1324_v30  ;;  %v2339_v37 = vadd.f32 %v6891_v34, %v8185_v54  ;;  %v4972_v54 = vrot.slane %v7365_v12, 3  ;;  %v4453_v34 = vsel %vm4283_vm5, %v4443_v59, %v4452_v17  ;;  %s5905_s30 = sshll.u32 %s8696_s28, 4  ;;  %s8790_s30 = int_to_ptr.vmem [resolvable:$true] %s5905_s30 }
 0x14c   : > { %v1801_v2 = vpop.f32.mrf.mxu0  ;;  %v2196_v1 = vpop.f32.mrf.mxu1  ;;  %s7368_s9 = scalar_lea.vmem %s8790_s30, 2304  ;;  %p7375_p0 = scmp.lt.s32.totalorder %s8790_s30, %s7373_s11 }
 0x14d   : > { %v8420_v23 = vadd.f32 %v1801_v2, %v1322_v7  ;;  %v2337_v55 = vadd.f32 %v2196_v1, %v8204_v61  ;;  %v4973_v33 = vsel %vm4940_vm6, %v4970_v28, %v4972_v54  ;;  %p7369_p11 = scmp.ne.s32.totalorder %s8790_s30, %s7368_s9  ;;  %p7376_p1 = scmp.lt.s32.totalorder %s7374_s12, %s7368_s9 }
 0x14e   : > { %v6930_v57 = vpop.f32.mrf.mxu0  ;;  %7113 = vmatmul.mubr.msk.bf16.gmra.mxu0 %vm422_vm0, %v4969_v48  ;;  %v6894_v62 = vpop.f32.mrf.mxu1  ;;  %7077 = vmatmul.mubr.msk.bf16.gmra.mxu1 %vm422_vm0, %v4435_v10  ;;  %v4975_v10 = vsel %vm4940_vm6, %v4972_v54, %v4974_v47 }
 0x14f   : > { %v8425_v18 = vadd.f32 %v6930_v57, %v2338_v20  ;;  %7116 = vmatprep.mubr.msk.bf16.mxu0 %vm422_vm0, %v4971_v3  ;;  %v2342_v16 = vadd.f32 %v6894_v62, %v8211_v51  ;;  %7080 = vmatprep.mubr.msk.bf16.mxu1 %vm422_vm0, %v4444_v38  ;;  %p7370_p12 = pnand %p7369_p11, %p7528_p5  ;;  %p7377_p2 = por %p7376_p1, %p7375_p0 }
 0x150   : > { %v2850_v31 = vpop.f32.mrf.mxu0  ;;  %v2209_v61 = vpop.f32.mrf.mxu1 }
 0x151   : > { %v8431_v26 = vadd.f32 %v2850_v31, %v2336_v42  ;;  %v2340_v32 = vadd.f32 %v2209_v61, %v8218_v19  ;;  %p7371_p13 = pneg %p7370_p12 }
 0x152   : > { %v6931_v20 = vpop.f32.mrf.mxu0  ;;  %v6895_v30 = vpop.f32.mrf.mxu1 }
 0x153   : > { %v8434_v63 = vadd.f32 %v6931_v20, %v2339_v37  ;;  %v2343_v7 = vadd.f32 %v6895_v30, %v8221_v6  ;;  %v4976_v6 = vrot.slane %v7367_v41, 3  ;;  %p7378_p3 = pnand %p7377_p2, %p7371_p13 }
 0x154   : > { %v2853_v51 = vpop.f32.mrf.mxu0  ;;  %v2212_v48 = vpop.f32.mrf.mxu1 }
 0x155   : > { %v8441_v12 = vadd.f32 %v2853_v51, %v2337_v55  ;;  %v2341_v42 = vadd.f32 %v2212_v48, %v8235_v52  ;;  %v4977_v38 = vsel %vm4940_vm6, %v4974_v47, %v4976_v6 }
 0x156   : > { %v6934_v19 = vpop.f32.mrf.mxu0  ;;  %7117 = vmatmul.mubr.msk.bf16.gmra.mxu0 %vm422_vm0, %v4973_v33  ;;  %v6898_v37 = vpop.f32.mrf.mxu1  ;;  %7081 = vmatmul.mubr.msk.bf16.gmra.mxu1 %vm422_vm0, %v4453_v34 }
 0x157   : > { %v8445_v2 = vadd.f32 %v6934_v19, %v2342_v16  ;;  %7120 = vmatprep.mubr.msk.bf16.mxu0 %vm422_vm0, %v4975_v10  ;;  %v2346_v28 = vadd.f32 %v6898_v37, %v8241_v36 }
 0x158   : > { %v2866_v59 = vpop.f32.mrf.mxu0  ;;  %v2225_v3 = vpop.f32.mrf.mxu1 }
 0x159   : > { %v8450_v9 = vadd.f32 %v2866_v59, %v2340_v32  ;;  %v2344_v53 = vadd.f32 %v2225_v3, %v8248_v43 }
 0x15a   : > { %v6935_v52 = vpop.f32.mrf.mxu0  ;;  %v6899_v11 = vpop.f32.mrf.mxu1 }
 0x15b   : > { %v8453_v1 = vadd.f32 %v6935_v52, %v2343_v7  ;;  %v2347_v55 = vadd.f32 %v6899_v11, %v8251_v49 }
 0x15c   : > { %v2869_v57 = vpop.f32.mrf.mxu0  ;;  %v2228_v62 = vpop.f32.mrf.mxu1 }
 0x15d   : > { %v8457_v54 = vadd.f32 %v2869_v57, %v2341_v42  ;;  %v2345_v36 = vadd.f32 %v2228_v62, %v8262_v27 }
 0x15e   : > { %v6938_v16 = vpop.f32.mrf.mxu0  ;;  %7121 = vmatmul.mubr.msk.bf16.gmra.mxu0 %vm422_vm0, %v4977_v38  ;;  %v6902_v31 = vpop.f32.mrf.mxu1 }
 0x15f   : > { %v8461_v17 = vadd.f32 %v6938_v16, %v2346_v28  ;;  %v2350_v43 = vadd.f32 %v6902_v31, %v8268_v35 }
 0x160   : > { %v2882_v61 = vpop.f32.mrf.mxu0  ;;  %v2241_v32 = vpop.f32.mrf.mxu1 }
 0x161   : > { %v8464_v20 = vadd.f32 %v2882_v61, %v2344_v53  ;;  %v2348_v49 = vadd.f32 %v2241_v32, %v8275_v29  ;;  %v8873_v61 = vld [vmem:[#allocation10_spill] sm:$0xff] }
 0x162   : > { %v6939_v47 = vpop.f32.mrf.mxu0  ;;  %v6903_v30 = vpop.f32.mrf.mxu1 }
 0x163   : > { %v8467_v33 = vadd.f32 %v6939_v47, %v2347_v55  ;;  %v2351_v27 = vadd.f32 %v6903_v30, %v8278_v39 }
 0x164   : > { %v2885_v41 = vpop.f32.mrf.mxu0  ;;  %v2244_v7 = vpop.f32.mrf.mxu1 }
 0x165   : > { %v8470_v51 = vadd.f32 %v2885_v41, %v2345_v36  ;;  %v2349_v34 = vadd.f32 %v2244_v7, %v8290_v46 }
 0x166   : > { %v6942_v10 = vpop.f32.mrf.mxu0  ;;  %v6906_v35 = vpop.f32.mrf.mxu1 }
 0x167   : > { %v8473_v48 = vadd.f32 %v6942_v10, %v2350_v43  ;;  %v2354_v42 = vadd.f32 %v6906_v35, %v8295_v0 }
 0x168   : > { %v2898_v19 = vpop.f32.mrf.mxu0  ;;  %v2257_v29 = vpop.f32.mrf.mxu1 }
 0x169   : > { %v8476_v37 = vadd.f32 %v2898_v19, %v2348_v49  ;;  %v2352_v6 = vadd.f32 %v2257_v29, %v8301_v8 }
 0x16a   : > { %v6943_v28 = vpop.f32.mrf.mxu0  ;;  %v6907_v39 = vpop.f32.mrf.mxu1 }
 0x16b   : > { %v8479_v59 = vadd.f32 %v6943_v28, %v2351_v27  ;;  %v2355_v3 = vadd.f32 %v6907_v39, %v8304_v56 }
 0x16c   : > { %v2901_v53 = vpop.f32.mrf.mxu0  ;;  %v2260_v46 = vpop.f32.mrf.mxu1 }
 0x16d   : > { %v8482_v52 = vadd.f32 %v2901_v53, %v2349_v34  ;;  %v2353_v11 = vadd.f32 %v2260_v46, %v8314_v45 }
 0x16e   : > { %v6946_v38 = vpop.f32.mrf.mxu0  ;;  %v6910_v0 = vpop.f32.mrf.mxu1 }
 0x16f   : > { %v8485_v55 = vadd.f32 %v6946_v38, %v2354_v42  ;;  %v2358_v57 = vadd.f32 %v6910_v0, %v8320_v14 }
 0x170   : > { %v2914_v62 = vpop.f32.mrf.mxu0  ;;  %v2273_v8 = vpop.f32.mrf.mxu1 }
 0x171   : > { %v8488_v36 = vadd.f32 %v2914_v62, %v2352_v6  ;;  %v2356_v16 = vadd.f32 %v2273_v8, %v8327_v24 }
 0x172   : > { %v6947_v31 = vpop.f32.mrf.mxu0  ;;  %v6911_v56 = vpop.f32.mrf.mxu1 }
 0x173   : > { %v8491_v43 = vadd.f32 %v6947_v31, %v2355_v3  ;;  %v2359_v32 = vadd.f32 %v6911_v56, %v8873_v61 }
 0x174   : > { %v2917_v49 = vpop.f32.mrf.mxu0  ;;  %v2276_v45 = vpop.f32.mrf.mxu1 }
 0x175   : > { %v8494_v47 = vadd.f32 %v2917_v49, %v2353_v11  ;;  %v2357_v30 = vadd.f32 %v2276_v45, %v8343_v25 }
 0x176   : > { %v6950_v27 = vpop.f32.mrf.mxu0  ;;  %v6914_v14 = vpop.f32.mrf.mxu1 }
 0x177   : > { %v8497_v41 = vadd.f32 %v6950_v27, %v2358_v57  ;;  %v2362_v7 = vadd.f32 %v6914_v14, %v8347_v40 }
 0x178   : > { %v2930_v34 = vpop.f32.mrf.mxu0  ;;  %v2289_v24 = vpop.f32.mrf.mxu1 }
 0x179   : > { %v8500_v10 = vadd.f32 %v2930_v34, %v2356_v16  ;;  %v2360_v35 = vadd.f32 %v2289_v24, %v8354_v22 }
 0x17a   : > { %v6951_v42 = vpop.f32.mrf.mxu0  ;;  %v6915_v19 = vpop.f32.mrf.mxu1 }
 0x17b   : > { %v8503_v29 = vadd.f32 %v6951_v42, %v2359_v32  ;;  %v2363_v6 = vadd.f32 %v6915_v19, %v8359_v15 }
 0x17c   : > { %v2933_v28 = vpop.f32.mrf.mxu0  ;;  %v2292_v25 = vpop.f32.mrf.mxu1 }
 0x17d   : > { %v8506_v39 = vadd.f32 %v2933_v28, %v2357_v30  ;;  %v2361_v3 = vadd.f32 %v2292_v25, %v8368_v50 }
 0x17e   : > { %v6954_v53 = vpop.f32.mrf.mxu0  ;;  %v6918_v40 = vpop.f32.mrf.mxu1 }
 0x17f   : > { %v8509_v46 = vadd.f32 %v6954_v53, %v2362_v7  ;;  %v2366_v11 = vadd.f32 %v6918_v40, %v8374_v44 }
 0x180   : > { %v2946_v38 = vpop.f32.mrf.mxu0  ;;  %v2305_v22 = vpop.f32.mrf.mxu1 }
 0x181   : > { %v8512_v0 = vadd.f32 %v2946_v38, %v2360_v35  ;;  %v2364_v57 = vadd.f32 %v2305_v22, %v8381_v58 }
 0x182   : > { %v6955_v62 = vpop.f32.mrf.mxu0  ;;  %v6919_v15 = vpop.f32.mrf.mxu1 }
 0x183   : > { %v8515_v8 = vadd.f32 %v6955_v62, %v2363_v6  ;;  %v2367_v16 = vadd.f32 %v6919_v15, %v8385_v21 }
 0x184   : > { %v2949_v31 = vpop.f32.mrf.mxu0  ;;  %v2308_v50 = vpop.f32.mrf.mxu1 }
 0x185   : > { %v8518_v56 = vadd.f32 %v2949_v31, %v2361_v3  ;;  %v2365_v61 = vadd.f32 %v2308_v50, %v8396_v13 }
 0x186   : > { %v6958_v32 = vpop.f32.mrf.mxu0  ;;  %v6922_v44 = vpop.f32.mrf.mxu1 }
 0x187   : > { %v8521_v49 = vadd.f32 %v6958_v32, %v2366_v11  ;;  %v2370_v45 = vadd.f32 %v6922_v44, %v8400_v4 }
 0x188   : > { %v2962_v30 = vpop.f32.mrf.mxu0  ;;  %v2321_v58 = vpop.f32.mrf.mxu1 }
 0x189   : > { %v8524_v27 = vadd.f32 %v2962_v30, %v2364_v57  ;;  %v2368_v14 = vadd.f32 %v2321_v58, %v8408_v60 }
 0x18a   : > { %v6959_v7 = vpop.f32.mrf.mxu0  ;;  %v6923_v21 = vpop.f32.mrf.mxu1 }
 0x18b   : > { %v8527_v34 = vadd.f32 %v6959_v7, %v2367_v16  ;;  %v2371_v24 = vadd.f32 %v6923_v21, %v8412_v5 }
 0x18c   : > { %v2965_v35 = vpop.f32.mrf.mxu0  ;;  %v2324_v13 = vpop.f32.mrf.mxu1 }
 0x18d   : > { %v8530_v42 = vadd.f32 %v2965_v35, %v2365_v61  ;;  %v2369_v19 = vadd.f32 %v2324_v13, %v8420_v23 }
 0x18e   : > { %v6962_v6 = vpop.f32.mrf.mxu0  ;;  %v6970_v28 = vpop.f32.mrf.mxu1 }
 0x18f   : > { %v8533_v4 = vadd.f32 %v6962_v6, %v2370_v45  ;;  %v3519_v25 = vadd.f32 %v6970_v28, %v8425_v18 }
 0x190   : > { %v2978_v3 = vpop.f32.mrf.mxu0  ;;  %v3374_v53 = vpop.f32.mrf.mxu1 }
 0x191   : > { %v8536_v60 = vadd.f32 %v2978_v3, %v2368_v14  ;;  %v3517_v40 = vadd.f32 %v3374_v53, %v8431_v26 }
 0x192   : > { %v6963_v11 = vpop.f32.mrf.mxu0  ;;  %v6971_v38 = vpop.f32.mrf.mxu1 }
 0x193   : > { %v8539_v5 = vadd.f32 %v6963_v11, %v2371_v24  ;;  %v3520_v22 = vadd.f32 %v6971_v38, %v8434_v63 }
 0x194   : > { %v2981_v57 = vpop.f32.mrf.mxu0  ;;  %v3377_v62 = vpop.f32.mrf.mxu1 }
 0x195   : > { %v8542_v23 = vadd.f32 %v2981_v57, %v2369_v19  ;;  %v3518_v15 = vadd.f32 %v3377_v62, %v8441_v12 }
 0x196   : > { %v7010_v16 = vpop.f32.mrf.mxu0  ;;  %v6974_v18 = vpop.f32.mrf.mxu1 }
 0x197   : > { %v8545_v31 = vadd.f32 %v7010_v16, %v3519_v25  ;;  %v3523_v50 = vadd.f32 %v6974_v18, %v8445_v2 }
 0x198   : > { %v3897_v61 = vpop.f32.mrf.mxu0  ;;  %v3390_v26 = vpop.f32.mrf.mxu1 }
 0x199   : > { %v8548_v32 = vadd.f32 %v3897_v61, %v3517_v40  ;;  %v3521_v44 = vadd.f32 %v3390_v26, %v8450_v9 }
 0x19a   : > { %v7011_v45 = vpop.f32.mrf.mxu0  ;;  %v6975_v63 = vpop.f32.mrf.mxu1 }
 0x19b   : > { %v8551_v30 = vadd.f32 %v7011_v45, %v3520_v22  ;;  %v3524_v58 = vadd.f32 %v6975_v63, %v8453_v1 }
 0x19c   : > { %v3900_v14 = vpop.f32.mrf.mxu0  ;;  %v3393_v12 = vpop.f32.mrf.mxu1 }
 0x19d   : > { %v8554_v7 = vadd.f32 %v3900_v14, %v3518_v15  ;;  %v3522_v21 = vadd.f32 %v3393_v12, %v8457_v54 }
 0x19e   : > { %v7014_v24 = vpop.f32.mrf.mxu0  ;;  %v6978_v2 = vpop.f32.mrf.mxu1 }
 0x19f   : > { %v8557_v35 = vadd.f32 %v7014_v24, %v3523_v50  ;;  %v3527_v13 = vadd.f32 %v6978_v2, %v8461_v17 }
 0x1a0   : > { %v3913_v19 = vpop.f32.mrf.mxu0  ;;  %v3406_v9 = vpop.f32.mrf.mxu1 }
 0x1a1   : > { %v8560_v6 = vadd.f32 %v3913_v19, %v3521_v44  ;;  %v3525_v28 = vadd.f32 %v3406_v9, %v8464_v20 }
 0x1a2   : > { %v7015_v25 = vpop.f32.mrf.mxu0  ;;  %v6979_v1 = vpop.f32.mrf.mxu1 }
 0x1a3   : > { %v8563_v3 = vadd.f32 %v7015_v25, %v3524_v58  ;;  %v3528_v53 = vadd.f32 %v6979_v1, %v8467_v33 }
 0x1a4   : > { %v3916_v40 = vpop.f32.mrf.mxu0  ;;  %v3409_v54 = vpop.f32.mrf.mxu1 }
 0x1a5   : > { %v8566_v11 = vadd.f32 %v3916_v40, %v3522_v21  ;;  %v3526_v38 = vadd.f32 %v3409_v54, %v8470_v51 }
 0x1a6   : > { %v7018_v22 = vpop.f32.mrf.mxu0  ;;  %v6982_v17 = vpop.f32.mrf.mxu1 }
 0x1a7   : > { %v8569_v57 = vadd.f32 %v7018_v22, %v3527_v13  ;;  %v3531_v62 = vadd.f32 %v6982_v17, %v8473_v48 }
 0x1a8   : > { %v3929_v15 = vpop.f32.mrf.mxu0  ;;  %v3422_v20 = vpop.f32.mrf.mxu1 }
 0x1a9   : > { %v8572_v16 = vadd.f32 %v3929_v15, %v3525_v28  ;;  %v3529_v18 = vadd.f32 %v3422_v20, %v8476_v37 }
 0x1aa   : > { %v7019_v50 = vpop.f32.mrf.mxu0  ;;  %v6983_v33 = vpop.f32.mrf.mxu1 }
 0x1ab   : > { %v8575_v61 = vadd.f32 %v7019_v50, %v3528_v53  ;;  %v3532_v26 = vadd.f32 %v6983_v33, %v8479_v59 }
 0x1ac   : > { %v3932_v44 = vpop.f32.mrf.mxu0  ;;  %v3425_v51 = vpop.f32.mrf.mxu1 }
 0x1ad   : > { %v8578_v45 = vadd.f32 %v3932_v44, %v3526_v38  ;;  %v3530_v63 = vadd.f32 %v3425_v51, %v8482_v52 }
 0x1ae   : > { %v7022_v58 = vpop.f32.mrf.mxu0  ;;  %v6986_v48 = vpop.f32.mrf.mxu1 }
 0x1af   : > { %v8581_v14 = vadd.f32 %v7022_v58, %v3531_v62  ;;  %v3535_v12 = vadd.f32 %v6986_v48, %v8485_v55 }
 0x1b0   : > { %v3945_v21 = vpop.f32.mrf.mxu0  ;;  %v3438_v37 = vpop.f32.mrf.mxu1 }
 0x1b1   : > { %v8584_v24 = vadd.f32 %v3945_v21, %v3529_v18  ;;  %v3533_v2 = vadd.f32 %v3438_v37, %v8488_v36 }
 0x1b2   : > { %v7023_v13 = vpop.f32.mrf.mxu0  ;;  %v6987_v59 = vpop.f32.mrf.mxu1 }
 0x1b3   : > { %v8587_v19 = vadd.f32 %v7023_v13, %v3532_v26  ;;  %v3536_v9 = vadd.f32 %v6987_v59, %v8491_v43  ;;  %v8606_v26 = vpop.permute.xlu1 %5377 }
 0x1b4   : > { %v3948_v28 = vpop.f32.mrf.mxu0  ;;  %v3441_v52 = vpop.f32.mrf.mxu1 }
 0x1b5   : > { %v8590_v25 = vadd.f32 %v3948_v28, %v3530_v63  ;;  %v3534_v1 = vadd.f32 %v3441_v52, %v8494_v47  ;;  %v8602_v47 = vpop.permute.xlu0 %5367 }
 0x1b6   : > { %v7026_v53 = vpop.f32.mrf.mxu0  ;;  %v6990_v55 = vpop.f32.mrf.mxu1 }
 0x1b7   : > { %v8593_v40 = vadd.f32 %v7026_v53, %v3535_v12  ;;  %v3539_v54 = vadd.f32 %v6990_v55, %v8497_v41  ;;  %v8619_v59 = vpop.permute.xlu1 %5382 }
 0x1b8   : > { %v3961_v38 = vpop.f32.mrf.mxu0  ;;  %v3454_v36 = vpop.f32.mrf.mxu1 }
 0x1b9   : > { %v8596_v22 = vadd.f32 %v3961_v38, %v3533_v2  ;;  %v3537_v17 = vadd.f32 %v3454_v36, %v8500_v10  ;;  %v8615_v37 = vpop.permute.xlu0 %5372 }
 0x1ba   : > { %v7027_v62 = vpop.f32.mrf.mxu0  ;;  %v6991_v43 = vpop.f32.mrf.mxu1 }
 0x1bb   : > { %v8599_v15 = vadd.f32 %v7027_v62, %v3536_v9  ;;  %v3540_v20 = vadd.f32 %v6991_v43, %v8503_v29  ;;  %v8632_v62 = vpop.permute.xlu1 %5392 }
 0x1bc   : > { %v3964_v18 = vpop.f32.mrf.mxu0  ;;  %v3457_v50 = vpop.f32.mrf.mxu1 }
 0x1bd   : > { %v8604_v33 = vadd.f32 %v3964_v18, %v3534_v1  ;;  %v3538_v41 = vadd.f32 %v3457_v50, %v8506_v39  ;;  %v8628_v38 = vpop.permute.xlu0 %5387 }
 0x1be   : > { %v7030_v44 = vpop.f32.mrf.mxu0  ;;  %v6994_v51 = vpop.f32.mrf.mxu1 }
 0x1bf   : > { %v8609_v63 = vadd.f32 %v7030_v44, %v3539_v54  ;;  %v3543_v10 = vadd.f32 %v6994_v51, %v8509_v46 }
 0x1c0   : > { %v3977_v58 = vpop.f32.mrf.mxu0  ;;  %v3470_v48 = vpop.f32.mrf.mxu1 }
 0x1c1   : > { %v8612_v12 = vadd.f32 %v3977_v58, %v3537_v17  ;;  %v3541_v29 = vadd.f32 %v3470_v48, %v8512_v0 }
 0x1c2   : > { %v7031_v21 = vpop.f32.mrf.mxu0  ;;  %v6995_v2 = vpop.f32.mrf.mxu1 }
 0x1c3   : > { %v8617_v13 = vadd.f32 %v7031_v21, %v3540_v20  ;;  %v3544_v39 = vadd.f32 %v6995_v2, %v8515_v8 }
 0x1c4   : > { %v3980_v9 = vpop.f32.mrf.mxu0  ;;  %v3473_v28 = vpop.f32.mrf.mxu1 }
 0x1c5   : > { %v8622_v52 = vadd.f32 %v3980_v9, %v3538_v41  ;;  %v3542_v46 = vadd.f32 %v3473_v28, %v8518_v56 }
 0x1c6   : > { %v7034_v1 = vpop.f32.mrf.mxu0  ;;  %v6998_v53 = vpop.f32.mrf.mxu1 }
 0x1c7   : > { %v8625_v55 = vadd.f32 %v7034_v1, %v3543_v10  ;;  %v3547_v0 = vadd.f32 %v6998_v53, %v8521_v49  ;;  %v8641_v10 = vpop.permute.xlu0 %5397 }
 0x1c8   : > { %v3993_v54 = vpop.f32.mrf.mxu0  ;;  %v3486_v36 = vpop.f32.mrf.mxu1 }
 0x1c9   : > { %v8630_v17 = vadd.f32 %v3993_v54, %v3541_v29  ;;  %v3545_v8 = vadd.f32 %v3486_v36, %v8524_v27  ;;  %v8645_v29 = vpop.permute.xlu1 %5402 }
 0x1ca   : > { %v7035_v43 = vpop.f32.mrf.mxu0  ;;  %v6999_v20 = vpop.f32.mrf.mxu1 }
 0x1cb   : > { %v8635_v18 = vadd.f32 %v7035_v43, %v3544_v39  ;;  %v3548_v56 = vadd.f32 %v6999_v20, %v8527_v34  ;;  %v8654_v53 = vpop.permute.xlu0 %5407 }
 0x1cc   : > { %v3996_v50 = vpop.f32.mrf.mxu0  ;;  %v3489_v41 = vpop.f32.mrf.mxu1 }
 0x1cd   : > { %v8638_v44 = vadd.f32 %v3996_v50, %v3542_v46  ;;  %v3546_v49 = vadd.f32 %v3489_v41, %v8530_v42  ;;  %v8658_v36 = vpop.permute.xlu1 %5412 }
 0x1ce   : > { %v7038_v51 = vpop.f32.mrf.mxu0  ;;  %v7002_v58 = vpop.f32.mrf.mxu1 }
 0x1cf   : > { %v8643_v48 = vadd.f32 %v7038_v51, %v3547_v0  ;;  %v3551_v27 = vadd.f32 %v7002_v58, %v8533_v4  ;;  %v8665_v41 = vpop.permute.xlu0 %5417 }
 0x1d0   : > { %v4009_v21 = vpop.f32.mrf.mxu0  ;;  %v3502_v2 = vpop.f32.mrf.mxu1 }
 0x1d1   : > { %v8648_v39 = vadd.f32 %v4009_v21, %v3545_v8  ;;  %v3549_v34 = vadd.f32 %v3502_v2, %v8536_v60  ;;  %v8669_v58 = vpop.permute.xlu1 %5422 }
 0x1d2   : > { %v7039_v9 = vpop.f32.mrf.mxu0  ;;  %v7003_v28 = vpop.f32.mrf.mxu1 }
 0x1d3   : > { %v8651_v46 = vadd.f32 %v7039_v9, %v3548_v56  ;;  %v3552_v42 = vadd.f32 %v7003_v28, %v8539_v5 }
 0x1d4   : > { %v4012_v1 = vpop.f32.mrf.mxu0  ;;  %v3505_v0 = vpop.f32.mrf.mxu1 }
 0x1d5   : > { %v8656_v54 = vadd.f32 %v4012_v1, %v3546_v49  ;;  %v3550_v4 = vadd.f32 %v3505_v0, %v8542_v23  ;;  %v8678_v0 = vpop.permute.xlu0 %5427 }
 0x1d6   : > { %v7042_v8 = vpop.f32.mrf.mxu0  ;;  %v7050_v60 = vpop.f32.mrf.mxu1 }
 0x1d7   : > { %8874 = vst [vmem:[#allocation9_spill] sm:$0xff] %v8656_v54  ;;  %v8661_v43 = vadd.f32 %v7042_v8, %v3551_v27  ;;  %v4699_v9 = vadd.f32 %v7050_v60, %v8545_v31 }
 0x1d8   : > { %v4025_v20 = vpop.f32.mrf.mxu0  ;;  %v4554_v50 = vpop.f32.mrf.mxu1 }
 0x1d9   : > { %8875 = vst [vmem:[#allocation10_spill] sm:$0xff] %v8661_v43  ;;  %v8663_v56 = vadd.f32 %v4025_v20, %v3549_v34  ;;  %v4697_v28 = vadd.f32 %v4554_v50, %v8548_v32 }
 0x1da   : > { %v7043_v5 = vpop.f32.mrf.mxu0  ;;  %v7051_v49 = vpop.f32.mrf.mxu1 }
 0x1db   : > { %8876 = vst [vmem:[#allocation11_spill] sm:$0xff] %v8663_v56  ;;  %v8667_v51 = vadd.f32 %v7043_v5, %v3552_v42  ;;  %v4700_v42 = vadd.f32 %v7051_v49, %v8551_v30 }
 0x1dc   : > { %v4028_v21 = vpop.f32.mrf.mxu0  ;;  %v4557_v23 = vpop.f32.mrf.mxu1 }
 0x1dd   : > { %8877 = vst [vmem:[#allocation12_spill] sm:$0xff] %v8667_v51  ;;  %v8671_v2 = vadd.f32 %v4028_v21, %v3550_v4  ;;  %v8681_v4 = vpop.permute.xlu1 %5432  ;;  %v4698_v31 = vadd.f32 %v4557_v23, %v8554_v7 }
 0x1de   : > { %v7090_v27 = vpop.f32.mrf.mxu0  ;;  %v7054_v34 = vpop.f32.mrf.mxu1 }
 0x1df   : > { %8878 = vst [vmem:[#allocation13_spill] sm:$0xff] %v8671_v2  ;;  %v5223_v8 = vadd.f32 %v7090_v27, %v4699_v9  ;;  %v4703_v49 = vadd.f32 %v7054_v34, %v8557_v35  ;;  %v8689_v9 = vpop.permute.xlu0 %5437 }
 0x1e0   : > { %v5078_v1 = vpop.f32.mrf.mxu0  ;;  %v4570_v20 = vpop.f32.mrf.mxu1 }
 0x1e1   : > { %v5221_v5 = vadd.f32 %v5078_v1, %v4697_v28  ;;  %v5547_v2 = vmul.f32 %v8606_v26, %v5223_v8  ;;  %v8692_v23 = vpop.permute.xlu1 %5442 }
 0x1e2   : > { %v7091_v21 = vpop.f32.mrf.mxu0  ;;  %v7055_v60 = vpop.f32.mrf.mxu1 }
 0x1e3   : > { %v5224_v32 = vadd.f32 %v7091_v21, %v4700_v42  ;;  %v5545_v51 = vmul.f32 %v8602_v47, %v5221_v5  ;;  %v4701_v42 = vadd.f32 %v4570_v20, %v8560_v6  ;;  %v4704_v26 = vadd.f32 %v7055_v60, %v8563_v3  ;;  %v8703_v54 = vpop.permute.xlu0 %5447 }
 0x1e4   : > { %v5081_v50 = vpop.f32.mrf.mxu0  ;;  %v4573_v43 = vpop.f32.mrf.mxu1 }
 0x1e5   : > { %v5548_v56 = vmul.f32 %v8619_v59, %v5224_v32  ;;  %v5222_v30 = vadd.f32 %v5081_v50, %v4698_v31  ;;  %v5802_v59 = vmul.f32 %v5545_v51, %v5545_v51  ;;  %v4702_v50 = vadd.f32 %v4573_v43, %v8566_v11  ;;  %v8706_v43 = vpop.permute.xlu1 %5452 }
 0x1e6   : > { %v7094_v27 = vpop.f32.mrf.mxu0  ;;  %v7058_v7 = vpop.f32.mrf.mxu1 }
 0x1e7   : > { %v6485_v28 = vpack.c.bf16 %v5548_v56, %v5547_v2  ;;  %v5546_v1 = vmul.f32 %v8615_v37, %v5222_v30  ;;  %v5227_v47 = vadd.f32 %v7094_v27, %v4703_v49  ;;  %v5804_v37 = vmul.f32 %v5547_v2, %v5547_v2 }
 0x1e8   : > { %v5094_v8 = vpop.f32.mrf.mxu0  ;;  %v4586_v21 = vpop.f32.mrf.mxu1  ;;  %v5805_v30 = vmul.f32 %v5548_v56, %v5548_v56 }
 0x1e9   : > { %6567 = vst [vmem:[%s8696_s28 + $0x8] sm:$0xff] %v6485_v28   ;;  %v6480_v35 = vpack.c.bf16 %v5546_v1, %v5545_v51  ;;  %v5761_v34 = vadd.f32 %v5546_v1, %v5545_v51  ;;  %v5803_v5 = vmul.f32 %v5546_v1, %v5546_v1  ;;  %v5225_v31 = vadd.f32 %v5094_v8, %v4701_v42 }
 0x1ea   : > { %v7095_v32 = vpop.f32.mrf.mxu0  ;;  %v7059_v20 = vpop.f32.mrf.mxu1  ;;  %v5551_v49 = vmul.f32 %v8641_v10, %v5227_v47 }
 0x1eb   : > { %6481 = vst [vmem:[%s8696_s28] sm:$0xff] %v6480_v35   ;;  %v5762_v6 = vadd.f32 %v5761_v34, %v5547_v2  ;;  %v5838_v3 = vadd.f32 %v5803_v5, %v5802_v59  ;;  %v5228_v60 = vadd.f32 %v7095_v32, %v4704_v26  ;;  %v5549_v27 = vmul.f32 %v8628_v38, %v5225_v31 }
 0x1ec   : > { %v5097_v28 = vpop.f32.mrf.mxu0  ;;  %v4589_v8 = vpop.f32.mrf.mxu1  ;;  %v4707_v2 = vadd.f32 %v7058_v7, %v8569_v57  ;;  %v4705_v26 = vadd.f32 %v4586_v21, %v8572_v16 }
 0x1ed   : > { %v5839_v51 = vadd.f32 %v5838_v3, %v5804_v37  ;;  %v5763_v1 = vadd.f32 %v5762_v6, %v5548_v56  ;;  %v5552_v42 = vmul.f32 %v8645_v29, %v5228_v60  ;;  %v5226_v11 = vadd.f32 %v5097_v28, %v4702_v50  ;;  %v8713_v6 = vpop.permute.xlu0 %5457 }
 0x1ee   : > { %v7098_v59 = vpop.f32.mrf.mxu0  ;;  %v5806_v47 = vmul.f32 %v5549_v27, %v5549_v27  ;;  %v7062_v34 = vpop.f32.mrf.mxu1  ;;  %v4708_v29 = vadd.f32 %v7059_v20, %v8575_v61  ;;  %v4706_v3 = vadd.f32 %v4589_v8, %v8578_v45  ;;  %v5808_v28 = vmul.f32 %v5551_v49, %v5551_v49 }
 0x1ef   : > { %v5764_v10 = vadd.f32 %v5763_v1, %v5549_v27  ;;  %v5840_v38 = vadd.f32 %v5839_v51, %v5805_v30  ;;  %v6495_v35 = vpack.c.bf16 %v5552_v42, %v5551_v49  ;;  %v5550_v5 = vmul.f32 %v8632_v62, %v5226_v11  ;;  %v8716_v62 = vpop.permute.xlu1 %5462 }
 0x1f0   : > { %v5110_v56 = vpop.f32.mrf.mxu0  ;;  %v5231_v31 = vadd.f32 %v7098_v59, %v4707_v2  ;;  %v4602_v32 = vpop.f32.mrf.mxu1  ;;  %v5809_v59 = vmul.f32 %v5552_v42, %v5552_v42 }
 0x1f1   : > { %v5841_v37 = vadd.f32 %v5840_v38, %v5806_v47  ;;  %6569 = vst [vmem:[%s8696_s28 + $0x18] sm:$0xff] %v6495_v35   ;;  %v5229_v50 = vadd.f32 %v5110_v56, %v4705_v26  ;;  %v6490_v57 = vpack.c.bf16 %v5550_v5, %v5549_v27  ;;  %v5765_v7 = vadd.f32 %v5764_v10, %v5550_v5 }
 0x1f2   : > { %v5807_v16 = vmul.f32 %v5550_v5, %v5550_v5  ;;  %v7099_v21 = vpop.f32.mrf.mxu0  ;;  %v7063_v60 = vpop.f32.mrf.mxu1  ;;  %v5555_v27 = vmul.f32 %v8665_v41, %v5231_v31  ;;  %v4711_v47 = vadd.f32 %v7062_v34, %v8581_v14  ;;  %v4709_v38 = vadd.f32 %v4602_v32, %v8584_v24 }
 0x1f3   : > { %v5232_v30 = vadd.f32 %v7099_v21, %v4708_v29  ;;  %6568 = vst [vmem:[%s8696_s28 + $0x10] sm:$0xff] %v6490_v57   ;;  %v5766_v51 = vadd.f32 %v5765_v7, %v5551_v49  ;;  %v5553_v20 = vmul.f32 %v8654_v53, %v5229_v50  ;;  %v8726_v29 = vpop.permute.xlu0 %5467  ;;  %v8729_v24 = vpop.permute.xlu1 %5472 }
 0x1f4   : > { %v5842_v61 = vadd.f32 %v5841_v37, %v5807_v16  ;;  %v5113_v1 = vpop.f32.mrf.mxu0  ;;  %v4605_v2 = vpop.f32.mrf.mxu1 }
 0x1f5   : > { %v5556_v11 = vmul.f32 %v8669_v58, %v5232_v30  ;;  %v5230_v26 = vadd.f32 %v5113_v1, %v4706_v3  ;;  %v5767_v8 = vadd.f32 %v5766_v51, %v5552_v42  ;;  %v5810_v56 = vmul.f32 %v5553_v20, %v5553_v20 }
 0x1f6   : > { %v5843_v45 = vadd.f32 %v5842_v61, %v5808_v28  ;;  %v7102_v10 = vpop.f32.mrf.mxu0  ;;  %v7066_v53 = vpop.f32.mrf.mxu1  ;;  %v4712_v58 = vadd.f32 %v7063_v60, %v8587_v19  ;;  %v4710_v7 = vadd.f32 %v4605_v2, %v8590_v25  ;;  %v5812_v19 = vmul.f32 %v5555_v27, %v5555_v27 }
 0x1f7   : > { %v6505_v49 = vpack.c.bf16 %v5556_v11, %v5555_v27  ;;  %v5554_v35 = vmul.f32 %v8658_v36, %v5230_v26  ;;  %v5768_v5 = vadd.f32 %v5767_v8, %v5553_v20  ;;  %v5235_v50 = vadd.f32 %v7102_v10, %v4711_v47  ;;  %v8736_v2 = vpop.permute.xlu0 %5477 }
 0x1f8   : > { %v5844_v41 = vadd.f32 %v5843_v45, %v5809_v59  ;;  %v5126_v37 = vpop.f32.mrf.mxu0  ;;  %v4618_v14 = vpop.f32.mrf.mxu1  ;;  %v5813_v26 = vmul.f32 %v5556_v11, %v5556_v11  ;;  %v4715_v8 = vadd.f32 %v7066_v53, %v8593_v40 }
 0x1f9   : > { %6571 = vst [vmem:[%s8696_s28 + $0x28] sm:$0xff] %v6505_v49   ;;  %v6500_v42 = vpack.c.bf16 %v5554_v35, %v5553_v20  ;;  %v5811_v31 = vmul.f32 %v5554_v35, %v5554_v35  ;;  %v5233_v34 = vadd.f32 %v5126_v37, %v4709_v38  ;;  %v5769_v36 = vadd.f32 %v5768_v5, %v5554_v35 }
 0x1fa   : > { %v5845_v32 = vadd.f32 %v5844_v41, %v5810_v56  ;;  %v7103_v57 = vpop.f32.mrf.mxu0  ;;  %v7067_v16 = vpop.f32.mrf.mxu1  ;;  %v5559_v51 = vmul.f32 %v8689_v9, %v5235_v50 }
 0x1fb   : > { %6570 = vst [vmem:[%s8696_s28 + $0x20] sm:$0xff] %v6500_v42   ;;  %v5236_v21 = vadd.f32 %v7103_v57, %v4712_v58  ;;  %v5770_v3 = vadd.f32 %v5769_v36, %v5555_v27  ;;  %v5557_v30 = vmul.f32 %v8678_v0, %v5233_v34  ;;  %v4713_v27 = vadd.f32 %v4618_v14, %v8596_v22  ;;  %v8741_v9 = vpop.permute.xlu1 %5482  ;;  %v8748_v36 = vpop.permute.xlu0 %5487 }
 0x1fc   : > { %v5846_v60 = vadd.f32 %v5845_v32, %v5811_v31  ;;  %v5129_v28 = vpop.f32.mrf.mxu0  ;;  %v4621_v20 = vpop.f32.mrf.mxu1  ;;  %v4716_v35 = vadd.f32 %v7067_v16, %v8599_v15  ;;  %v5816_v50 = vmul.f32 %v5559_v51, %v5559_v51 }
 0x1fd   : > { %v5560_v61 = vmul.f32 %v8692_v23, %v5236_v21  ;;  %v5234_v1 = vadd.f32 %v5129_v28, %v4710_v7  ;;  %v5771_v45 = vadd.f32 %v5770_v3, %v5556_v11  ;;  %v5814_v38 = vmul.f32 %v5557_v30, %v5557_v30 }
 0x1fe   : > { %v5847_v59 = vadd.f32 %v5846_v60, %v5812_v19  ;;  %v7106_v25 = vpop.f32.mrf.mxu0  ;;  %v7070_v47 = vpop.f32.mrf.mxu1 }
 0x1ff   : > { %v6515_v10 = vpack.c.bf16 %v5560_v61, %v5559_v51  ;;  %v5558_v0 = vmul.f32 %v8681_v4, %v5234_v1  ;;  %v5772_v23 = vadd.f32 %v5771_v45, %v5557_v30  ;;  %v5239_v41 = vadd.f32 %v7106_v25, %v4715_v8  ;;  %v8752_v19 = vpop.permute.xlu1 %5492 }
 0x200   : > { %v5848_v49 = vadd.f32 %v5847_v59, %v5813_v26  ;;  %v5142_v11 = vpop.f32.mrf.mxu0  ;;  %v4634_v40 = vpop.f32.mrf.mxu1  ;;  %v4714_v4 = vadd.f32 %v4621_v20, %v8604_v33  ;;  %v5817_v33 = vmul.f32 %v5560_v61, %v5560_v61  ;;  %v4719_v28 = vadd.f32 %v7070_v47, %v8609_v63 }
 0x201   : > { %6573 = vst [vmem:[%s8696_s28 + $0x38] sm:$0xff] %v6515_v10   ;;  %v6510_v5 = vpack.c.bf16 %v5558_v0, %v5557_v30  ;;  %v5815_v56 = vmul.f32 %v5558_v0, %v5558_v0  ;;  %v5237_v53 = vadd.f32 %v5142_v11, %v4713_v27  ;;  %v5773_v58 = vadd.f32 %v5772_v23, %v5558_v0  ;;  %v5498_v47 = vpop.permute.xlu0 %5497 }
 0x202   : > { %v5849_v22 = vadd.f32 %v5848_v49, %v5814_v38  ;;  %v7107_v37 = vpop.f32.mrf.mxu0  ;;  %v7071_v42 = vpop.f32.mrf.mxu1  ;;  %v5563_v57 = vmul.f32 %v8713_v6, %v5239_v41 }
 0x203   : > { %6572 = vst [vmem:[%s8696_s28 + $0x30] sm:$0xff] %v6510_v5   ;;  %v5240_v31 = vadd.f32 %v7107_v37, %v4716_v35  ;;  %v5774_v14 = vadd.f32 %v5773_v58, %v5559_v51  ;;  %v5561_v15 = vmul.f32 %v8703_v54, %v5237_v53  ;;  %v4717_v54 = vadd.f32 %v4634_v40, %v8612_v12  ;;  %v5503_v49 = vpop.permute.xlu1 %5502 }
 0x204   : > { %v5850_v34 = vadd.f32 %v5849_v22, %v5815_v56  ;;  %v5145_v32 = vpop.f32.mrf.mxu0  ;;  %v4637_v16 = vpop.f32.mrf.mxu1  ;;  %v4720_v59 = vadd.f32 %v7071_v42, %v8617_v13  ;;  %v5820_v35 = vmul.f32 %v5563_v57, %v5563_v57 }
 0x205   : > { %v5564_v7 = vmul.f32 %v8716_v62, %v5240_v31  ;;  %v5238_v21 = vadd.f32 %v5145_v32, %v4714_v4  ;;  %v5775_v60 = vadd.f32 %v5774_v14, %v5560_v61  ;;  %v5818_v62 = vmul.f32 %v5561_v15, %v5561_v15 }
 0x206   : > { %v5851_v3 = vadd.f32 %v5850_v34, %v5816_v50  ;;  %v7110_v30 = vpop.f32.mrf.mxu0  ;;  %v7074_v1 = vpop.f32.mrf.mxu1 }
 0x207   : > { %v6525_v51 = vpack.c.bf16 %v5564_v7, %v5563_v57  ;;  %v5562_v20 = vmul.f32 %v8706_v43, %v5238_v21  ;;  %v5776_v6 = vadd.f32 %v5775_v60, %v5561_v15  ;;  %v5243_v61 = vadd.f32 %v7110_v30, %v4719_v28 }
 0x208   : > { %v5852_v26 = vadd.f32 %v5851_v3, %v5817_v33  ;;  %v5158_v45 = vpop.f32.mrf.mxu0  ;;  %v4650_v27 = vpop.f32.mrf.mxu1  ;;  %v4718_v43 = vadd.f32 %v4637_v16, %v8622_v52  ;;  %v5821_v58 = vmul.f32 %v5564_v7, %v5564_v7  ;;  %v4723_v42 = vadd.f32 %v7074_v1, %v8625_v55 }
 0x209   : > { %6575 = vst [vmem:[%s8696_s28 + $0x48] sm:$0xff] %v6525_v51   ;;  %v6520_v25 = vpack.c.bf16 %v5562_v20, %v5561_v15  ;;  %v5819_v8 = vmul.f32 %v5562_v20, %v5562_v20  ;;  %v5241_v10 = vadd.f32 %v5158_v45, %v4717_v54  ;;  %v5777_v0 = vadd.f32 %v5776_v6, %v5562_v20  ;;  %v8769_v3 = vpop.permute.xlu1 %5512 }
 0x20a   : > { %v5853_v63 = vadd.f32 %v5852_v26, %v5818_v62  ;;  %v7111_v12 = vpop.f32.mrf.mxu0  ;;  %v7075_v23 = vpop.f32.mrf.mxu1  ;;  %v5567_v41 = vmul.f32 %v8736_v2, %v5243_v61  ;;  %v4721_v31 = vadd.f32 %v4650_v27, %v8630_v17 }
 0x20b   : > { %6574 = vst [vmem:[%s8696_s28 + $0x40] sm:$0xff] %v6520_v25   ;;  %v5244_v38 = vadd.f32 %v7111_v12, %v4720_v59  ;;  %v5778_v11 = vadd.f32 %v5777_v0, %v5563_v57  ;;  %v5565_v5 = vmul.f32 %v8726_v29, %v5241_v10  ;;  %v5508_v57 = vpop.permute.xlu0 %5507 }
 0x20c   : > { %v5854_v13 = vadd.f32 %v5853_v63, %v5819_v8  ;;  %v5161_v56 = vpop.f32.mrf.mxu0  ;;  %v4653_v53 = vpop.f32.mrf.mxu1  ;;  %v5824_v51 = vmul.f32 %v5567_v41, %v5567_v41 }
 0x20d   : > { %v5568_v40 = vmul.f32 %v8741_v9, %v5244_v38  ;;  %v5242_v22 = vadd.f32 %v5161_v56, %v4718_v43  ;;  %v5779_v52 = vadd.f32 %v5778_v11, %v5564_v7  ;;  %v5822_v15 = vmul.f32 %v5565_v5, %v5565_v5 }
 0x20e   : > { %v5855_v37 = vadd.f32 %v5854_v13, %v5820_v35  ;;  %v7114_v4 = vpop.f32.mrf.mxu0  ;;  %v7078_v29 = vpop.f32.mrf.mxu1  ;;  %v4724_v9 = vadd.f32 %v7075_v23, %v8635_v18  ;;  %v4722_v30 = vadd.f32 %v4653_v53, %v8638_v44  ;;  %v8879_v53 = vld [vmem:[#allocation9_spill] sm:$0xff] }
 0x20f   : > { %v6535_v50 = vpack.c.bf16 %v5568_v40, %v5567_v41  ;;  %v5566_v14 = vmul.f32 %v8729_v24, %v5242_v22  ;;  %v5780_v34 = vadd.f32 %v5779_v52, %v5565_v5  ;;  %v5247_v21 = vadd.f32 %v7114_v4, %v4723_v42  ;;  %v5518_v10 = vpop.permute.xlu0 %5517 }
 0x210   : > { %v5856_v2 = vadd.f32 %v5855_v37, %v5821_v58  ;;  %v5174_v32 = vpop.f32.mrf.mxu0  ;;  %v4666_v33 = vpop.f32.mrf.mxu1  ;;  %v5825_v25 = vmul.f32 %v5568_v40, %v5568_v40  ;;  %v4727_v44 = vadd.f32 %v7078_v29, %v8643_v48 }
 0x211   : > { %6577 = vst [vmem:[%s8696_s28 + $0x58] sm:$0xff] %v6535_v50   ;;  %v6530_v16 = vpack.c.bf16 %v5566_v14, %v5565_v5  ;;  %v5823_v7 = vmul.f32 %v5566_v14, %v5566_v14  ;;  %v5245_v55 = vadd.f32 %v5174_v32, %v4721_v31  ;;  %v5781_v60 = vadd.f32 %v5780_v34, %v5566_v14 }
 0x212   : > { %v5857_v17 = vadd.f32 %v5856_v2, %v5822_v15  ;;  %v7115_v24 = vpop.f32.mrf.mxu0  ;;  %v7079_v28 = vpop.f32.mrf.mxu1  ;;  %v5571_v62 = vmul.f32 %v5498_v47, %v5247_v21  ;;  %v4725_v63 = vadd.f32 %v4666_v33, %v8648_v39  ;;  %v8881_v21 = vld [vmem:[#allocation11_spill] sm:$0xff] }
 0x213   : > { %6576 = vst [vmem:[%s8696_s28 + $0x50] sm:$0xff] %v6530_v16   ;;  %v5248_v54 = vadd.f32 %v7115_v24, %v4724_v9  ;;  %v5782_v18 = vadd.f32 %v5781_v60, %v5567_v41  ;;  %v5569_v1 = vmul.f32 %v8748_v36, %v5245_v55  ;;  %v5523_v36 = vpop.permute.xlu1 %5522  ;;  %v5528_v31 = vpop.permute.xlu0 %5527  ;;  %v8880_v16 = vld [vmem:[#allocation10_spill] sm:$0xff] }
 0x214   : > { %v5858_v20 = vadd.f32 %v5857_v17, %v5823_v7  ;;  %v5177_v6 = vpop.f32.mrf.mxu0  ;;  %v4669_v59 = vpop.f32.mrf.mxu1  ;;  %v5828_v58 = vmul.f32 %v5571_v62, %v5571_v62 }
 0x215   : > { %v5572_v26 = vmul.f32 %v5503_v49, %v5248_v54  ;;  %v5246_v45 = vadd.f32 %v5177_v6, %v4722_v30  ;;  %v5783_v61 = vadd.f32 %v5782_v18, %v5568_v40  ;;  %v5826_v23 = vmul.f32 %v5569_v1, %v5569_v1  ;;  %v8882_v30 = vld [vmem:[#allocation12_spill] sm:$0xff] }
 0x216   : > { %v5859_v8 = vadd.f32 %v5858_v20, %v5824_v51  ;;  %v7118_v27 = vpop.f32.mrf.mxu0  ;;  %v7082_v43 = vpop.f32.mrf.mxu1  ;;  %v4728_v49 = vadd.f32 %v7079_v28, %v8651_v46 }
 0x217   : > { %v6545_v0 = vpack.c.bf16 %v5572_v26, %v5571_v62  ;;  %v5570_v12 = vmul.f32 %v8752_v19, %v5246_v45  ;;  %v5784_v47 = vadd.f32 %v5783_v61, %v5569_v1  ;;  %v5251_v5 = vadd.f32 %v7118_v27, %v4727_v44  ;;  %v5533_v34 = vpop.permute.xlu1 %5532  ;;  %v5538_v45 = vpop.permute.xlu0 %5537 }
 0x218   : > { %v5860_v38 = vadd.f32 %v5859_v8, %v5825_v25  ;;  %v5190_v35 = vpop.f32.mrf.mxu0  ;;  %v4682_v56 = vpop.f32.mrf.mxu1  ;;  %v4726_v19 = vadd.f32 %v4669_v59, %v8879_v53  ;;  %v5829_v15 = vmul.f32 %v5572_v26, %v5572_v26  ;;  %v4731_v7 = vadd.f32 %v7082_v43, %v8880_v16 }
 0x219   : > { %6579 = vst [vmem:[%s8696_s28 + $0x68] sm:$0xff] %v6545_v0   ;;  %v6540_v11 = vpack.c.bf16 %v5570_v12, %v5569_v1  ;;  %v5827_v13 = vmul.f32 %v5570_v12, %v5570_v12  ;;  %v5249_v48 = vadd.f32 %v5190_v35, %v4725_v63  ;;  %v5785_v39 = vadd.f32 %v5784_v47, %v5570_v12 }
 0x21a   : > { %v5861_v41 = vadd.f32 %v5860_v38, %v5826_v23  ;;  %v7119_v40 = vpop.f32.mrf.mxu0  ;;  %v7083_v42 = vpop.f32.mrf.mxu1  ;;  %v5575_v50 = vmul.f32 %v5518_v10, %v5251_v5  ;;  %v4729_v33 = vadd.f32 %v4682_v56, %v8881_v21 }
 0x21b   : > { %6578 = vst [vmem:[%s8696_s28 + $0x60] sm:$0xff] %v6540_v11   ;;  %v5252_v22 = vadd.f32 %v7119_v40, %v4728_v49  ;;  %v5786_v37 = vadd.f32 %v5785_v39, %v5571_v62  ;;  %v5573_v4 = vmul.f32 %v5508_v57, %v5249_v48  ;;  %v4732_v28 = vadd.f32 %v7083_v42, %v8882_v30  ;;  %v5543_v61 = vpop.permute.xlu1 %5542 }
 0x21c   : > { %v5862_v52 = vadd.f32 %v5861_v41, %v5827_v13  ;;  %v5193_v46 = vpop.f32.mrf.mxu0  ;;  %v4685_v54 = vpop.f32.mrf.mxu1  ;;  %v5832_v27 = vmul.f32 %v5575_v50, %v5575_v50 }
 0x21d   : > { %v5576_v14 = vmul.f32 %v5523_v36, %v5252_v22  ;;  %v5250_v29 = vadd.f32 %v5193_v46, %v4726_v19  ;;  %v5787_v9 = vadd.f32 %v5786_v37, %v5572_v26  ;;  %v5830_v60 = vmul.f32 %v5573_v4, %v5573_v4 }
 0x21e   : > { %v5863_v2 = vadd.f32 %v5862_v52, %v5828_v58  ;;  %v7122_v32 = vpop.f32.mrf.mxu0 }
 0x21f   : > { %v6555_v55 = vpack.c.bf16 %v5576_v14, %v5575_v50  ;;  %v5574_v17 = vmul.f32 %v8769_v3, %v5250_v29  ;;  %v5788_v57 = vadd.f32 %v5787_v9, %v5573_v4  ;;  %v5255_v1 = vadd.f32 %v7122_v32, %v4731_v7  ;;  %v8883_v3 = vld [vmem:[#allocation13_spill] sm:$0xff] }
 0x220   : > { %v5864_v24 = vadd.f32 %v5863_v2, %v5829_v15  ;;  %v5206_v51 = vpop.f32.mrf.mxu0  ;;  %v4730_v25 = vadd.f32 %v4685_v54, %v8883_v3  ;;  %v5833_v47 = vmul.f32 %v5576_v14, %v5576_v14 }
 0x221   : > { %6581 = vst [vmem:[%s8696_s28 + $0x78] sm:$0xff] %v6555_v55   ;;  %v6550_v18 = vpack.c.bf16 %v5574_v17, %v5573_v4  ;;  %v5831_v20 = vmul.f32 %v5574_v17, %v5574_v17  ;;  %v5253_v6 = vadd.f32 %v5206_v51, %v4729_v33  ;;  %v5789_v26 = vadd.f32 %v5788_v57, %v5574_v17 }
 0x222   : > { %v5865_v62 = vadd.f32 %v5864_v24, %v5830_v60  ;;  %v7123_v59 = vpop.f32.mrf.mxu0  ;;  %v5579_v12 = vmul.f32 %v5538_v45, %v5255_v1 }
 0x223   : > { %6580 = vst [vmem:[%s8696_s28 + $0x70] sm:$0xff] %v6550_v18   ;;  %v5256_v8 = vadd.f32 %v7123_v59, %v4732_v28  ;;  %v5790_v10 = vadd.f32 %v5789_v26, %v5575_v50  ;;  %v5577_v63 = vmul.f32 %v5528_v31, %v5253_v6 }
 0x224   : > { %v5866_v44 = vadd.f32 %v5865_v62, %v5831_v20  ;;  %v5209_v0 = vpop.f32.mrf.mxu0  ;;  %v5836_v40 = vmul.f32 %v5579_v12, %v5579_v12 }
 0x225   : > { %v5580_v43 = vmul.f32 %v5543_v61, %v5256_v8  ;;  %v5254_v36 = vadd.f32 %v5209_v0, %v4730_v25  ;;  %v5791_v38 = vadd.f32 %v5790_v10, %v5576_v14  ;;  %v5834_v13 = vmul.f32 %v5577_v63, %v5577_v63 }
 0x226   : > { %v5867_v23 = vadd.f32 %v5866_v44, %v5832_v27 }
 0x227   : > { %v6565_v49 = vpack.c.bf16 %v5580_v43, %v5579_v12  ;;  %v5578_v35 = vmul.f32 %v5533_v34, %v5254_v36  ;;  %v5792_v11 = vadd.f32 %v5791_v38, %v5577_v63 }
 0x228   : > { %v5868_v5 = vadd.f32 %v5867_v23, %v5833_v47 }
 0x229   : > { %6583 = vst [vmem:[%s8696_s28 + $0x88] sm:$0xff] %v6565_v49   ;;  %v6560_v56 = vpack.c.bf16 %v5578_v35, %v5577_v63  ;;  %v5835_v48 = vmul.f32 %v5578_v35, %v5578_v35  ;;  %v5793_v39 = vadd.f32 %v5792_v11, %v5578_v35 }
 0x22a   : > { %v5869_v41 = vadd.f32 %v5868_v5, %v5834_v13 }
 0x22b   : > { %6582 = vst [vmem:[%s8696_s28 + $0x80] sm:$0xff] %v6560_v56   ;;  %v5794_v53 = vadd.f32 %v5793_v39, %v5579_v12 }
 0x22c   : > { %v5870_v19 = vadd.f32 %v5869_v41, %v5835_v48 }
 0x22d   : > { %7381 = shalt.err (!%p7378_p3)
}
 0x22e   : > { %s7382_s14 = scalar_lea.hbm %s8796_s7, 2304  ;;  %s7386_s23 = scalar_lea.hbm %s8866_s3, 4608 }
 0x22f   : > { %p7383_p4 = scmp.ne.s32.totalorder %s8796_s7, %s7382_s14  ;;  %p7387_p9 = scmp.lt.s32.totalorder %s8796_s7, %s8866_s3 }
 0x230   : > { %p7388_p10 = scmp.lt.s32.totalorder %s7386_s23, %s7382_s14 }
 0x231   : > { %p7384_p7 = pnand %p7383_p4, %p7528_p5 }
 0x232   : > { %p7389_p11 = por %p7388_p10, %p7387_p9 }
 0x233   : > { %p7385_p8 = pneg %p7384_p7 }
 0x235   : > { %p7390_p12 = pnand %p7389_p11, %p7385_p8 }
 0x237   : > { %7393 = shalt.err (!%p7390_p12)
}
 0x238   : > { %s7462_s29 = smov 64   ;;  %s7463_s5 = smov 4   ;;  %v5837_v22 = vmul.f32 %v5580_v43, %v5580_v43  ;;  %v5795_v58 = vadd.f32 %v5794_v53, %v5580_v43  ;;  %v5871_v37 = vadd.f32 %v5870_v19, %v5836_v40  ;;  %v5879_v31 = vlaneseq }
 0x239   : > { %7131 = dma.vmem_to_hbm [thread:$0]  (%p7528_p5), %s8790_s30, 2304, %s8796_s7, %s5887_s8, %s7462_s29, %s7462_s29, %s7463_s5  }
 0x23a   : > { %v5796_v52 = vrot.slane %v5795_v58, 4  ;;  %v5872_v4 = vadd.f32 %v5871_v37, %v5837_v22  ;;  %s6016_s6 = sshll.u32 %s8676_s13, 3  ;;  %v5880_v15 = vshrl.u32 %v5879_v31, 7  ;;  %s6438_s30 = sshll.u32 %s7511_s19, 7 }
 0x23b   : > { %s201_s7 = scalar_lea.vmem [#allocation5], %s6016_s6  ;;  %s8827_s11 = scalar_lea.hbm %s8867_s4, %s6438_s30 }
 0x23c   : > { %v5797_v42 = vadd.f32 %v5796_v52, %v5795_v58  ;;  %v5873_v46 = vrot.slane %v5872_v4, 4  ;;  %vm5882_vm7 = vcmp.eq.s32.totalorder %v5880_v15, 1  ;;  %s5921_s8 = sshll.u32 %s201_s7, 4  ;;  %vm5881_vm8 = vcmp.eq.s32.totalorder %v5880_v15, 0  ;;  %s5892_s12 = scalar_lea.sflag [#allocation6], %s8676_s13  ;;  %s5922_s8 = int_to_ptr.vmem [resolvable:$true] %s5921_s8 }
 0x23d   : > { %s7394_s14 = scalar_lea.vmem %s5922_s8, 128  ;;  %s7464_s19 = smov [#allocation5]  }
 0x23e   : > { %v5798_v50 = vrot.slane %v5797_v42, 2  ;;  %v5874_v14 = vadd.f32 %v5873_v46, %v5872_v4  ;;  %p7395_p13 = scmp.ne.s32.totalorder %s5922_s8, %s7394_s14  ;;  %s7398_s20 = sshll.u32 %s7464_s19, 4  ;;  %s7399_s20 = int_to_ptr.vmem [resolvable:$false] %s7398_s20 }
 0x23f   : > { %s7400_s22 = scalar_lea.vmem %s7399_s20, 256  ;;  %p7401_p2 = scmp.lt.s32.totalorder %s5922_s8, %s7399_s20 }
 0x240   : > { %v5799_v29 = vadd.f32 %v5798_v50, %v5797_v42  ;;  %v5875_v34 = vrot.slane %v5874_v14, 2  ;;  %p7396_p0 = pnand %p7395_p13, %p7528_p5  ;;  %p7402_p3 = scmp.lt.s32.totalorder %s7400_s22, %s7394_s14 }
 0x242   : > { %v5876_v2 = vadd.f32 %v5875_v34, %v5874_v14  ;;  %v5800_v9 = vrot.slane %v5799_v29, 1  ;;  %p7397_p1 = pneg %p7396_p0  ;;  %p7403_p4 = por %p7402_p3, %p7401_p2 }
 0x244   : > { %v5877_v32 = vrot.slane %v5876_v2, 1  ;;  %v5801_v7 = vadd.f32 %v5800_v9, %v5799_v29  ;;  %p7404_p7 = pnand %p7403_p4, %p7397_p1 }
 0x246   : > { %v5878_v16 = vadd.f32 %v5877_v32, %v5876_v2 }
 0x248   : > { %v5883_v21 = vsel %vm5882_vm7, %v5878_v16, 0.0 }
 0x249   : > { %v5884_v33 = vsel %vm5881_vm8, %v5801_v7, %v5883_v21 }
 0x24a   : > { %5885 = vst [vmem:[%s201_s7] sm:$0xff] %v5884_v33 }
 0x24b   : > { %7407 = shalt.err (!%p7404_p7)
}
 0x24c   : > { %s7408_s23 = scalar_lea.hbm %s8827_s11, 128  ;;  %s7412_s28 = scalar_lea.hbm %s8867_s4, 256 }
 0x24d   : > { %p7409_p8 = scmp.ne.s32.totalorder %s8827_s11, %s7408_s23  ;;  %p7413_p11 = scmp.lt.s32.totalorder %s8827_s11, %s8867_s4 }
 0x24e   : > { %p7414_p12 = scmp.lt.s32.totalorder %s7412_s28, %s7408_s23 }
 0x24f   : > { %p7410_p9 = pnand %p7409_p8, %p7528_p5 }
 0x250   : > { %p7415_p13 = por %p7414_p12, %p7413_p11 }
 0x251   : > { %p7411_p10 = pneg %p7410_p9 }
 0x253   : > { %p7416_p0 = pnand %p7415_p13, %p7411_p10 }
 0x255   : > { %7419 = shalt.err (!%p7416_p0)
}
 0x256   : > { %7132 = dma.vmem_to_hbm [thread:$0]  (%p7528_p5), %s5922_s8, 128, %s8827_s11, %s5892_s12  }
 0x257 PF: > { %p7142_p1 = scmp.ge.s32.totalorder %s7458_s18, 2  ;;  %s5933_s6 = sand.u32 1, %s7446_s15  }
 0x258   : > { %s5934_s30 = scalar_lea.sflag [#allocation4], %s5933_s6 }
 0x259   : > { %p7136_p2 = pnand %p7142_p1, %p7532_p6 }
 0x25b   : > { %p7137_p3 = pneg %p7136_p2 }
 0x25d   : > { %7437 = dma.done.wait (%p7137_p3), %s5934_s30, 2304  }
 0x25e   : > { %7439 = vsyncadd (%p7137_p3), %s5934_s30, 4294964992  ;;  %s5943_s7 = scalar_lea.sflag [#allocation6], %s5933_s6 }
 0x25f   : > { %7441 = dma.done.wait (%p7137_p3), %s5943_s7, 128  }
 0x260   : > { %7443 = vsyncadd (%p7137_p3), %s5943_s7, 4294967168  ;;  %p18_p5 = scmp.ge.s32.totalorder %s7515_s21, 4   ;;  %s8884_s15 = smov %s7450_s16 }
 0x261   : > { %s8885_s16 = smov %s7454_s17  ;;  %s8886_s17 = smov %s7526_s24 }
 0x262   : > { %s8887_s18 = smov %s7515_s21  ;;  %20 = sbr.rel (!%p18_p5) target bundleno = 5 (0x5), region = 92 }
 0x267   :  { %5948 = vsyncpa [#allocation4], 1 }
 0x268   :  { %5950 = vsyncpa [#allocation4 + $0x1], 1 }
 0x269   :  { %5951 = vsyncpa [#allocation6], 1 }
 0x26a   :  { %5953 = vsyncpa [#allocation6 + $0x1], 1 }

</bundles_post_ra>
